<compile_context>
chip_gen: v7x
topology: tpu7x:2x2x1
jax: 0.10.0
libtpu: 0.0.40
codegen_flags: <defaults>
</compile_context>

<pallas_src>
import jax
import jax.numpy as jnp
from jax import lax
from jax.experimental import pallas as pl
from jax.experimental.pallas import tpu as pltpu

K_FILTERS = 32    # k in the PyTorch module
KSIZE = 8         # conv kernel size
N_BASIS = 15      # number of (i, j) polynomial basis terms
GRID_HW = 64      # basis spatial size
OH = OW = 25      # conv output spatial size (32 - 8 + 1)
P_REAL = OH * OW  # 625
P_PAD = 640       # 625 padded up to a multiple of 128 (lane-aligned)


# --------------------------------------------------------------------------
# Fused kernel: conv2d(1->32, 8x8, valid) + bias + ReLU + fc1 + basis einsum
#               + sigmoid.  One grid step per image ("parallel").
# --------------------------------------------------------------------------
def _fused_kernel(p_ref, wc_ref, bc_ref, fcw_ref, fcb_ref, basis_ref,
                  o_ref, conv_ref):
    # p_ref:     (1, 64, 640)   im2col patches^T for this image
    # wc_ref:    (32, 64)       flattened OIHW conv weight
    # bc_ref:    (32, 1)        conv bias (broadcast over lanes)
    # fcw_ref:   (32, 15, 640)  fc weight, channel-major, spatial zero-padded
    # fcb_ref:   (1, 15)        fc bias
    # basis_ref: (15, 4096)     flattened polynomial basis
    # o_ref:     (1, 1, 4096)   sigmoid output for this image
    # conv_ref:  (32, 640)      VMEM scratch, channels-first conv+relu output

    # conv + relu as a channels-first im2col matmul (32,64)x(64,640).
    conv_ref[...] = jnp.maximum(
        jnp.dot(wc_ref[...], p_ref[0], preferred_element_type=jnp.float32)
        + bc_ref[...], 0.0)

    # fc1: y[l] = sum_{c,p} fcw[c,l,p] * conv[c,p].  Contract per channel so
    # no (32,640)->(20480,) relayout is needed; 32 statically-unrolled tiny
    # MXU matmuls (1,640)x(15,640)^T.  Padded lanes 625..639 are zero in fcw.
    y = fcb_ref[...]                                            # (1, 15)
    for c in range(K_FILTERS):                                  # static unroll
        y = y + lax.dot_general(
            conv_ref[c:c + 1, :], fcw_ref[c],
            dimension_numbers=(((1,), (1,)), ((), ())),
            preferred_element_type=jnp.float32)                 # (1, 15)

    # basis projection (1,15)x(15,4096) + sigmoid; lane-dense 4096-wide store.
    z = jnp.dot(y, basis_ref[...], preferred_element_type=jnp.float32)
    o_ref[0] = jax.nn.sigmoid(z)                                # (1, 4096)


def fused_forward_pallas(patches_t, w_mat, b_col, fcw3, fcb, basis_flat):
    N, Q, P = patches_t.shape            # (N, 64, 640)
    C = w_mat.shape[0]                   # 32
    L, G = basis_flat.shape              # (15, 4096)
    return pl.pallas_call(
        _fused_kernel,
        out_shape=jax.ShapeDtypeStruct((N, 1, G), jnp.float32),
        grid_spec=pltpu.PrefetchScalarGridSpec(
            num_scalar_prefetch=0,
            grid=(N,),
            in_specs=[
                pl.BlockSpec((1, Q, P), lambda n: (n, 0, 0)),      # patches
                pl.BlockSpec((C, Q), lambda n: (0, 0)),            # conv W
                pl.BlockSpec((C, 1), lambda n: (0, 0)),            # conv b
                pl.BlockSpec((C, L, P), lambda n: (0, 0, 0)),      # fc W
                pl.BlockSpec((1, L), lambda n: (0, 0)),            # fc b
                pl.BlockSpec((L, G), lambda n: (0, 0)),            # basis
            ],
            out_specs=pl.BlockSpec((1, 1, G), lambda n: (n, 0, 0)),
            scratch_shapes=[pltpu.VMEM((C, P), jnp.float32)],
        ),
        compiler_params=pltpu.CompilerParams(
            dimension_semantics=("parallel",)),
    )(patches_t, w_mat, b_col, fcw3, fcb, basis_flat)


# --------------------------------------------------------------------------
# Glue (plain JAX): single-op patch extraction, one-time parameter layout prep
# --------------------------------------------------------------------------
def im2col_t(x):
    # x: (N, 1, 32, 32) -> (N, 64, 640): patch element q = kh*8+kw on the
    # sublane dim, flattened spatial (oh*25+ow, zero-padded to 640) on lanes.
    N = x.shape[0]
    patches = lax.conv_general_dilated_patches(
        x, (KSIZE, KSIZE), (1, 1), 'VALID',
        dimension_numbers=('NCHW', 'OIHW', 'NCHW'))      # (N, 64, 25, 25)
    p = patches.reshape(N, KSIZE * KSIZE, P_REAL)
    return jnp.pad(p, ((0, 0), (0, 0), (0, P_PAD - P_REAL)))


def prepare_params(params):
    """One-time layout prep (outside the per-forward path)."""
    conv_w, conv_b, fc_w, fc_b, basis = params
    w_mat = conv_w.reshape(K_FILTERS, KSIZE * KSIZE)            # (32, 64)
    b_col = conv_b.reshape(K_FILTERS, 1)                        # (32, 1)
    # fc weight -> (32, 15, 640): channel-major so the kernel can index one
    # channel slab per unrolled step; fold the 625->640 zero pad into it so
    # the relu(bias)-valued padded conv lanes contribute exactly zero.
    fcw = fc_w.reshape(N_BASIS, K_FILTERS, P_REAL)
    fcw = jnp.pad(fcw, ((0, 0), (0, 0), (0, P_PAD - P_REAL)))
    fcw3 = jnp.transpose(fcw, (1, 0, 2))                        # (32, 15, 640)
    fcb = fc_b.reshape(1, N_BASIS)
    basis_flat = basis.reshape(N_BASIS, GRID_HW * GRID_HW)      # (15, 4096)
    return w_mat, b_col, fcw3, fcb, basis_flat


@jax.jit
def my_small_cnn_forward(x, prepared):
    w_mat, b_col, fcw3, fcb, basis_flat = prepared
    N = x.shape[0]
    patches_t = im2col_t(x)                                     # (N, 64, 640)
    out = fused_forward_pallas(patches_t, w_mat, b_col,
                               fcw3, fcb, basis_flat)           # (N, 1, 4096)
    return out.reshape(N, 1, GRID_HW, GRID_HW)


# --------------------------------------------------------------------------
# Reference (plain JAX, HIGHEST precision) and parameter init
# --------------------------------------------------------------------------
def reference_forward(x, params):
    conv_w, conv_b, fc_w, fc_b, basis = params
    N = x.shape[0]
    hp = lax.Precision.HIGHEST
    out = lax.conv_general_dilated(
        x, conv_w, window_strides=(1, 1), padding='VALID',
        dimension_numbers=('NCHW', 'OIHW', 'NCHW'), precision=hp)
    out = jnp.maximum(out + conv_b.reshape(1, -1, 1, 1), 0.0)
    h = out.reshape(N, -1)
    y = jnp.dot(h, fc_w.T, precision=hp) + fc_b
    z = jnp.einsum('li,ijk->ljk', y, basis, precision=hp)
    return jax.nn.sigmoid(z).reshape(N, 1, GRID_HW, GRID_HW)


def init_params(key):
    k1, k2, k3, k4 = jax.random.split(key, 4)
    fan_in_conv = 1 * KSIZE * KSIZE
    bc = 1.0 / jnp.sqrt(fan_in_conv)
    conv_w = jax.random.uniform(k1, (K_FILTERS, 1, KSIZE, KSIZE),
                                jnp.float32, -bc, bc)
    conv_b = jax.random.uniform(k2, (K_FILTERS,), jnp.float32, -bc, bc)
    fan_in_fc = K_FILTERS * OH * OW
    bf = 1.0 / jnp.sqrt(fan_in_fc)
    fc_w = jax.random.uniform(k3, (N_BASIS, fan_in_fc), jnp.float32, -bf, bf)
    fc_b = jax.random.uniform(k4, (N_BASIS,), jnp.float32, -bf, bf)
    # basis identical to the torch construction (torch.meshgrid default = 'ij')
    lin = jnp.linspace(-3.0, 3.0, GRID_HW)
    xg, yg = jnp.meshgrid(lin, lin, indexing='ij')
    basis = jnp.stack([xg ** i * yg ** j
                       for i in range(5) for j in range(5 - i)])
    return conv_w, conv_b, fc_w, fc_b, basis


if __name__ == "__main__":
    key = jax.random.PRNGKey(0)
    pkey, xkey = jax.random.split(key)
    params = init_params(pkey)
    prepared = prepare_params(params)

    # input: batch=2, 1 channel, 32x32 (conv 8x8 valid -> 25x25, as fc1 implies)
    x = jax.random.normal(xkey, (2, 1, 32, 32), jnp.float32)

    out = jax.block_until_ready(my_small_cnn_forward(x, prepared))
    ref = jax.block_until_ready(reference_forward(x, params))

    assert out.shape == (2, 1, 64, 64), out.shape
    # Default MXU f32 precision in-kernel vs HIGHEST-precision reference.
    assert jnp.allclose(out, ref, atol=2e-3, rtol=2e-3), \
        float(jnp.max(jnp.abs(out - ref)))
    print("KERNEL_OK")
</pallas_src>

<mosaic_0001>
module attributes {stable_mosaic.version = 11 : i64} {
  func.func @_fused_kernel(%arg0: i32, %arg1: memref<1x64x640xf32, #tpu.memory_space<vmem>>, %arg2: memref<32x64xf32, #tpu.memory_space<vmem>>, %arg3: memref<32x1xf32, #tpu.memory_space<vmem>>, %arg4: memref<32x15x640xf32, #tpu.memory_space<vmem>>, %arg5: memref<1x15xf32, #tpu.memory_space<vmem>>, %arg6: memref<15x4096xf32, #tpu.memory_space<vmem>>, %arg7: memref<1x1x4096xf32, #tpu.memory_space<vmem>>, %arg8: memref<32x640xf32, #tpu.memory_space<vmem>>) attributes {dimension_semantics = [#tpu.dimension_semantics<parallel>], iteration_bounds = array<i64: 2>, scalar_prefetch = 0 : i64, scratch_operands = 1 : i64, tpu.core_type = #tpu.core_type<tc>, window_params = [{transform_indices = @transform_0, window_bounds = array<i64: 1, 64, 640>}, {pipeline_mode = #tpu.pipeline_mode<synchronous>, transform_indices = @transform_1, window_bounds = array<i64: 32, 64>}, {pipeline_mode = #tpu.pipeline_mode<synchronous>, transform_indices = @transform_2, window_bounds = array<i64: 32, 1>}, {pipeline_mode = #tpu.pipeline_mode<synchronous>, transform_indices = @transform_3, window_bounds = array<i64: 32, 15, 640>}, {pipeline_mode = #tpu.pipeline_mode<synchronous>, transform_indices = @transform_4, window_bounds = array<i64: 1, 15>}, {pipeline_mode = #tpu.pipeline_mode<synchronous>, transform_indices = @transform_5, window_bounds = array<i64: 15, 4096>}, {transform_indices = @transform_6, window_bounds = array<i64: 1, 1, 4096>}]} {
    %c0 = arith.constant 0 : index
    %c0_0 = arith.constant 0 : index
    %0 = vector.load %arg2[%c0, %c0_0] : memref<32x64xf32, #tpu.memory_space<vmem>>, vector<32x64xf32>
    %c0_1 = arith.constant 0 : index
    %c0_2 = arith.constant 0 : index
    %c0_3 = arith.constant 0 : index
    %1 = vector.load %arg1[%c0_1, %c0_2, %c0_3] : memref<1x64x640xf32, #tpu.memory_space<vmem>>, vector<1x64x640xf32>
    %2 = vector.shape_cast %1 : vector<1x64x640xf32> to vector<64x640xf32>
    %cst = arith.constant dense<0.000000e+00> : vector<32x640xf32>
    %3 = tpu.matmul %0, %2, %cst {dimension_numbers = #tpu.dot_dimension_numbers<[1], [0], [0], [1], [0, 0, 1, 1], [], []>} : vector<32x64xf32>, vector<64x640xf32>, vector<32x640xf32> -> vector<32x640xf32>
    %c0_4 = arith.constant 0 : index
    %c0_5 = arith.constant 0 : index
    %4 = vector.load %arg3[%c0_4, %c0_5] : memref<32x1xf32, #tpu.memory_space<vmem>>, vector<32x1xf32>
    %5 = vector.broadcast %4 : vector<32x1xf32> to vector<32x640xf32>
    %6 = arith.addf %3, %5 : vector<32x640xf32>
    %cst_6 = arith.constant 0.000000e+00 : f32
    %7 = vector.broadcast %cst_6 : f32 to vector<32x640xf32>
    %8 = arith.maximumf %6, %7 : vector<32x640xf32>
    %c0_7 = arith.constant 0 : index
    %c0_8 = arith.constant 0 : index
    %9 = vector.load %arg8[%c0_7, %c0_8] : memref<32x640xf32, #tpu.memory_space<vmem>>, vector<32x640xf32>
    tpu.vector_store %arg8[%c0_7, %c0_8], %8 {strides = array<i32>} : memref<32x640xf32, #tpu.memory_space<vmem>>, vector<32x640xf32>,
    %c0_9 = arith.constant 0 : index
    %c0_10 = arith.constant 0 : index
    %10 = vector.load %arg5[%c0_9, %c0_10] : memref<1x15xf32, #tpu.memory_space<vmem>>, vector<1x15xf32>
    %c0_11 = arith.constant 0 : index
    %c0_12 = arith.constant 0 : index
    %11 = vector.load %arg8[%c0_11, %c0_12] : memref<32x640xf32, #tpu.memory_space<vmem>>, vector<1x640xf32>
    %c0_13 = arith.constant 0 : index
    %c0_14 = arith.constant 0 : index
    %c0_15 = arith.constant 0 : index
    %12 = vector.load %arg4[%c0_13, %c0_14, %c0_15] : memref<32x15x640xf32, #tpu.memory_space<vmem>>, vector<1x15x640xf32>
    %13 = vector.shape_cast %12 : vector<1x15x640xf32> to vector<15x640xf32>
    %cst_16 = arith.constant dense<0.000000e+00> : vector<1x15xf32>
    %14 = tpu.matmul %11, %13, %cst_16 {dimension_numbers = #tpu.dot_dimension_numbers<[1], [1], [0], [0], [0, 0, 1, 0], [], []>} : vector<1x640xf32>, vector<15x640xf32>, vector<1x15xf32> -> vector<1x15xf32>
    %15 = arith.addf %10, %14 : vector<1x15xf32>
    %c1 = arith.constant 1 : index
    %c0_17 = arith.constant 0 : index
    %16 = vector.load %arg8[%c1, %c0_17] : memref<32x640xf32, #tpu.memory_space<vmem>>, vector<1x640xf32>
    %c1_18 = arith.constant 1 : index
    %c0_19 = arith.constant 0 : index
    %c0_20 = arith.constant 0 : index
    %17 = vector.load %arg4[%c1_18, %c0_19, %c0_20] : memref<32x15x640xf32, #tpu.memory_space<vmem>>, vector<1x15x640xf32>
    %18 = vector.shape_cast %17 : vector<1x15x640xf32> to vector<15x640xf32>
    %cst_21 = arith.constant dense<0.000000e+00> : vector<1x15xf32>
    %19 = tpu.matmul %16, %18, %cst_21 {dimension_numbers = #tpu.dot_dimension_numbers<[1], [1], [0], [0], [0, 0, 1, 0], [], []>} : vector<1x640xf32>, vector<15x640xf32>, vector<1x15xf32> -> vector<1x15xf32>
    %20 = arith.addf %15, %19 : vector<1x15xf32>
    %c2 = arith.constant 2 : index
    %c0_22 = arith.constant 0 : index
    %21 = vector.load %arg8[%c2, %c0_22] : memref<32x640xf32, #tpu.memory_space<vmem>>, vector<1x640xf32>
    %c2_23 = arith.constant 2 : index
    %c0_24 = arith.constant 0 : index
    %c0_25 = arith.constant 0 : index
    %22 = vector.load %arg4[%c2_23, %c0_24, %c0_25] : memref<32x15x640xf32, #tpu.memory_space<vmem>>, vector<1x15x640xf32>
    %23 = vector.shape_cast %22 : vector<1x15x640xf32> to vector<15x640xf32>
    %cst_26 = arith.constant dense<0.000000e+00> : vector<1x15xf32>
    %24 = tpu.matmul %21, %23, %cst_26 {dimension_numbers = #tpu.dot_dimension_numbers<[1], [1], [0], [0], [0, 0, 1, 0], [], []>} : vector<1x640xf32>, vector<15x640xf32>, vector<1x15xf32> -> vector<1x15xf32>
    %25 = arith.addf %20, %24 : vector<1x15xf32>
    %c3 = arith.constant 3 : index
    %c0_27 = arith.constant 0 : index
    %26 = vector.load %arg8[%c3, %c0_27] : memref<32x640xf32, #tpu.memory_space<vmem>>, vector<1x640xf32>
    %c3_28 = arith.constant 3 : index
    %c0_29 = arith.constant 0 : index
    %c0_30 = arith.constant 0 : index
    %27 = vector.load %arg4[%c3_28, %c0_29, %c0_30] : memref<32x15x640xf32, #tpu.memory_space<vmem>>, vector<1x15x640xf32>
    %28 = vector.shape_cast %27 : vector<1x15x640xf32> to vector<15x640xf32>
    %cst_31 = arith.constant dense<0.000000e+00> : vector<1x15xf32>
    %29 = tpu.matmul %26, %28, %cst_31 {dimension_numbers = #tpu.dot_dimension_numbers<[1], [1], [0], [0], [0, 0, 1, 0], [], []>} : vector<1x640xf32>, vector<15x640xf32>, vector<1x15xf32> -> vector<1x15xf32>
    %30 = arith.addf %25, %29 : vector<1x15xf32>
    %c4 = arith.constant 4 : index
    %c0_32 = arith.constant 0 : index
    %31 = vector.load %arg8[%c4, %c0_32] : memref<32x640xf32, #tpu.memory_space<vmem>>, vector<1x640xf32>
    %c4_33 = arith.constant 4 : index
    %c0_34 = arith.constant 0 : index
    %c0_35 = arith.constant 0 : index
    %32 = vector.load %arg4[%c4_33, %c0_34, %c0_35] : memref<32x15x640xf32, #tpu.memory_space<vmem>>, vector<1x15x640xf32>
    %33 = vector.shape_cast %32 : vector<1x15x640xf32> to vector<15x640xf32>
    %cst_36 = arith.constant dense<0.000000e+00> : vector<1x15xf32>
    %34 = tpu.matmul %31, %33, %cst_36 {dimension_numbers = #tpu.dot_dimension_numbers<[1], [1], [0], [0], [0, 0, 1, 0], [], []>} : vector<1x640xf32>, vector<15x640xf32>, vector<1x15xf32> -> vector<1x15xf32>
    %35 = arith.addf %30, %34 : vector<1x15xf32>
    %c5 = arith.constant 5 : index
    %c0_37 = arith.constant 0 : index
    %36 = vector.load %arg8[%c5, %c0_37] : memref<32x640xf32, #tpu.memory_space<vmem>>, vector<1x640xf32>
    %c5_38 = arith.constant 5 : index
    %c0_39 = arith.constant 0 : index
    %c0_40 = arith.constant 0 : index
    %37 = vector.load %arg4[%c5_38, %c0_39, %c0_40] : memref<32x15x640xf32, #tpu.memory_space<vmem>>, vector<1x15x640xf32>
    %38 = vector.shape_cast %37 : vector<1x15x640xf32> to vector<15x640xf32>
    %cst_41 = arith.constant dense<0.000000e+00> : vector<1x15xf32>
    %39 = tpu.matmul %36, %38, %cst_41 {dimension_numbers = #tpu.dot_dimension_numbers<[1], [1], [0], [0], [0, 0, 1, 0], [], []>} : vector<1x640xf32>, vector<15x640xf32>, vector<1x15xf32> -> vector<1x15xf32>
    %40 = arith.addf %35, %39 : vector<1x15xf32>
    %c6 = arith.constant 6 : index
    %c0_42 = arith.constant 0 : index
    %41 = vector.load %arg8[%c6, %c0_42] : memref<32x640xf32, #tpu.memory_space<vmem>>, vector<1x640xf32>
    %c6_43 = arith.constant 6 : index
    %c0_44 = arith.constant 0 : index
    %c0_45 = arith.constant 0 : index
    %42 = vector.load %arg4[%c6_43, %c0_44, %c0_45] : memref<32x15x640xf32, #tpu.memory_space<vmem>>, vector<1x15x640xf32>
    %43 = vector.shape_cast %42 : vector<1x15x640xf32> to vector<15x640xf32>
    %cst_46 = arith.constant dense<0.000000e+00> : vector<1x15xf32>
    %44 = tpu.matmul %41, %43, %cst_46 {dimension_numbers = #tpu.dot_dimension_numbers<[1], [1], [0], [0], [0, 0, 1, 0], [], []>} : vector<1x640xf32>, vector<15x640xf32>, vector<1x15xf32> -> vector<1x15xf32>
    %45 = arith.addf %40, %44 : vector<1x15xf32>
    %c7 = arith.constant 7 : index
    %c0_47 = arith.constant 0 : index
    %46 = vector.load %arg8[%c7, %c0_47] : memref<32x640xf32, #tpu.memory_space<vmem>>, vector<1x640xf32>
    %c7_48 = arith.constant 7 : index
    %c0_49 = arith.constant 0 : index
    %c0_50 = arith.constant 0 : index
    %47 = vector.load %arg4[%c7_48, %c0_49, %c0_50] : memref<32x15x640xf32, #tpu.memory_space<vmem>>, vector<1x15x640xf32>
    %48 = vector.shape_cast %47 : vector<1x15x640xf32> to vector<15x640xf32>
    %cst_51 = arith.constant dense<0.000000e+00> : vector<1x15xf32>
    %49 = tpu.matmul %46, %48, %cst_51 {dimension_numbers = #tpu.dot_dimension_numbers<[1], [1], [0], [0], [0, 0, 1, 0], [], []>} : vector<1x640xf32>, vector<15x640xf32>, vector<1x15xf32> -> vector<1x15xf32>
    %50 = arith.addf %45, %49 : vector<1x15xf32>
    %c8 = arith.constant 8 : index
    %c0_52 = arith.constant 0 : index
    %51 = vector.load %arg8[%c8, %c0_52] : memref<32x640xf32, #tpu.memory_space<vmem>>, vector<1x640xf32>
    %c8_53 = arith.constant 8 : index
    %c0_54 = arith.constant 0 : index
    %c0_55 = arith.constant 0 : index
    %52 = vector.load %arg4[%c8_53, %c0_54, %c0_55] : memref<32x15x640xf32, #tpu.memory_space<vmem>>, vector<1x15x640xf32>
    %53 = vector.shape_cast %52 : vector<1x15x640xf32> to vector<15x640xf32>
    %cst_56 = arith.constant dense<0.000000e+00> : vector<1x15xf32>
    %54 = tpu.matmul %51, %53, %cst_56 {dimension_numbers = #tpu.dot_dimension_numbers<[1], [1], [0], [0], [0, 0, 1, 0], [], []>} : vector<1x640xf32>, vector<15x640xf32>, vector<1x15xf32> -> vector<1x15xf32>
    %55 = arith.addf %50, %54 : vector<1x15xf32>
    %c9 = arith.constant 9 : index
    %c0_57 = arith.constant 0 : index
    %56 = vector.load %arg8[%c9, %c0_57] : memref<32x640xf32, #tpu.memory_space<vmem>>, vector<1x640xf32>
    %c9_58 = arith.constant 9 : index
    %c0_59 = arith.constant 0 : index
    %c0_60 = arith.constant 0 : index
    %57 = vector.load %arg4[%c9_58, %c0_59, %c0_60] : memref<32x15x640xf32, #tpu.memory_space<vmem>>, vector<1x15x640xf32>
    %58 = vector.shape_cast %57 : vector<1x15x640xf32> to vector<15x640xf32>
    %cst_61 = arith.constant dense<0.000000e+00> : vector<1x15xf32>
    %59 = tpu.matmul %56, %58, %cst_61 {dimension_numbers = #tpu.dot_dimension_numbers<[1], [1], [0], [0], [0, 0, 1, 0], [], []>} : vector<1x640xf32>, vector<15x640xf32>, vector<1x15xf32> -> vector<1x15xf32>
    %60 = arith.addf %55, %59 : vector<1x15xf32>
    %c10 = arith.constant 10 : index
    %c0_62 = arith.constant 0 : index
    %61 = vector.load %arg8[%c10, %c0_62] : memref<32x640xf32, #tpu.memory_space<vmem>>, vector<1x640xf32>
    %c10_63 = arith.constant 10 : index
    %c0_64 = arith.constant 0 : index
    %c0_65 = arith.constant 0 : index
    %62 = vector.load %arg4[%c10_63, %c0_64, %c0_65] : memref<32x15x640xf32, #tpu.memory_space<vmem>>, vector<1x15x640xf32>
    %63 = vector.shape_cast %62 : vector<1x15x640xf32> to vector<15x640xf32>
    %cst_66 = arith.constant dense<0.000000e+00> : vector<1x15xf32>
    %64 = tpu.matmul %61, %63, %cst_66 {dimension_numbers = #tpu.dot_dimension_numbers<[1], [1], [0], [0], [0, 0, 1, 0], [], []>} : vector<1x640xf32>, vector<15x640xf32>, vector<1x15xf32> -> vector<1x15xf32>
    %65 = arith.addf %60, %64 : vector<1x15xf32>
    %c11 = arith.constant 11 : index
    %c0_67 = arith.constant 0 : index
    %66 = vector.load %arg8[%c11, %c0_67] : memref<32x640xf32, #tpu.memory_space<vmem>>, vector<1x640xf32>
    %c11_68 = arith.constant 11 : index
    %c0_69 = arith.constant 0 : index
    %c0_70 = arith.constant 0 : index
    %67 = vector.load %arg4[%c11_68, %c0_69, %c0_70] : memref<32x15x640xf32, #tpu.memory_space<vmem>>, vector<1x15x640xf32>
    %68 = vector.shape_cast %67 : vector<1x15x640xf32> to vector<15x640xf32>
    %cst_71 = arith.constant dense<0.000000e+00> : vector<1x15xf32>
    %69 = tpu.matmul %66, %68, %cst_71 {dimension_numbers = #tpu.dot_dimension_numbers<[1], [1], [0], [0], [0, 0, 1, 0], [], []>} : vector<1x640xf32>, vector<15x640xf32>, vector<1x15xf32> -> vector<1x15xf32>
    %70 = arith.addf %65, %69 : vector<1x15xf32>
    %c12 = arith.constant 12 : index
    %c0_72 = arith.constant 0 : index
    %71 = vector.load %arg8[%c12, %c0_72] : memref<32x640xf32, #tpu.memory_space<vmem>>, vector<1x640xf32>
    %c12_73 = arith.constant 12 : index
    %c0_74 = arith.constant 0 : index
    %c0_75 = arith.constant 0 : index
    %72 = vector.load %arg4[%c12_73, %c0_74, %c0_75] : memref<32x15x640xf32, #tpu.memory_space<vmem>>, vector<1x15x640xf32>
    %73 = vector.shape_cast %72 : vector<1x15x640xf32> to vector<15x640xf32>
    %cst_76 = arith.constant dense<0.000000e+00> : vector<1x15xf32>
    %74 = tpu.matmul %71, %73, %cst_76 {dimension_numbers = #tpu.dot_dimension_numbers<[1], [1], [0], [0], [0, 0, 1, 0], [], []>} : vector<1x640xf32>, vector<15x640xf32>, vector<1x15xf32> -> vector<1x15xf32>
    %75 = arith.addf %70, %74 : vector<1x15xf32>
    %c13 = arith.constant 13 : index
    %c0_77 = arith.constant 0 : index
    %76 = vector.load %arg8[%c13, %c0_77] : memref<32x640xf32, #tpu.memory_space<vmem>>, vector<1x640xf32>
    %c13_78 = arith.constant 13 : index
    %c0_79 = arith.constant 0 : index
    %c0_80 = arith.constant 0 : index
    %77 = vector.load %arg4[%c13_78, %c0_79, %c0_80] : memref<32x15x640xf32, #tpu.memory_space<vmem>>, vector<1x15x640xf32>
    %78 = vector.shape_cast %77 : vector<1x15x640xf32> to vector<15x640xf32>
    %cst_81 = arith.constant dense<0.000000e+00> : vector<1x15xf32>
    %79 = tpu.matmul %76, %78, %cst_81 {dimension_numbers = #tpu.dot_dimension_numbers<[1], [1], [0], [0], [0, 0, 1, 0], [], []>} : vector<1x640xf32>, vector<15x640xf32>, vector<1x15xf32> -> vector<1x15xf32>
    %80 = arith.addf %75, %79 : vector<1x15xf32>
    %c14 = arith.constant 14 : index
    %c0_82 = arith.constant 0 : index
    %81 = vector.load %arg8[%c14, %c0_82] : memref<32x640xf32, #tpu.memory_space<vmem>>, vector<1x640xf32>
    %c14_83 = arith.constant 14 : index
    %c0_84 = arith.constant 0 : index
    %c0_85 = arith.constant 0 : index
    %82 = vector.load %arg4[%c14_83, %c0_84, %c0_85] : memref<32x15x640xf32, #tpu.memory_space<vmem>>, vector<1x15x640xf32>
    %83 = vector.shape_cast %82 : vector<1x15x640xf32> to vector<15x640xf32>
    %cst_86 = arith.constant dense<0.000000e+00> : vector<1x15xf32>
    %84 = tpu.matmul %81, %83, %cst_86 {dimension_numbers = #tpu.dot_dimension_numbers<[1], [1], [0], [0], [0, 0, 1, 0], [], []>} : vector<1x640xf32>, vector<15x640xf32>, vector<1x15xf32> -> vector<1x15xf32>
    %85 = arith.addf %80, %84 : vector<1x15xf32>
    %c15 = arith.constant 15 : index
    %c0_87 = arith.constant 0 : index
    %86 = vector.load %arg8[%c15, %c0_87] : memref<32x640xf32, #tpu.memory_space<vmem>>, vector<1x640xf32>
    %c15_88 = arith.constant 15 : index
    %c0_89 = arith.constant 0 : index
    %c0_90 = arith.constant 0 : index
    %87 = vector.load %arg4[%c15_88, %c0_89, %c0_90] : memref<32x15x640xf32, #tpu.memory_space<vmem>>, vector<1x15x640xf32>
    %88 = vector.shape_cast %87 : vector<1x15x640xf32> to vector<15x640xf32>
    %cst_91 = arith.constant dense<0.000000e+00> : vector<1x15xf32>
    %89 = tpu.matmul %86, %88, %cst_91 {dimension_numbers = #tpu.dot_dimension_numbers<[1], [1], [0], [0], [0, 0, 1, 0], [], []>} : vector<1x640xf32>, vector<15x640xf32>, vector<1x15xf32> -> vector<1x15xf32>
    %90 = arith.addf %85, %89 : vector<1x15xf32>
    %c16 = arith.constant 16 : index
    %c0_92 = arith.constant 0 : index
    %91 = vector.load %arg8[%c16, %c0_92] : memref<32x640xf32, #tpu.memory_space<vmem>>, vector<1x640xf32>
    %c16_93 = arith.constant 16 : index
    %c0_94 = arith.constant 0 : index
    %c0_95 = arith.constant 0 : index
    %92 = vector.load %arg4[%c16_93, %c0_94, %c0_95] : memref<32x15x640xf32, #tpu.memory_space<vmem>>, vector<1x15x640xf32>
    %93 = vector.shape_cast %92 : vector<1x15x640xf32> to vector<15x640xf32>
    %cst_96 = arith.constant dense<0.000000e+00> : vector<1x15xf32>
    %94 = tpu.matmul %91, %93, %cst_96 {dimension_numbers = #tpu.dot_dimension_numbers<[1], [1], [0], [0], [0, 0, 1, 0], [], []>} : vector<1x640xf32>, vector<15x640xf32>, vector<1x15xf32> -> vector<1x15xf32>
    %95 = arith.addf %90, %94 : vector<1x15xf32>
    %c17 = arith.constant 17 : index
    %c0_97 = arith.constant 0 : index
    %96 = vector.load %arg8[%c17, %c0_97] : memref<32x640xf32, #tpu.memory_space<vmem>>, vector<1x640xf32>
    %c17_98 = arith.constant 17 : index
    %c0_99 = arith.constant 0 : index
    %c0_100 = arith.constant 0 : index
    %97 = vector.load %arg4[%c17_98, %c0_99, %c0_100] : memref<32x15x640xf32, #tpu.memory_space<vmem>>, vector<1x15x640xf32>
    %98 = vector.shape_cast %97 : vector<1x15x640xf32> to vector<15x640xf32>
    %cst_101 = arith.constant dense<0.000000e+00> : vector<1x15xf32>
    %99 = tpu.matmul %96, %98, %cst_101 {dimension_numbers = #tpu.dot_dimension_numbers<[1], [1], [0], [0], [0, 0, 1, 0], [], []>} : vector<1x640xf32>, vector<15x640xf32>, vector<1x15xf32> -> vector<1x15xf32>
    %100 = arith.addf %95, %99 : vector<1x15xf32>
    %c18 = arith.constant 18 : index
    %c0_102 = arith.constant 0 : index
    %101 = vector.load %arg8[%c18, %c0_102] : memref<32x640xf32, #tpu.memory_space<vmem>>, vector<1x640xf32>
    %c18_103 = arith.constant 18 : index
    %c0_104 = arith.constant 0 : index
    %c0_105 = arith.constant 0 : index
    %102 = vector.load %arg4[%c18_103, %c0_104, %c0_105] : memref<32x15x640xf32, #tpu.memory_space<vmem>>, vector<1x15x640xf32>
    %103 = vector.shape_cast %102 : vector<1x15x640xf32> to vector<15x640xf32>
    %cst_106 = arith.constant dense<0.000000e+00> : vector<1x15xf32>
    %104 = tpu.matmul %101, %103, %cst_106 {dimension_numbers = #tpu.dot_dimension_numbers<[1], [1], [0], [0], [0, 0, 1, 0], [], []>} : vector<1x640xf32>, vector<15x640xf32>, vector<1x15xf32> -> vector<1x15xf32>
    %105 = arith.addf %100, %104 : vector<1x15xf32>
    %c19 = arith.constant 19 : index
    %c0_107 = arith.constant 0 : index
    %106 = vector.load %arg8[%c19, %c0_107] : memref<32x640xf32, #tpu.memory_space<vmem>>, vector<1x640xf32>
    %c19_108 = arith.constant 19 : index
    %c0_109 = arith.constant 0 : index
    %c0_110 = arith.constant 0 : index
    %107 = vector.load %arg4[%c19_108, %c0_109, %c0_110] : memref<32x15x640xf32, #tpu.memory_space<vmem>>, vector<1x15x640xf32>
    %108 = vector.shape_cast %107 : vector<1x15x640xf32> to vector<15x640xf32>
    %cst_111 = arith.constant dense<0.000000e+00> : vector<1x15xf32>
    %109 = tpu.matmul %106, %108, %cst_111 {dimension_numbers = #tpu.dot_dimension_numbers<[1], [1], [0], [0], [0, 0, 1, 0], [], []>} : vector<1x640xf32>, vector<15x640xf32>, vector<1x15xf32> -> vector<1x15xf32>
    %110 = arith.addf %105, %109 : vector<1x15xf32>
    %c20 = arith.constant 20 : index
    %c0_112 = arith.constant 0 : index
    %111 = vector.load %arg8[%c20, %c0_112] : memref<32x640xf32, #tpu.memory_space<vmem>>, vector<1x640xf32>
    %c20_113 = arith.constant 20 : index
    %c0_114 = arith.constant 0 : index
    %c0_115 = arith.constant 0 : index
    %112 = vector.load %arg4[%c20_113, %c0_114, %c0_115] : memref<32x15x640xf32, #tpu.memory_space<vmem>>, vector<1x15x640xf32>
    %113 = vector.shape_cast %112 : vector<1x15x640xf32> to vector<15x640xf32>
    %cst_116 = arith.constant dense<0.000000e+00> : vector<1x15xf32>
    %114 = tpu.matmul %111, %113, %cst_116 {dimension_numbers = #tpu.dot_dimension_numbers<[1], [1], [0], [0], [0, 0, 1, 0], [], []>} : vector<1x640xf32>, vector<15x640xf32>, vector<1x15xf32> -> vector<1x15xf32>
    %115 = arith.addf %110, %114 : vector<1x15xf32>
    %c21 = arith.constant 21 : index
    %c0_117 = arith.constant 0 : index
    %116 = vector.load %arg8[%c21, %c0_117] : memref<32x640xf32, #tpu.memory_space<vmem>>, vector<1x640xf32>
    %c21_118 = arith.constant 21 : index
    %c0_119 = arith.constant 0 : index
    %c0_120 = arith.constant 0 : index
    %117 = vector.load %arg4[%c21_118, %c0_119, %c0_120] : memref<32x15x640xf32, #tpu.memory_space<vmem>>, vector<1x15x640xf32>
    %118 = vector.shape_cast %117 : vector<1x15x640xf32> to vector<15x640xf32>
    %cst_121 = arith.constant dense<0.000000e+00> : vector<1x15xf32>
    %119 = tpu.matmul %116, %118, %cst_121 {dimension_numbers = #tpu.dot_dimension_numbers<[1], [1], [0], [0], [0, 0, 1, 0], [], []>} : vector<1x640xf32>, vector<15x640xf32>, vector<1x15xf32> -> vector<1x15xf32>
    %120 = arith.addf %115, %119 : vector<1x15xf32>
    %c22 = arith.constant 22 : index
    %c0_122 = arith.constant 0 : index
    %121 = vector.load %arg8[%c22, %c0_122] : memref<32x640xf32, #tpu.memory_space<vmem>>, vector<1x640xf32>
    %c22_123 = arith.constant 22 : index
    %c0_124 = arith.constant 0 : index
    %c0_125 = arith.constant 0 : index
    %122 = vector.load %arg4[%c22_123, %c0_124, %c0_125] : memref<32x15x640xf32, #tpu.memory_space<vmem>>, vector<1x15x640xf32>
    %123 = vector.shape_cast %122 : vector<1x15x640xf32> to vector<15x640xf32>
    %cst_126 = arith.constant dense<0.000000e+00> : vector<1x15xf32>
    %124 = tpu.matmul %121, %123, %cst_126 {dimension_numbers = #tpu.dot_dimension_numbers<[1], [1], [0], [0], [0, 0, 1, 0], [], []>} : vector<1x640xf32>, vector<15x640xf32>, vector<1x15xf32> -> vector<1x15xf32>
    %125 = arith.addf %120, %124 : vector<1x15xf32>
    %c23 = arith.constant 23 : index
    %c0_127 = arith.constant 0 : index
    %126 = vector.load %arg8[%c23, %c0_127] : memref<32x640xf32, #tpu.memory_space<vmem>>, vector<1x640xf32>
    %c23_128 = arith.constant 23 : index
    %c0_129 = arith.constant 0 : index
    %c0_130 = arith.constant 0 : index
    %127 = vector.load %arg4[%c23_128, %c0_129, %c0_130] : memref<32x15x640xf32, #tpu.memory_space<vmem>>, vector<1x15x640xf32>
    %128 = vector.shape_cast %127 : vector<1x15x640xf32> to vector<15x640xf32>
    %cst_131 = arith.constant dense<0.000000e+00> : vector<1x15xf32>
    %129 = tpu.matmul %126, %128, %cst_131 {dimension_numbers = #tpu.dot_dimension_numbers<[1], [1], [0], [0], [0, 0, 1, 0], [], []>} : vector<1x640xf32>, vector<15x640xf32>, vector<1x15xf32> -> vector<1x15xf32>
    %130 = arith.addf %125, %129 : vector<1x15xf32>
    %c24 = arith.constant 24 : index
    %c0_132 = arith.constant 0 : index
    %131 = vector.load %arg8[%c24, %c0_132] : memref<32x640xf32, #tpu.memory_space<vmem>>, vector<1x640xf32>
    %c24_133 = arith.constant 24 : index
    %c0_134 = arith.constant 0 : index
    %c0_135 = arith.constant 0 : index
    %132 = vector.load %arg4[%c24_133, %c0_134, %c0_135] : memref<32x15x640xf32, #tpu.memory_space<vmem>>, vector<1x15x640xf32>
    %133 = vector.shape_cast %132 : vector<1x15x640xf32> to vector<15x640xf32>
    %cst_136 = arith.constant dense<0.000000e+00> : vector<1x15xf32>
    %134 = tpu.matmul %131, %133, %cst_136 {dimension_numbers = #tpu.dot_dimension_numbers<[1], [1], [0], [0], [0, 0, 1, 0], [], []>} : vector<1x640xf32>, vector<15x640xf32>, vector<1x15xf32> -> vector<1x15xf32>
    %135 = arith.addf %130, %134 : vector<1x15xf32>
    %c25 = arith.constant 25 : index
    %c0_137 = arith.constant 0 : index
    %136 = vector.load %arg8[%c25, %c0_137] : memref<32x640xf32, #tpu.memory_space<vmem>>, vector<1x640xf32>
    %c25_138 = arith.constant 25 : index
    %c0_139 = arith.constant 0 : index
    %c0_140 = arith.constant 0 : index
    %137 = vector.load %arg4[%c25_138, %c0_139, %c0_140] : memref<32x15x640xf32, #tpu.memory_space<vmem>>, vector<1x15x640xf32>
    %138 = vector.shape_cast %137 : vector<1x15x640xf32> to vector<15x640xf32>
    %cst_141 = arith.constant dense<0.000000e+00> : vector<1x15xf32>
    %139 = tpu.matmul %136, %138, %cst_141 {dimension_numbers = #tpu.dot_dimension_numbers<[1], [1], [0], [0], [0, 0, 1, 0], [], []>} : vector<1x640xf32>, vector<15x640xf32>, vector<1x15xf32> -> vector<1x15xf32>
    %140 = arith.addf %135, %139 : vector<1x15xf32>
    %c26 = arith.constant 26 : index
    %c0_142 = arith.constant 0 : index
    %141 = vector.load %arg8[%c26, %c0_142] : memref<32x640xf32, #tpu.memory_space<vmem>>, vector<1x640xf32>
    %c26_143 = arith.constant 26 : index
    %c0_144 = arith.constant 0 : index
    %c0_145 = arith.constant 0 : index
    %142 = vector.load %arg4[%c26_143, %c0_144, %c0_145] : memref<32x15x640xf32, #tpu.memory_space<vmem>>, vector<1x15x640xf32>
    %143 = vector.shape_cast %142 : vector<1x15x640xf32> to vector<15x640xf32>
    %cst_146 = arith.constant dense<0.000000e+00> : vector<1x15xf32>
    %144 = tpu.matmul %141, %143, %cst_146 {dimension_numbers = #tpu.dot_dimension_numbers<[1], [1], [0], [0], [0, 0, 1, 0], [], []>} : vector<1x640xf32>, vector<15x640xf32>, vector<1x15xf32> -> vector<1x15xf32>
    %145 = arith.addf %140, %144 : vector<1x15xf32>
    %c27 = arith.constant 27 : index
    %c0_147 = arith.constant 0 : index
    %146 = vector.load %arg8[%c27, %c0_147] : memref<32x640xf32, #tpu.memory_space<vmem>>, vector<1x640xf32>
    %c27_148 = arith.constant 27 : index
    %c0_149 = arith.constant 0 : index
    %c0_150 = arith.constant 0 : index
    %147 = vector.load %arg4[%c27_148, %c0_149, %c0_150] : memref<32x15x640xf32, #tpu.memory_space<vmem>>, vector<1x15x640xf32>
    %148 = vector.shape_cast %147 : vector<1x15x640xf32> to vector<15x640xf32>
    %cst_151 = arith.constant dense<0.000000e+00> : vector<1x15xf32>
    %149 = tpu.matmul %146, %148, %cst_151 {dimension_numbers = #tpu.dot_dimension_numbers<[1], [1], [0], [0], [0, 0, 1, 0], [], []>} : vector<1x640xf32>, vector<15x640xf32>, vector<1x15xf32> -> vector<1x15xf32>
    %150 = arith.addf %145, %149 : vector<1x15xf32>
    %c28 = arith.constant 28 : index
    %c0_152 = arith.constant 0 : index
    %151 = vector.load %arg8[%c28, %c0_152] : memref<32x640xf32, #tpu.memory_space<vmem>>, vector<1x640xf32>
    %c28_153 = arith.constant 28 : index
    %c0_154 = arith.constant 0 : index
    %c0_155 = arith.constant 0 : index
    %152 = vector.load %arg4[%c28_153, %c0_154, %c0_155] : memref<32x15x640xf32, #tpu.memory_space<vmem>>, vector<1x15x640xf32>
    %153 = vector.shape_cast %152 : vector<1x15x640xf32> to vector<15x640xf32>
    %cst_156 = arith.constant dense<0.000000e+00> : vector<1x15xf32>
    %154 = tpu.matmul %151, %153, %cst_156 {dimension_numbers = #tpu.dot_dimension_numbers<[1], [1], [0], [0], [0, 0, 1, 0], [], []>} : vector<1x640xf32>, vector<15x640xf32>, vector<1x15xf32> -> vector<1x15xf32>
    %155 = arith.addf %150, %154 : vector<1x15xf32>
    %c29 = arith.constant 29 : index
    %c0_157 = arith.constant 0 : index
    %156 = vector.load %arg8[%c29, %c0_157] : memref<32x640xf32, #tpu.memory_space<vmem>>, vector<1x640xf32>
    %c29_158 = arith.constant 29 : index
    %c0_159 = arith.constant 0 : index
    %c0_160 = arith.constant 0 : index
    %157 = vector.load %arg4[%c29_158, %c0_159, %c0_160] : memref<32x15x640xf32, #tpu.memory_space<vmem>>, vector<1x15x640xf32>
    %158 = vector.shape_cast %157 : vector<1x15x640xf32> to vector<15x640xf32>
    %cst_161 = arith.constant dense<0.000000e+00> : vector<1x15xf32>
    %159 = tpu.matmul %156, %158, %cst_161 {dimension_numbers = #tpu.dot_dimension_numbers<[1], [1], [0], [0], [0, 0, 1, 0], [], []>} : vector<1x640xf32>, vector<15x640xf32>, vector<1x15xf32> -> vector<1x15xf32>
    %160 = arith.addf %155, %159 : vector<1x15xf32>
    %c30 = arith.constant 30 : index
    %c0_162 = arith.constant 0 : index
    %161 = vector.load %arg8[%c30, %c0_162] : memref<32x640xf32, #tpu.memory_space<vmem>>, vector<1x640xf32>
    %c30_163 = arith.constant 30 : index
    %c0_164 = arith.constant 0 : index
    %c0_165 = arith.constant 0 : index
    %162 = vector.load %arg4[%c30_163, %c0_164, %c0_165] : memref<32x15x640xf32, #tpu.memory_space<vmem>>, vector<1x15x640xf32>
    %163 = vector.shape_cast %162 : vector<1x15x640xf32> to vector<15x640xf32>
    %cst_166 = arith.constant dense<0.000000e+00> : vector<1x15xf32>
    %164 = tpu.matmul %161, %163, %cst_166 {dimension_numbers = #tpu.dot_dimension_numbers<[1], [1], [0], [0], [0, 0, 1, 0], [], []>} : vector<1x640xf32>, vector<15x640xf32>, vector<1x15xf32> -> vector<1x15xf32>
    %165 = arith.addf %160, %164 : vector<1x15xf32>
    %c31 = arith.constant 31 : index
    %c0_167 = arith.constant 0 : index
    %166 = vector.load %arg8[%c31, %c0_167] : memref<32x640xf32, #tpu.memory_space<vmem>>, vector<1x640xf32>
    %c31_168 = arith.constant 31 : index
    %c0_169 = arith.constant 0 : index
    %c0_170 = arith.constant 0 : index
    %167 = vector.load %arg4[%c31_168, %c0_169, %c0_170] : memref<32x15x640xf32, #tpu.memory_space<vmem>>, vector<1x15x640xf32>
    %168 = vector.shape_cast %167 : vector<1x15x640xf32> to vector<15x640xf32>
    %cst_171 = arith.constant dense<0.000000e+00> : vector<1x15xf32>
    %169 = tpu.matmul %166, %168, %cst_171 {dimension_numbers = #tpu.dot_dimension_numbers<[1], [1], [0], [0], [0, 0, 1, 0], [], []>} : vector<1x640xf32>, vector<15x640xf32>, vector<1x15xf32> -> vector<1x15xf32>
    %170 = arith.addf %165, %169 : vector<1x15xf32>
    %c0_172 = arith.constant 0 : index
    %c0_173 = arith.constant 0 : index
    %171 = vector.load %arg6[%c0_172, %c0_173] : memref<15x4096xf32, #tpu.memory_space<vmem>>, vector<15x4096xf32>
    %cst_174 = arith.constant dense<0.000000e+00> : vector<1x4096xf32>
    %172 = tpu.matmul %170, %171, %cst_174 {dimension_numbers = #tpu.dot_dimension_numbers<[1], [0], [0], [1], [0, 0, 1, 1], [], []>} : vector<1x15xf32>, vector<15x4096xf32>, vector<1x4096xf32> -> vector<1x4096xf32>
    %173 = arith.negf %172 : vector<1x4096xf32>
    %174 = math.exp %173 : vector<1x4096xf32>
    %cst_175 = arith.constant 1.000000e+00 : f32
    %175 = vector.broadcast %cst_175 : f32 to vector<1x4096xf32>
    %176 = arith.addf %175, %174 : vector<1x4096xf32>
    %177 = arith.divf %175, %176 : vector<1x4096xf32>
    %c0_176 = arith.constant 0 : index
    %c0_177 = arith.constant 0 : index
    %c0_178 = arith.constant 0 : index
    %178 = vector.load %arg7[%c0_176, %c0_177, %c0_178] : memref<1x1x4096xf32, #tpu.memory_space<vmem>>, vector<1x1x4096xf32>
    %179 = vector.shape_cast %178 : vector<1x1x4096xf32> to vector<1x4096xf32>
    %180 = vector.shape_cast %177 : vector<1x4096xf32> to vector<1x1x4096xf32>
    tpu.vector_store %arg7[%c0_176, %c0_177, %c0_178], %180 {strides = array<i32>} : memref<1x1x4096xf32, #tpu.memory_space<vmem>>, vector<1x1x4096xf32>,
    return
  }
  func.func @transform_0(%arg0: i32) -> (i32, i32, i32) {
    %c0_i32 = arith.constant 0 : i32
    %c0_i32_0 = arith.constant 0 : i32
    %c0_i32_1 = arith.constant 0 : i32
    return %arg0, %c0_i32, %c0_i32_0 : i32, i32, i32
  }
  func.func @transform_1(%arg0: i32) -> (i32, i32) {
    %c0_i32 = arith.constant 0 : i32
    %c0_i32_0 = arith.constant 0 : i32
    %c0_i32_1 = arith.constant 0 : i32
    return %c0_i32, %c0_i32_0 : i32, i32
  }
  func.func @transform_2(%arg0: i32) -> (i32, i32) {
    %c0_i32 = arith.constant 0 : i32
    %c0_i32_0 = arith.constant 0 : i32
    %c0_i32_1 = arith.constant 0 : i32
    return %c0_i32, %c0_i32_0 : i32, i32
  }
  func.func @transform_3(%arg0: i32) -> (i32, i32, i32) {
    %c0_i32 = arith.constant 0 : i32
    %c0_i32_0 = arith.constant 0 : i32
    %c0_i32_1 = arith.constant 0 : i32
    %c0_i32_2 = arith.constant 0 : i32
    return %c0_i32, %c0_i32_0, %c0_i32_1 : i32, i32, i32
  }
  func.func @transform_4(%arg0: i32) -> (i32, i32) {
    %c0_i32 = arith.constant 0 : i32
    %c0_i32_0 = arith.constant 0 : i32
    %c0_i32_1 = arith.constant 0 : i32
    return %c0_i32, %c0_i32_0 : i32, i32
  }
  func.func @transform_5(%arg0: i32) -> (i32, i32) {
    %c0_i32 = arith.constant 0 : i32
    %c0_i32_0 = arith.constant 0 : i32
    %c0_i32_1 = arith.constant 0 : i32
    return %c0_i32, %c0_i32_0 : i32, i32
  }
  func.func @transform_6(%arg0: i32) -> (i32, i32, i32) {
    %c0_i32 = arith.constant 0 : i32
    %c0_i32_0 = arith.constant 0 : i32
    %c0_i32_1 = arith.constant 0 : i32
    return %arg0, %c0_i32, %c0_i32_0 : i32, i32, i32
  }
}

</mosaic_0001>

<bundles_post_ra>
// kernel: my_small_cnn_forward.1
= control target key start
LH: loop header
LB: loop body
LE: loop exit
PB: predicated region body
PF: predicated region fallthrough
CT: control target
= control target key end

     0   :  { %s12124_s21 = smov 0   ;;  %s14037_s0 = inlined_call_operand.vmem [shape: f32[2,64,640], index: 0, kind: input, shape index: {}]   ;;  %s14038_s1 = inlined_call_operand.vmem [shape: f32[32,64], index: 1, kind: input, shape index: {}]   ;;  %s14039_s2 = inlined_call_operand.vmem [shape: f32[32,1], index: 2, kind: input, shape index: {}]   ;;  %s14040_s3 = inlined_call_operand.vmem [shape: f32[32,15,640], index: 3, kind: input, shape index: {}]   ;;  %s14041_s4 = inlined_call_operand.vmem [shape: f32[1,15], index: 4, kind: input, shape index: {}]   ;;  %s14042_s5 = inlined_call_operand.vmem [shape: f32[15,4096], index: 5, kind: input, shape index: {}]   ;;  %s14043_s6 = inlined_call_operand.vmem [shape: f32[2,1,4096], index: 6, kind: output, shape index: {}]  }
   0x1 LB: > { %s10479_s22 = sadd.s32 4294967295, %s12081_s21   ;;  %p10483_p0 = scmp.ge.s32.totalorder %s12081_s21, 1  ;;  %s12081_s21 = sphi %s12124_s21, %s16_s21  }
   0x2   : > { %p212_p1 = scmp.lt.s32.totalorder %s12081_s21, 3 }
   0x4   : > { %p213_p2 = pnand %p10483_p0, %p212_p1 }
   0x5   : > { %p241_p3 = scmp.lt.s32.totalorder (!%p213_p2), %s10479_s22, 1  ;;  %v12083_v0 = vmov (!%p213_p2), 0.0   ;;  %v294_v1 = vld [vmem:[%s14039_s2] sm:$0xff] (!%p213_p2)  ;;  %v295_v2 = vld [vmem:[%s14039_s2 + $0x8] sm:$0xff] (!%p213_p2)  ;;  %v12084_v3 = vmov (!%p213_p2), 0   ;;  %v296_v4 = vld [vmem:[%s14039_s2 + $0x10] sm:$0xff] (!%p213_p2) }
   0x6   : > { %216 = sbr.rel (%p213_p2) target bundleno = 1255 (0x4e7), region = 44  ;;  %395 = vmatprep.mubr.f32.mxu0 (!%p213_p2), %v12083_v0  ;;  %11946 = vset.pattern.permute.xlu1 (!%p213_p2), %v12084_v3  ;;  %v297_v5 = vld [vmem:[%s14039_s2 + $0x18] sm:$0xff] (!%p213_p2)  ;;  %v12178_v37 = vld [vmem:[%s14038_s1] sm:$0xff] (!%p213_p2)  ;;  %vm318_vm0 = vcmask (!%p213_p2), 523264   ;;  %v251_v44 = vld [vmem:[%s14038_s1 + $0x8] sm:$0xff] (!%p213_p2)  ;;  %vm12086_vm1 = vmmov (!%p213_p2), 0  }
   0x7   : > { %11945 = vset.pattern.permute.xlu0 (!%p213_p2), %v12084_v3  ;;  %300 = vperm.xlu1 (!%p213_p2), %11946, %v294_v1   ;;  %v252_v51 = vld [vmem:[%s14038_s1 + $0x10] sm:$0xff] (!%p213_p2)  ;;  %v253_v58 = vld [vmem:[%s14038_s1 + $0x18] sm:$0xff] (!%p213_p2)  ;;  %vm8765_vm2 = vcmask (!%p213_p2), 1046528   ;;  %vm12087_vm3 = vmmov (!%p213_p2), 1   ;;  %vm8761_vm5 = vcmask (!%p213_p2), 121856  }
   0x8   : > { %305 = vperm.xlu0 (!%p213_p2), %11945, %v295_v2   ;;  %11115 = vmatprep.mubr.msk.f32.mxu1 (!%p213_p2), %vm12086_vm1, %v12083_v0  ;;  %vm13672_vm4 = vmpackc.low (!%p213_p2), %vm8765_vm2, %vm12087_vm3 }
   0xb   : > { %315 = vperm.xlu1 (!%p213_p2), %11946, %v297_v5  }
   0xc   : > { %310 = vperm.xlu0 (!%p213_p2), %11945, %v296_v4  }
   0xd   : > { %s14047_s22 = smov (!%p241_p3, %s10479_s22), 1 }
   0xe   : > { %s11930_s27 = smul.u32 320, %s14047_s22  ;;  %s10485_s19 = sshll.u32 %s14047_s22, 5 }
   0xf   : > { %s14010_s24 = scalar_lea.vmem %s14043_s6, %s10485_s19 }
  0x10   : > { %s12151_s10 = scalar_lea.vmem %s14037_s0, %s11930_s27 }
  0x11   : > { %v255_v6 = vld [vmem:[%s12151_s10 + $0x8] sm:$0xff]  ;;  %v260_v7 = vld [vmem:[%s12151_s10 + $0x30] sm:$0xff]  ;;  %v254_v8 = vld [vmem:[%s12151_s10] sm:$0xff] }
  0x12   : > { %v11244_v9 = vpack.c.bf16 %v260_v7, %v255_v6  ;;  %v259_v10 = vld [vmem:[%s12151_s10 + $0x28] sm:$0xff]  ;;  %v265_v11 = vld [vmem:[%s12151_s10 + $0x58] sm:$0xff]  ;;  %v270_v12 = vld [vmem:[%s12151_s10 + $0x80] sm:$0xff] }
  0x13   : > { %v11246_v13 = vpack.c.bf16 %v259_v10, %v254_v8  ;;  %v11248_v14 = vpack.c.bf16 %v270_v12, %v265_v11  ;;  %v264_v15 = vld [vmem:[%s12151_s10 + $0x50] sm:$0xff]  ;;  %v269_v16 = vld [vmem:[%s12151_s10 + $0x78] sm:$0xff]  ;;  %v275_v17 = vld [vmem:[%s12151_s10 + $0xa8] sm:$0xff]  ;;  %v12085_v12 = vmov 0.0|0.0  }
  0x14   : > { %11245 = vmatprep.subr.bf16.mxu0 %v11244_v9  ;;  %v280_v18 = vld [vmem:[%s12151_s10 + $0xd0] sm:$0xff]  ;;  %v11250_v19 = vpack.c.bf16 %v269_v16, %v264_v15  ;;  %v274_v21 = vld [vmem:[%s12151_s10 + $0xa0] sm:$0xff]  ;;  %v279_v22 = vld [vmem:[%s12151_s10 + $0xc8] sm:$0xff]  ;;  %11443 = vmatprep.subr.bf16.mxu1 %v12085_v12 }
  0x15   : > { %11247 = vmatpush1.bf16.msra.mxu0 %v11246_v13  ;;  %v11252_v20 = vpack.c.bf16 %v280_v18, %v275_v17  ;;  %v285_v23 = vld [vmem:[%s12151_s10 + $0xf8] sm:$0xff]  ;;  %v290_v24 = vld [vmem:[%s12151_s10 + $0x120] sm:$0xff]  ;;  %v11254_v25 = vpack.c.bf16 %v279_v22, %v274_v21  ;;  %v284_v27 = vld [vmem:[%s12151_s10 + $0xf0] sm:$0xff] }
  0x16   : > { %11249 = vmatprep.subr.bf16.mxu0 %v11248_v14  ;;  %v11256_v26 = vpack.c.bf16 %v290_v24, %v285_v23  ;;  %v289_v28 = vld [vmem:[%s12151_s10 + $0x118] sm:$0xff]  ;;  %v262_v30 = vld [vmem:[%s12151_s10 + $0x40] sm:$0xff]  ;;  %v256_v33 = vld [vmem:[%s12151_s10 + $0x10] sm:$0xff] }
  0x17   : > { %v257_v29 = vld [vmem:[%s12151_s10 + $0x18] sm:$0xff]  ;;  %v11258_v31 = vpack.c.bf16 %v289_v28, %v284_v27  ;;  %v267_v35 = vld [vmem:[%s12151_s10 + $0x68] sm:$0xff]  ;;  %v272_v36 = vld [vmem:[%s12151_s10 + $0x90] sm:$0xff] }
  0x18   : > { %v11260_v32 = vpack.c.bf16 %v262_v30, %v257_v29  ;;  %v261_v34 = vld [vmem:[%s12151_s10 + $0x38] sm:$0xff]  ;;  %v11264_v39 = vpack.c.bf16 %v272_v36, %v267_v35  ;;  %v266_v40 = vld [vmem:[%s12151_s10 + $0x60] sm:$0xff]  ;;  %v271_v41 = vld [vmem:[%s12151_s10 + $0x88] sm:$0xff] }
  0x19   : > { %11251 = vmatpush1.bf16.msra.mxu0 %v11250_v19  ;;  %v11262_v38 = vpack.c.bf16 %v261_v34, %v256_v33  ;;  %v277_v42 = vld [vmem:[%s12151_s10 + $0xb8] sm:$0xff]  ;;  %v282_v43 = vld [vmem:[%s12151_s10 + $0xe0] sm:$0xff]  ;;  %v11266_v45 = vpack.c.bf16 %v271_v41, %v266_v40  ;;  %v276_v47 = vld [vmem:[%s12151_s10 + $0xb0] sm:$0xff] }
  0x1a   : > { %11253 = vmatprep.subr.bf16.mxu0 %v11252_v20  ;;  %v11268_v46 = vpack.c.bf16 %v282_v43, %v277_v42  ;;  %v281_v48 = vld [vmem:[%s12151_s10 + $0xd8] sm:$0xff]  ;;  %v287_v49 = vld [vmem:[%s12151_s10 + $0x108] sm:$0xff]  ;;  %v292_v50 = vld [vmem:[%s12151_s10 + $0x130] sm:$0xff] }
  0x1b   : > { %v11270_v52 = vpack.c.bf16 %v281_v48, %v276_v47  ;;  %v11272_v53 = vpack.c.bf16 %v292_v50, %v287_v49  ;;  %v286_v54 = vld [vmem:[%s12151_s10 + $0x100] sm:$0xff]  ;;  %v291_v55 = vld [vmem:[%s12151_s10 + $0x128] sm:$0xff]  ;;  %v268_v61 = vld [vmem:[%s12151_s10 + $0x70] sm:$0xff] }
  0x1c   : > { %v258_v56 = vld [vmem:[%s12151_s10 + $0x20] sm:$0xff]  ;;  %v263_v57 = vld [vmem:[%s12151_s10 + $0x48] sm:$0xff]  ;;  %v11274_v59 = vpack.c.bf16 %v291_v55, %v286_v54  ;;  %v273_v62 = vld [vmem:[%s12151_s10 + $0x98] sm:$0xff] }
  0x1d   : > { %11255 = vmatpush1.bf16.msra.mxu0 %v11254_v25  ;;  %v11276_v60 = vpack.c.bf16 %v263_v57, %v258_v56  ;;  %v11280_v63 = vpack.c.bf16 %v273_v62, %v268_v61  ;;  %v278_v1 = vld [vmem:[%s12151_s10 + $0xc0] sm:$0xff]  ;;  %v283_v2 = vld [vmem:[%s12151_s10 + $0xe8] sm:$0xff]  ;;  %v288_v4 = vld [vmem:[%s12151_s10 + $0x110] sm:$0xff] }
  0x1e   : > { %11257 = vmatprep.subr.bf16.mxu0 %v11256_v26  ;;  %v11284_v3 = vpack.c.bf16 %v283_v2, %v278_v1  ;;  %v293_v5 = vld [vmem:[%s12151_s10 + $0x138] sm:$0xff]  ;;  %v10622_v7 = vld [vmem:[%s14040_s3 + $0x430] sm:$0xff]  ;;  %v639_v10 = vld [vmem:[%s14040_s3 + $0x8] sm:$0xff] }
  0x1f   : > { %v11288_v6 = vpack.c.bf16 %v293_v5, %v288_v4  ;;  %v10627_v8 = vld [vmem:[%s14040_s3 + $0x458] sm:$0x7f]  ;;  %v644_v11 = vld [vmem:[%s14040_s3 + $0x30] sm:$0x7f]  ;;  %v638_v14 = vld [vmem:[%s14040_s3] sm:$0xff] }
  0x20   : > { %v11444_v9 = vpack.c.bf16 %v10627_v8, %v10622_v7  ;;  %v11292_v13 = vpack.c.bf16 %v644_v11, %v639_v10  ;;  %v643_v15 = vld [vmem:[%s14040_s3 + $0x28] sm:$0x7f]  ;;  %v10634_v18 = vld [vmem:[%s14040_s3 + $0x490] sm:$0x7f]  ;;  %v641_v20 = vld [vmem:[%s14040_s3 + $0x18] sm:$0xff] }
  0x21   : > { %11259 = vmatpush1.bf16.msra.mxu0 %v11258_v31  ;;  %v11294_v16 = vpack.c.bf16 %v643_v15, %v638_v14  ;;  %v10629_v17 = vld [vmem:[%s14040_s3 + $0x468] sm:$0xff]  ;;  %v646_v21 = vld [vmem:[%s14040_s3 + $0x40] sm:$0x7f] }
  0x22   : > { %11261 = vmatprep.subr.bf16.mxu0 %v11260_v32  ;;  %11445 = vmatpush3.bf16.xpose.msra.mxu1 %v11444_v9  ;;  %v11446_v19 = vpack.c.bf16 %v10634_v18, %v10629_v17  ;;  %v11296_v22 = vpack.c.bf16 %v646_v21, %v641_v20  ;;  %v649_v17 = vlaneseq }
  0x24   : > { %10486 = vmatmul.mubr.msk.f32.vlgmr.msra.gmra.mrb[0].mxu0 %vm318_vm0, %v12178_v37  ;;  %11447 = vmatprep.subr.bf16.mxu1 %v11446_v19 }
  0x25   : > { %11263 = vmatpush1.bf16.msra.mxu0 %v11262_v38  ;;  %401 = vmatprep.mubr.f32.mxu0 %v12083_v0 }
  0x26   : > { %11265 = vmatprep.subr.bf16.mxu0 %v11264_v39 }
  0x28   : > { %10487 = vmatmul.mubr.msk.f32.gmra.mrb[2].mxu0 %vm318_vm0, %v251_v44 }
  0x29   : > { %11267 = vmatpush1.bf16.msra.mxu0 %v11266_v45  ;;  %407 = vmatprep.mubr.f32.mxu0 %v12083_v0 }
  0x2a   : > { %11269 = vmatprep.subr.bf16.mxu0 %v11268_v46 }
  0x2c   : > { %10488 = vmatmul.mubr.msk.f32.gmra.mrb[4].mxu0 %vm318_vm0, %v252_v51 }
  0x2d   : > { %11271 = vmatpush1.bf16.msra.mxu0 %v11270_v52  ;;  %413 = vmatprep.mubr.f32.mxu0 %v12083_v0 }
  0x2e   : > { %11273 = vmatprep.subr.bf16.mxu0 %v11272_v53 }
  0x30   : > { %10489 = vmatmul.mubr.msk.f32.gmra.mrb[6].mxu0 %vm318_vm0, %v253_v58 }
  0x31   : > { %11275 = vmatpush1.bf16.msra.mxu0 %v11274_v59  ;;  %484 = vmatprep.mubr.f32.mxu0 %v12083_v0 }
  0x32   : > { %11277 = vmatprep.subr.bf16.mxu0 %v11276_v60 }
  0x34   : > { %10490 = vmatmul.mubr.msk.f32.vlgmr.msra.gmra.mrb[8].mxu0 %vm318_vm0, %v12178_v37 }
  0x35   : > { %11279 = vmatpush3.bf16.msra.mxu0 %v11276_v60  ;;  %490 = vmatprep.mubr.f32.mxu0 %v12083_v0 }
  0x36   : > { %11281 = vmatprep.subr.bf16.mxu0 %v11280_v63 }
  0x38   : > { %10491 = vmatmul.mubr.msk.f32.gmra.mrb[10].mxu0 %vm318_vm0, %v251_v44 }
  0x39   : > { %11283 = vmatpush3.bf16.msra.mxu0 %v11280_v63  ;;  %496 = vmatprep.mubr.f32.mxu0 %v12083_v0 }
  0x3a   : > { %11285 = vmatprep.subr.bf16.mxu0 %v11284_v3 }
  0x3c   : > { %10492 = vmatmul.mubr.msk.f32.gmra.mrb[12].mxu0 %vm318_vm0, %v252_v51 }
  0x3d   : > { %11287 = vmatpush3.bf16.msra.mxu0 %v11284_v3  ;;  %502 = vmatprep.mubr.f32.mxu0 %v12083_v0 }
  0x3e   : > { %11289 = vmatprep.subr.bf16.mxu0 %v11288_v6 }
  0x40   : > { %10493 = vmatmul.mubr.msk.f32.gmra.mrb[14].mxu0 %vm318_vm0, %v253_v58 }
  0x41   : > { %11291 = vmatpush3.bf16.msra.mxu0 %v11288_v6  ;;  %11014 = vmatprep.mubr.msk.f32.mxu0 %vm318_vm0, %v12178_v37 }
  0x42   : > { %11293 = vmatprep.subr.bf16.mxu0 %v11292_v13 }
  0x44   : > { %11015 = vmatmul.mubr.msk.f32.vlgmr.msra.gmra.mrb[16].mxu0 %vm318_vm0, %v251_v44 }
  0x45   : > { %11017 = vmatprep.mubr.msk.f32.mxu0 %vm318_vm0, %v252_v51 }
  0x48   : > { %11018 = vmatmul.mubr.msk.f32.gmra.mrb[18].mxu0 %vm318_vm0, %v253_v58 }
  0x4a   : > { %11295 = vmatpush1.bf16.xpose.msra.mxu0 %v11294_v16 }
  0x4b   : > { %11297 = vmatprep.subr.bf16.mxu0 %v11296_v22 }
  0x86   : > { %v12262_v23 = vpop.permute.xlu1 %300 }
  0x87   : > { %v12264_v25 = vpop.permute.xlu0 %305 }
  0x8a   : > { %v316_v42 = vpop.permute.xlu1 %315 }
  0x8b   : > { %v12270_v35 = vpop.permute.xlu0 %310 }
  0xf7   : > { %v397_v24 = vpop.f32.mrb[0].mxu0 }
  0xf8   : > { %v398_v26 = vadd.f32 %v397_v24, %v12262_v23  ;;  %v399_v27 = vpop.f32.mrb[1].mxu0 }
  0xf9   : > { %v400_v28 = vadd.f32 %v399_v27, %v12262_v23 }
  0xfa   : > { %v594_v29 = vmax.f32 %v398_v26, 0.0  ;;  %v12283_v26 = vshrl.u32 %v649_v17, 7 }
  0xfb   : > { %v595_v30 = vmax.f32 %v400_v28, 0.0  ;;  %v403_v31 = vpop.f32.mrb[2].mxu0 }
  0xfc   : > { %614 = vst [vmem:[#allocation2] sm:$0xff] %v594_v29  ;;  %v404_v32 = vadd.f32 %v403_v31, %v12264_v25  ;;  %v405_v33 = vpop.f32.mrb[3].mxu0  ;;  %v10628_v29 = vld [vmem:[%s14040_s3 + $0x460] sm:$0xff]  ;;  %v12298_v31 = vsub.s32 0, %v12283_v26 }
  0xfd   : > { %615 = vst [vmem:[#allocation2 + $0x8] sm:$0xff] %v595_v30  ;;  %v406_v34 = vadd.f32 %v405_v33, %v12264_v25  ;;  %v10633_v30 = vld [vmem:[%s14040_s3 + $0x488] sm:$0x7f] }
  0xfe   : > { %v599_v36 = vmax.f32 %v404_v32, 0.0 }
  0xff   : > { %v600_v37 = vmax.f32 %v406_v34, 0.0  ;;  %v409_v38 = vpop.f32.mrb[4].mxu0  ;;  %v640_v34 = vld [vmem:[%s14040_s3 + $0x10] sm:$0xff] }
 0x100   : > { %619 = vst [vmem:[#allocation2 + $0x28] sm:$0xff] %v599_v36  ;;  %v410_v39 = vadd.f32 %v409_v38, %v12270_v35  ;;  %v411_v40 = vpop.f32.mrb[5].mxu0 }
 0x101   : > { %620 = vst [vmem:[#allocation2 + $0x30] sm:$0xff] %v600_v37  ;;  %v412_v41 = vadd.f32 %v411_v40, %v12270_v35 }
 0x102   : > { %v604_v43 = vmax.f32 %v410_v39, 0.0 }
 0x103   : > { %v605_v44 = vmax.f32 %v412_v41, 0.0  ;;  %v415_v45 = vpop.f32.mrb[6].mxu0 }
 0x104   : > { %624 = vst [vmem:[#allocation2 + $0x50] sm:$0xff] %v604_v43  ;;  %v416_v46 = vadd.f32 %v415_v45, %v316_v42  ;;  %v417_v47 = vpop.f32.mrb[7].mxu0  ;;  %v11448_v43 = vpack.c.bf16 %v10633_v30, %v10628_v29  ;;  %v10631_v45 = vld [vmem:[%s14040_s3 + $0x478] sm:$0xff] }
 0x105   : > { %625 = vst [vmem:[#allocation2 + $0x58] sm:$0xff] %v605_v44  ;;  %v418_v48 = vadd.f32 %v417_v47, %v316_v42  ;;  %v12313_v44 = vsub.s32 3, %v12283_v26 }
 0x106   : > { %v609_v49 = vmax.f32 %v416_v46, 0.0  ;;  %v10636_v46 = vld [vmem:[%s14040_s3 + $0x4a0] sm:$0x7f] }
 0x107   : > { %v610_v50 = vmax.f32 %v418_v48, 0.0  ;;  %v486_v51 = vpop.f32.mrb[8].mxu0 }
 0x108   : > { %629 = vst [vmem:[#allocation2 + $0x78] sm:$0xff] %v609_v49  ;;  %v487_v52 = vadd.f32 %v486_v51, %v12262_v23  ;;  %v488_v53 = vpop.f32.mrb[9].mxu0 }
 0x109   : > { %630 = vst [vmem:[#allocation2 + $0x80] sm:$0xff] %v610_v50  ;;  %v489_v54 = vadd.f32 %v488_v53, %v12262_v23 }
 0x10a   : > { %v596_v55 = vmax.f32 %v487_v52, 0.0  ;;  %v11450_v52 = vpack.c.bf16 %v10636_v46, %v10631_v45  ;;  %v10645_v46 = vld [vmem:[%s14040_s3 + $0x4e8] sm:$0x7f] }
 0x10b   : > { %v597_v56 = vmax.f32 %v489_v54, 0.0  ;;  %v492_v57 = vpop.f32.mrb[10].mxu0  ;;  %v10630_v54 = vld [vmem:[%s14040_s3 + $0x470] sm:$0xff] }
 0x10c   : > { %616 = vst [vmem:[#allocation2 + $0x10] sm:$0xff] %v596_v55  ;;  %v493_v58 = vadd.f32 %v492_v57, %v12264_v25  ;;  %v494_v59 = vpop.f32.mrb[11].mxu0  ;;  %v10635_v55 = vld [vmem:[%s14040_s3 + $0x498] sm:$0x7f]  ;;  %v642_v57 = vld [vmem:[%s14040_s3 + $0x20] sm:$0xff] }
 0x10d   : > { %617 = vst [vmem:[#allocation2 + $0x18] sm:$0xff] %v597_v56  ;;  %v495_v60 = vadd.f32 %v494_v59, %v12264_v25  ;;  %v12338_v56 = vsub.s32 2, %v12283_v26  ;;  %v11452_v59 = vpack.c.bf16 %v10635_v55, %v10630_v54 }
 0x10e   : > { %v601_v61 = vmax.f32 %v493_v58, 0.0  ;;  %v647_v58 = vld [vmem:[%s14040_s3 + $0x48] sm:$0x7f] }
 0x10f   : > { %v602_v62 = vmax.f32 %v495_v60, 0.0  ;;  %v498_v63 = vpop.f32.mrb[12].mxu0  ;;  %v10499_v60 = vld [vmem:[%s14040_s3 + $0x58] sm:$0xff] }
 0x110   : > { %621 = vst [vmem:[#allocation2 + $0x38] sm:$0xff] %v601_v61  ;;  %v499_v1 = vadd.f32 %v498_v63, %v12270_v35  ;;  %v500_v2 = vpop.f32.mrb[13].mxu0  ;;  %v10504_v61 = vld [vmem:[%s14040_s3 + $0x80] sm:$0x7f] }
 0x111   : > { %622 = vst [vmem:[#allocation2 + $0x40] sm:$0xff] %v602_v62  ;;  %v501_v3 = vadd.f32 %v500_v2, %v12270_v35 }
 0x112   : > { %v606_v4 = vmax.f32 %v499_v1, 0.0  ;;  %v11301_v1 = vpack.c.bf16 %v647_v58, %v642_v57  ;;  %v10642_v58 = vld [vmem:[%s14040_s3 + $0x4d0] sm:$0xff] }
 0x113   : > { %v607_v5 = vmax.f32 %v501_v3, 0.0  ;;  %v504_v6 = vpop.f32.mrb[14].mxu0  ;;  %v11303_v3 = vpack.c.bf16 %v10504_v61, %v10499_v60  ;;  %v10649_v61 = vld [vmem:[%s14040_s3 + $0x508] sm:$0xff] }
 0x114   : > { %626 = vst [vmem:[#allocation2 + $0x60] sm:$0xff] %v606_v4  ;;  %v505_v7 = vadd.f32 %v504_v6, %v316_v42  ;;  %v506_v8 = vpop.f32.mrb[15].mxu0  ;;  %v635_v39 = vld [vmem:[#allocation2] ss:$8 sm:$0xf] }
 0x115   : > { %627 = vst [vmem:[#allocation2 + $0x68] sm:$0xff] %v607_v5  ;;  %v507_v9 = vadd.f32 %v506_v8, %v316_v42  ;;  %v10632_v4 = vld [vmem:[%s14040_s3 + $0x480] sm:$0xff]  ;;  %v10637_v5 = vld [vmem:[%s14040_s3 + $0x4a8] sm:$0x7f] }
 0x116   : > { %v611_v10 = vmax.f32 %v505_v7, 0.0  ;;  %v10639_v7 = vld [vmem:[%s14040_s3 + $0x4b8] sm:$0xff]  ;;  %v10644_v8 = vld [vmem:[%s14040_s3 + $0x4e0] sm:$0x7f] }
 0x117   : > { %v612_v11 = vmax.f32 %v507_v9, 0.0  ;;  %v11016_v13 = vpop.f32.mrb[16].mxu0  ;;  %v10498_v9 = vld [vmem:[%s14040_s3 + $0x50] sm:$0xff] }
 0x118   : > { %631 = vst [vmem:[#allocation2 + $0x88] sm:$0xff] %v611_v10  ;;  %v581_v14 = vadd.f32 %v11016_v13, %v12264_v25  ;;  %v575_v15 = vpop.f32.mrb[17].mxu0  ;;  %v12286_v25 = vsub.s32 4, %v12283_v26  ;;  %v3910_v32 = vld [vmem:[#allocation2 + $0x2d] ss:$8 sm:$0xf]  ;;  %v11455_v13 = vpack.c.bf16 %v10637_v5, %v10632_v4 }
 0x119   : > { %632 = vst [vmem:[#allocation2 + $0x90] sm:$0xff] %v612_v11  ;;  %v576_v16 = vadd.f32 %v575_v15, %v12262_v23  ;;  %v12289_v23 = vsub.s32 1, %v12283_v26  ;;  %v4162_v33 = vld [vmem:[#allocation2 + $0x2e] ss:$8 sm:$0xf] }
 0x11a   : > { %v603_v18 = vmax.f32 %v581_v14, 0.0  ;;  %v10503_v10 = vld [vmem:[%s14040_s3 + $0x78] sm:$0x7f]  ;;  %v10501_v15 = vld [vmem:[%s14040_s3 + $0x68] sm:$0xff] }
 0x11b   : > { %v598_v19 = vmax.f32 %v576_v16, 0.0  ;;  %v11019_v20 = vpop.f32.mrb[18].mxu0  ;;  %v886_v11 = vld [vmem:[#allocation2 + $0x1] ss:$8 sm:$0xf] }
 0x11c   : > { %623 = vst [vmem:[#allocation2 + $0x48] sm:$0xff] %v603_v18  ;;  %v591_v21 = vadd.f32 %v11019_v20, %v316_v42  ;;  %v585_v22 = vpop.f32.mrb[19].mxu0  ;;  %v10506_v16 = vld [vmem:[%s14040_s3 + $0x90] sm:$0x7f]  ;;  %v11457_v18 = vpack.c.bf16 %v10644_v8, %v10639_v7  ;;  %v10511_v5 = vld [vmem:[%s14040_s3 + $0xb8] sm:$0xff] }
 0x11d   : > { %618 = vst [vmem:[#allocation2 + $0x20] sm:$0xff] %v598_v19  ;;  %v586_v24 = vadd.f32 %v585_v22, %v12270_v35  ;;  %v645_v35 = vld [vmem:[%s14040_s3 + $0x38] sm:$0x7f]  ;;  %v11305_v19 = vpack.c.bf16 %v10503_v10, %v10498_v9  ;;  %v11307_v22 = vpack.c.bf16 %v10506_v16, %v10501_v15  ;;  %v4414_v29 = vld [vmem:[#allocation2 + $0x2f] ss:$8 sm:$0xf] }
 0x11e   : > { %v613_v27 = vmax.f32 %v591_v21, 0.0  ;;  %v11298_v51 = vpack.c.bf16 %v645_v35, %v640_v34  ;;  %v10500_v34 = vld [vmem:[%s14040_s3 + $0x60] sm:$0xff]  ;;  %v10505_v35 = vld [vmem:[%s14040_s3 + $0x88] sm:$0x7f] }
 0x11f   : > { %v608_v28 = vmax.f32 %v586_v24, 0.0 }
 0x120   : > { %633 = vst [vmem:[#allocation2 + $0x98] sm:$0xff] %v613_v27  ;;  %v10638_v27 = vld [vmem:[%s14040_s3 + $0x4b0] sm:$0xff] }
 0x121   : > { %628 = vst [vmem:[#allocation2 + $0x70] sm:$0xff] %v608_v28  ;;  %v10643_v28 = vld [vmem:[%s14040_s3 + $0x4d8] sm:$0x7f] }
 0x123   : > { %v3911_v36 = vld [vmem:[#allocation2 + $0x2d] ss:$8 sm:$0x10]  ;;  %v4163_v37 = vld [vmem:[#allocation2 + $0x2e] ss:$8 sm:$0x10] }
 0x124   : > { %v12306_v38 = vor.u32 %v3911_v36, %v3910_v32  ;;  %v636_v40 = vld [vmem:[#allocation2] ss:$8 sm:$0x10]  ;;  %v12308_v41 = vor.u32 %v4163_v37, %v4162_v33  ;;  %v887_v6 = vld [vmem:[#allocation2 + $0x1] ss:$8 sm:$0x10]  ;;  %v11459_v36 = vpack.c.bf16 %v10643_v28, %v10638_v27 }
 0x125   : > { %v12310_v42 = vor.u32 %v636_v40, %v635_v39  ;;  %v12380_v14 = vor.u32 %v887_v6, %v886_v11  ;;  %v4415_v21 = vld [vmem:[#allocation2 + $0x2f] ss:$8 sm:$0x10]  ;;  %v10646_v33 = vld [vmem:[%s14040_s3 + $0x4f0] sm:$0x7f] }
 0x126   : > { %v3944_v47 = vrot.slane %v12306_v38, %v12286_v25  ;;  %v4184_v48 = vrot.slane %v12308_v41, %v12289_v23  ;;  %v4180_v62 = vrot.slane %v12308_v41, %v12298_v31  ;;  %v4192_v63 = vrot.slane %v12308_v41, %v12313_v44  ;;  %v10641_v32 = vld [vmem:[%s14040_s3 + $0x4c8] sm:$0xff]  ;;  %v1139_v60 = vld [vmem:[#allocation2 + $0x2] ss:$8 sm:$0x10] }
 0x127   : > { %v656_v49 = vrot.slane %v12310_v42, %v12289_v23  ;;  %v652_v50 = vrot.slane %v12310_v42, %v12298_v31  ;;  %v664_v53 = vrot.slane %v12310_v42, %v12313_v44  ;;  %v660_v2 = vrot.slane %v12310_v42, %v12338_v56  ;;  %v10516_v6 = vld [vmem:[%s14040_s3 + $0xe0] sm:$0x7f] }
 0x128   : > { %11116 = vmatmul.mubr.f32.vlgmr.msra.gmra.mrb[0].mxu1 %v3944_v47  ;;  %v4188_v17 = vrot.slane %v12308_v41, %v12338_v56  ;;  %v668_v20 = vrot.slane %v12310_v42, %v12286_v25  ;;  %v908_v24 = vrot.slane %v12380_v14, %v12289_v23  ;;  %v12402_v30 = vor.u32 %v4415_v21, %v4414_v29  ;;  %v10502_v47 = vld [vmem:[%s14040_s3 + $0x70] sm:$0xff]  ;;  %v10515_v21 = vld [vmem:[%s14040_s3 + $0xd8] sm:$0x7f] }
 0x129   : > { %738 = vmatprep.mubr.f32.mxu0 %v656_v49  ;;  %11449 = vmatpush1.bf16.xpose.msra.mxu1 %v11448_v43  ;;  %v4196_v37 = vrot.slane %v12308_v41, %v12286_v25  ;;  %v11461_v39 = vpack.c.bf16 %v10646_v33, %v10641_v32  ;;  %v11309_v42 = vpack.c.bf16 %v10505_v35, %v10500_v34  ;;  %v10640_v41 = vld [vmem:[%s14040_s3 + $0x4c0] sm:$0xff] }
 0x12a   : > { %4266 = vmatprep.mubr.f32.mxu1 %v4184_v48  ;;  %739 = vmatmul.mubr.f32.vlgmr.msra.gmra.mrb[20].mxu0 %v652_v50  ;;  %v4436_v40 = vrot.slane %v12402_v30, %v12289_v23  ;;  %v904_v43 = vrot.slane %v12380_v14, %v12298_v31  ;;  %v916_v45 = vrot.slane %v12380_v14, %v12313_v44  ;;  %v10507_v48 = vld [vmem:[%s14040_s3 + $0x98] sm:$0x7f]  ;;  %v10509_v50 = vld [vmem:[%s14040_s3 + $0xa8] sm:$0xff] }
 0x12b   : > { %11299 = vmatpush1.bf16.xpose.msra.mxu0 %v11298_v51  ;;  %808 = vmatprep.mubr.f32.mxu0 %v664_v53  ;;  %v11463_v49 = vpack.c.bf16 %v10645_v46, %v10640_v41  ;;  %v10514_v51 = vld [vmem:[%s14040_s3 + $0xd0] sm:$0x7f]  ;;  %v4444_v53 = vrot.slane %v12402_v30, %v12313_v44  ;;  %v11312_v54 = vpack.c.bf16 %v10507_v48, %v10502_v47  ;;  %v10519_v41 = vld [vmem:[%s14040_s3 + $0xf8] sm:$0xff]  ;;  %v10524_v46 = vld [vmem:[%s14040_s3 + $0x120] sm:$0x7f] }
 0x12c   : > { %11451 = vmatprep.subr.bf16.mxu1 %v11450_v52  ;;  %11300 = vmatprep.subr.bf16.mxu0 %v12085_v12  ;;  %v4432_v52 = vrot.slane %v12402_v30, %v12298_v31  ;;  %v912_v55 = vrot.slane %v12380_v14, %v12338_v56  ;;  %v11314_v57 = vpack.c.bf16 %v10514_v51, %v10509_v50 }
 0x12d   : > { %v4440_v7 = vrot.slane %v12402_v30, %v12338_v56  ;;  %v3932_v10 = vrot.slane %v12306_v38, %v12289_v23  ;;  %v920_v11 = vrot.slane %v12380_v14, %v12286_v25  ;;  %v11318_v15 = vpack.c.bf16 %v10516_v6, %v10511_v5  ;;  %v4666_v14 = vld [vmem:[#allocation2 + $0x50] ss:$8 sm:$0xf] }
 0x12e   : > { %v4448_v28 = vrot.slane %v12402_v30, %v12286_v25  ;;  %v3928_v34 = vrot.slane %v12306_v38, %v12298_v31  ;;  %v3940_v35 = vrot.slane %v12306_v38, %v12313_v44  ;;  %v11325_v51 = vpack.c.bf16 %v10524_v46, %v10519_v41 }
 0x130   : > { %4267 = vmatmul.mubr.f32.vlgmr.msra.gmra.mrb[0].mxu1 %v4180_v62  ;;  %v10654_v62 = vld [vmem:[%s14040_s3 + $0x530] sm:$0x7f] }
 0x131   : > { %11453 = vmatpush1.bf16.xpose.msra.mxu1 %v11452_v59  ;;  %4336 = vmatprep.mubr.f32.mxu1 %v4192_v63  ;;  %v10647_v59 = vld [vmem:[%s14040_s3 + $0x4f8] sm:$0x7f]  ;;  %v10508_v63 = vld [vmem:[%s14040_s3 + $0xa0] sm:$0xff]  ;;  %v11468_v8 = vpack.c.bf16 %v10654_v62, %v10649_v61 }
 0x132   : > { %809 = vmatmul.mubr.f32.vlgmr.msra.gmra.mrb[20].mxu0 %v660_v2  ;;  %11454 = vmatprep.subr.bf16.mxu1 %v12085_v12  ;;  %v1138_v2 = vld [vmem:[#allocation2 + $0x2] ss:$8 sm:$0xf] }
 0x133   : > { %11302 = vmatpush3.bf16.xpose.msra.mxu0 %v11301_v1  ;;  %11024 = vmatprep.mubr.msk.f32.mxu0 %vm12086_vm1, %v12083_v0  ;;  %v10513_v1 = vld [vmem:[%s14040_s3 + $0xc8] sm:$0x7f]  ;;  %v12470_v4 = vor.u32 %v1139_v60, %v1138_v2 }
 0x134   : > { %11304 = vmatprep.subr.bf16.mxu0 %v11303_v3  ;;  %v11466_v3 = vpack.c.bf16 %v10647_v59, %v10642_v58  ;;  %v11316_v9 = vpack.c.bf16 %v10513_v1, %v10508_v63  ;;  %v10518_v58 = vld [vmem:[%s14040_s3 + $0xf0] sm:$0xff]  ;;  %v10523_v59 = vld [vmem:[%s14040_s3 + $0x118] sm:$0x7f]  ;;  %v10521_v63 = vld [vmem:[%s14040_s3 + $0x108] sm:$0xff] }
 0x135   : > { %v1160_v16 = vrot.slane %v12470_v4, %v12289_v23  ;;  %v1168_v30 = vrot.slane %v12470_v4, %v12313_v44  ;;  %v1164_v50 = vrot.slane %v12470_v4, %v12338_v56  ;;  %v1390_v60 = vld [vmem:[#allocation2 + $0x3] ss:$8 sm:$0xf]  ;;  %v11327_v5 = vpack.c.bf16 %v10523_v59, %v10518_v58 }
 0x136   : > { %v10526_v1 = vld [vmem:[%s14040_s3 + $0x130] sm:$0x7f]  ;;  %v1172_v6 = vrot.slane %v12470_v4, %v12286_v25  ;;  %v10531_v58 = vld [vmem:[%s14040_s3 + $0x158] sm:$0xff]  ;;  %v10536_v59 = vld [vmem:[%s14040_s3 + $0x180] sm:$0x7f] }
 0x138   : > { %4337 = vmatmul.mubr.f32.vlgmr.msra.gmra.mrb[0].mxu1 %v4188_v17  ;;  %v10648_v17 = vld [vmem:[%s14040_s3 + $0x500] sm:$0xff] }
 0x139   : > { %11456 = vmatpush3.bf16.xpose.msra.mxu1 %v11455_v13  ;;  %11122 = vmatprep.mubr.msk.f32.mxu1 %vm12086_vm1, %v12083_v0  ;;  %v4667_v13 = vld [vmem:[#allocation2 + $0x50] ss:$8 sm:$0x10] }
 0x13a   : > { %11025 = vmatmul.mubr.f32.vlgmr.msra.gmra.mrb[20].mxu0 %v668_v20  ;;  %11458 = vmatprep.subr.bf16.mxu1 %v11457_v18  ;;  %v10653_v18 = vld [vmem:[%s14040_s3 + $0x528] sm:$0x7f]  ;;  %v12497_v20 = vor.u32 %v4667_v13, %v4666_v14  ;;  %v10663_v13 = vld [vmem:[%s14040_s3 + $0x578] sm:$0x7f] }
 0x13b   : > { %11306 = vmatpush1.bf16.xpose.msra.mxu0 %v11305_v19  ;;  %990 = vmatprep.mubr.f32.mxu0 %v908_v24  ;;  %v10510_v19 = vld [vmem:[%s14040_s3 + $0xb0] sm:$0xff]  ;;  %v10656_v24 = vld [vmem:[%s14040_s3 + $0x540] sm:$0x7f]  ;;  %v11470_v27 = vpack.c.bf16 %v10653_v18, %v10648_v17  ;;  %v10525_v14 = vld [vmem:[%s14040_s3 + $0x128] sm:$0x7f] }
 0x13c   : > { %11308 = vmatprep.subr.bf16.mxu0 %v11307_v22  ;;  %v10651_v22 = vld [vmem:[%s14040_s3 + $0x518] sm:$0xff]  ;;  %v11320_v29 = vpack.c.bf16 %v10515_v21, %v10510_v19  ;;  %v4688_v33 = vrot.slane %v12497_v20, %v12289_v23  ;;  %v4684_v47 = vrot.slane %v12497_v20, %v12298_v31  ;;  %v4696_v48 = vrot.slane %v12497_v20, %v12313_v44  ;;  %v10666_v17 = vld [vmem:[%s14040_s3 + $0x590] sm:$0x7f]  ;;  %v10520_v18 = vld [vmem:[%s14040_s3 + $0x100] sm:$0xff] }
 0x13d   : > { %v11472_v32 = vpack.c.bf16 %v10656_v24, %v10651_v22  ;;  %v4692_v2 = vrot.slane %v12497_v20, %v12338_v56  ;;  %v4700_v21 = vrot.slane %v12497_v20, %v12286_v25  ;;  %v10660_v20 = vld [vmem:[%s14040_s3 + $0x560] sm:$0xff] }
 0x140   : > { %11123 = vmatmul.mubr.f32.vlgmr.msra.gmra.mrb[0].mxu1 %v4196_v37  ;;  %v1156_v37 = vrot.slane %v12470_v4, %v12298_v31  ;;  %v4918_v4 = vld [vmem:[#allocation2 + $0x51] ss:$8 sm:$0xf] }
 0x141   : > { %11460 = vmatpush1.bf16.xpose.msra.mxu1 %v11459_v36  ;;  %4518 = vmatprep.mubr.f32.mxu1 %v4436_v40  ;;  %v3936_v36 = vrot.slane %v12306_v38, %v12338_v56  ;;  %v10655_v40 = vld [vmem:[%s14040_s3 + $0x538] sm:$0x7f] }
 0x142   : > { %991 = vmatmul.mubr.f32.vlgmr.msra.gmra.mrb[20].mxu0 %v904_v43  ;;  %11462 = vmatprep.subr.bf16.mxu1 %v11461_v39  ;;  %v10650_v39 = vld [vmem:[%s14040_s3 + $0x510] sm:$0xff]  ;;  %v10517_v43 = vld [vmem:[%s14040_s3 + $0xe8] sm:$0x7f] }
 0x143   : > { %11310 = vmatpush1.bf16.xpose.msra.mxu0 %v11309_v42  ;;  %1060 = vmatprep.mubr.f32.mxu0 %v916_v45  ;;  %v10512_v42 = vld [vmem:[%s14040_s3 + $0xc0] sm:$0xff]  ;;  %v11474_v45 = vpack.c.bf16 %v10655_v40, %v10650_v39  ;;  %v10529_v39 = vld [vmem:[%s14040_s3 + $0x148] sm:$0xff]  ;;  %v10534_v40 = vld [vmem:[%s14040_s3 + $0x170] sm:$0x7f] }
 0x144   : > { %11311 = vmatprep.subr.bf16.mxu0 %v12085_v12  ;;  %v11336_v46 = vpack.c.bf16 %v10534_v40, %v10529_v39 }
 0x148   : > { %4519 = vmatmul.mubr.f32.vlgmr.msra.gmra.mrb[0].mxu1 %v4432_v52  ;;  %v10652_v52 = vld [vmem:[%s14040_s3 + $0x520] sm:$0xff] }
 0x149   : > { %11464 = vmatpush1.bf16.xpose.msra.mxu1 %v11463_v49  ;;  %4588 = vmatprep.mubr.f32.mxu1 %v4444_v53  ;;  %v11323_v49 = vpack.c.bf16 %v10517_v43, %v10512_v42  ;;  %v10657_v53 = vld [vmem:[%s14040_s3 + $0x548] sm:$0x7f] }
 0x14a   : > { %1061 = vmatmul.mubr.f32.vlgmr.msra.gmra.mrb[20].mxu0 %v912_v55  ;;  %11465 = vmatprep.subr.bf16.mxu1 %v12085_v12  ;;  %v10659_v55 = vld [vmem:[%s14040_s3 + $0x558] sm:$0xff]  ;;  %v11477_v61 = vpack.c.bf16 %v10657_v53, %v10652_v52  ;;  %v10528_v52 = vld [vmem:[%s14040_s3 + $0x140] sm:$0xff]  ;;  %v10533_v53 = vld [vmem:[%s14040_s3 + $0x168] sm:$0x7f] }
 0x14b   : > { %11313 = vmatpush3.bf16.xpose.msra.mxu0 %v11312_v54  ;;  %11031 = vmatprep.mubr.msk.f32.mxu0 %vm12086_vm1, %v12083_v0  ;;  %v1391_v54 = vld [vmem:[#allocation2 + $0x3] ss:$8 sm:$0x10] }
 0x14c   : > { %11315 = vmatprep.subr.bf16.mxu0 %v11314_v57  ;;  %v10664_v57 = vld [vmem:[%s14040_s3 + $0x580] sm:$0x7f]  ;;  %v12568_v62 = vor.u32 %v1391_v54, %v1390_v60 }
 0x14d   : > { %v1642_v54 = vld [vmem:[#allocation2 + $0x4] ss:$8 sm:$0xf] }
 0x14e   : > { %v1416_v41 = vrot.slane %v12568_v62, %v12338_v56 }
 0x150   : > { %4589 = vmatmul.mubr.f32.vlgmr.msra.gmra.mrb[0].mxu1 %v4440_v7  ;;  %v4919_v7 = vld [vmem:[#allocation2 + $0x51] ss:$8 sm:$0x10] }
 0x151   : > { %11467 = vmatpush3.bf16.xpose.msra.mxu1 %v11466_v3  ;;  %11129 = vmatprep.mubr.msk.f32.mxu1 %vm12086_vm1, %v12083_v0  ;;  %v11479_v3 = vpack.c.bf16 %v10664_v57, %v10659_v55 }
 0x152   : > { %11032 = vmatmul.mubr.f32.vlgmr.msra.gmra.mrb[20].mxu0 %v920_v11  ;;  %11469 = vmatprep.subr.bf16.mxu1 %v11468_v8  ;;  %v11329_v8 = vpack.c.bf16 %v10526_v1, %v10521_v63  ;;  %v10658_v11 = vld [vmem:[%s14040_s3 + $0x550] sm:$0xff]  ;;  %v11338_v63 = vpack.c.bf16 %v10533_v53, %v10528_v52  ;;  %v1424_v1 = vrot.slane %v12568_v62, %v12286_v25  ;;  %v10541_v52 = vld [vmem:[%s14040_s3 + $0x1a8] sm:$0xff] }
 0x153   : > { %11317 = vmatpush1.bf16.xpose.msra.mxu0 %v11316_v9  ;;  %1242 = vmatprep.mubr.f32.mxu0 %v1160_v16  ;;  %v1412_v9 = vrot.slane %v12568_v62, %v12289_v23  ;;  %v10661_v16 = vld [vmem:[%s14040_s3 + $0x568] sm:$0xff]  ;;  %v11481_v19 = vpack.c.bf16 %v10663_v13, %v10658_v11  ;;  %v10676_v11 = vld [vmem:[%s14040_s3 + $0x5e0] sm:$0x7f]  ;;  %v10530_v13 = vld [vmem:[%s14040_s3 + $0x150] sm:$0xff] }
 0x154   : > { %11319 = vmatprep.subr.bf16.mxu0 %v11318_v15  ;;  %v12590_v15 = vor.u32 %v4919_v7, %v4918_v4  ;;  %v11483_v22 = vpack.c.bf16 %v10666_v17, %v10661_v16  ;;  %v10673_v7 = vld [vmem:[%s14040_s3 + $0x5c8] sm:$0x7f]  ;;  %v10535_v4 = vld [vmem:[%s14040_s3 + $0x178] sm:$0x7f]  ;;  %v10546_v53 = vld [vmem:[%s14040_s3 + $0x1d0] sm:$0x7f] }
 0x156   : > { %v4940_v24 = vrot.slane %v12590_v15, %v12289_v23  ;;  %v4936_v42 = vrot.slane %v12590_v15, %v12298_v31  ;;  %v4948_v43 = vrot.slane %v12590_v15, %v12313_v44  ;;  %v4944_v60 = vrot.slane %v12590_v15, %v12338_v56 }
 0x157   : > { %v4952_v17 = vrot.slane %v12590_v15, %v12286_v25  ;;  %v10670_v15 = vld [vmem:[%s14040_s3 + $0x5b0] sm:$0xff] }
 0x158   : > { %11130 = vmatmul.mubr.f32.vlgmr.msra.gmra.mrb[0].mxu1 %v4448_v28  ;;  %v1408_v28 = vrot.slane %v12568_v62, %v12298_v31 }
 0x159   : > { %11471 = vmatpush1.bf16.xpose.msra.mxu1 %v11470_v27  ;;  %4770 = vmatprep.mubr.f32.mxu1 %v4688_v33  ;;  %v11331_v27 = vpack.c.bf16 %v10525_v14, %v10520_v18  ;;  %v10522_v33 = vld [vmem:[%s14040_s3 + $0x110] sm:$0xff] }
 0x15a   : > { %1243 = vmatmul.mubr.f32.vlgmr.msra.gmra.mrb[20].mxu0 %v1156_v37  ;;  %11473 = vmatprep.subr.bf16.mxu1 %v11472_v32  ;;  %v10665_v32 = vld [vmem:[%s14040_s3 + $0x588] sm:$0x7f]  ;;  %v10527_v37 = vld [vmem:[%s14040_s3 + $0x138] sm:$0x7f] }
 0x15b   : > { %11321 = vmatpush1.bf16.xpose.msra.mxu0 %v11320_v29  ;;  %1312 = vmatprep.mubr.f32.mxu0 %v1168_v30  ;;  %v1420_v29 = vrot.slane %v12568_v62, %v12313_v44  ;;  %v11485_v30 = vpack.c.bf16 %v10665_v32, %v10660_v20  ;;  %v5170_v62 = vld [vmem:[#allocation2 + $0x52] ss:$8 sm:$0xf] }
 0x15c   : > { %11322 = vmatprep.subr.bf16.mxu0 %v12085_v12  ;;  %v10539_v20 = vld [vmem:[%s14040_s3 + $0x198] sm:$0xff]  ;;  %v10544_v32 = vld [vmem:[%s14040_s3 + $0x1c0] sm:$0x7f] }
 0x15d   : > { %v11347_v40 = vpack.c.bf16 %v10544_v32, %v10539_v20 }
 0x160   : > { %4771 = vmatmul.mubr.f32.vlgmr.msra.gmra.mrb[0].mxu1 %v4684_v47  ;;  %v10662_v47 = vld [vmem:[%s14040_s3 + $0x570] sm:$0xff] }
 0x161   : > { %11475 = vmatpush1.bf16.xpose.msra.mxu1 %v11474_v45  ;;  %4840 = vmatprep.mubr.f32.mxu1 %v4696_v48  ;;  %v11334_v45 = vpack.c.bf16 %v10527_v37, %v10522_v33  ;;  %v10667_v48 = vld [vmem:[%s14040_s3 + $0x598] sm:$0x7f] }
 0x162   : > { %1313 = vmatmul.mubr.f32.vlgmr.msra.gmra.mrb[20].mxu0 %v1164_v50  ;;  %11476 = vmatprep.subr.bf16.mxu1 %v12085_v12  ;;  %v10669_v50 = vld [vmem:[%s14040_s3 + $0x5a8] sm:$0xff]  ;;  %v11488_v55 = vpack.c.bf16 %v10667_v48, %v10662_v47  ;;  %v10538_v47 = vld [vmem:[%s14040_s3 + $0x190] sm:$0xff]  ;;  %v10543_v48 = vld [vmem:[%s14040_s3 + $0x1b8] sm:$0x7f] }
 0x163   : > { %11324 = vmatpush3.bf16.xpose.msra.mxu0 %v11323_v49  ;;  %11038 = vmatprep.mubr.msk.f32.mxu0 %vm12086_vm1, %v12083_v0  ;;  %v1643_v49 = vld [vmem:[#allocation2 + $0x4] ss:$8 sm:$0x10] }
 0x164   : > { %11326 = vmatprep.subr.bf16.mxu0 %v11325_v51  ;;  %v10674_v51 = vld [vmem:[%s14040_s3 + $0x5d0] sm:$0x7f]  ;;  %v12658_v57 = vor.u32 %v1643_v49, %v1642_v54 }
 0x165   : > { %v1894_v49 = vld [vmem:[#allocation2 + $0x5] ss:$8 sm:$0xf] }
 0x166   : > { %v1668_v39 = vrot.slane %v12658_v57, %v12338_v56 }
 0x168   : > { %4841 = vmatmul.mubr.f32.vlgmr.msra.gmra.mrb[0].mxu1 %v4692_v2  ;;  %v5171_v2 = vld [vmem:[#allocation2 + $0x52] ss:$8 sm:$0x10] }
 0x169   : > { %11478 = vmatpush3.bf16.xpose.msra.mxu1 %v11477_v61  ;;  %11136 = vmatprep.mubr.msk.f32.mxu1 %vm12086_vm1, %v12083_v0  ;;  %v11490_v61 = vpack.c.bf16 %v10674_v51, %v10669_v50 }
 0x16a   : > { %11039 = vmatmul.mubr.f32.vlgmr.msra.gmra.mrb[20].mxu0 %v1172_v6  ;;  %11480 = vmatprep.subr.bf16.mxu1 %v11479_v3  ;;  %v11340_v3 = vpack.c.bf16 %v10536_v59, %v10531_v58  ;;  %v10668_v6 = vld [vmem:[%s14040_s3 + $0x5a0] sm:$0xff]  ;;  %v11349_v58 = vpack.c.bf16 %v10543_v48, %v10538_v47  ;;  %v1676_v59 = vrot.slane %v12658_v57, %v12286_v25  ;;  %v10551_v47 = vld [vmem:[%s14040_s3 + $0x1f8] sm:$0xff] }
 0x16b   : > { %11328 = vmatpush1.bf16.xpose.msra.mxu0 %v11327_v5  ;;  %1494 = vmatprep.mubr.f32.mxu0 %v1412_v9  ;;  %v1664_v5 = vrot.slane %v12658_v57, %v12289_v23  ;;  %v10671_v9 = vld [vmem:[%s14040_s3 + $0x5b8] sm:$0xff]  ;;  %v11492_v16 = vpack.c.bf16 %v10673_v7, %v10668_v6  ;;  %v10686_v6 = vld [vmem:[%s14040_s3 + $0x630] sm:$0x7f]  ;;  %v10540_v7 = vld [vmem:[%s14040_s3 + $0x1a0] sm:$0xff] }
 0x16c   : > { %11330 = vmatprep.subr.bf16.mxu0 %v11329_v8  ;;  %v12680_v8 = vor.u32 %v5171_v2, %v5170_v62  ;;  %v11494_v18 = vpack.c.bf16 %v10676_v11, %v10671_v9  ;;  %v10683_v2 = vld [vmem:[%s14040_s3 + $0x618] sm:$0x7f]  ;;  %v10545_v62 = vld [vmem:[%s14040_s3 + $0x1c8] sm:$0x7f]  ;;  %v10556_v48 = vld [vmem:[%s14040_s3 + $0x220] sm:$0x7f] }
 0x16e   : > { %v5192_v14 = vrot.slane %v12680_v8, %v12289_v23  ;;  %v5188_v33 = vrot.slane %v12680_v8, %v12298_v31  ;;  %v5200_v37 = vrot.slane %v12680_v8, %v12313_v44  ;;  %v5196_v54 = vrot.slane %v12680_v8, %v12338_v56 }
 0x16f   : > { %v5204_v11 = vrot.slane %v12680_v8, %v12286_v25  ;;  %v10680_v8 = vld [vmem:[%s14040_s3 + $0x600] sm:$0xff] }
 0x170   : > { %11137 = vmatmul.mubr.f32.vlgmr.msra.gmra.mrb[0].mxu1 %v4700_v21  ;;  %v1660_v21 = vrot.slane %v12658_v57, %v12298_v31 }
 0x171   : > { %11482 = vmatpush1.bf16.xpose.msra.mxu1 %v11481_v19  ;;  %5022 = vmatprep.mubr.f32.mxu1 %v4940_v24  ;;  %v11342_v19 = vpack.c.bf16 %v10535_v4, %v10530_v13  ;;  %v10675_v24 = vld [vmem:[%s14040_s3 + $0x5d8] sm:$0x7f] }
 0x172   : > { %1495 = vmatmul.mubr.f32.vlgmr.msra.gmra.mrb[20].mxu0 %v1408_v28  ;;  %11484 = vmatprep.subr.bf16.mxu1 %v11483_v22  ;;  %v1672_v22 = vrot.slane %v12658_v57, %v12313_v44  ;;  %v10537_v28 = vld [vmem:[%s14040_s3 + $0x188] sm:$0x7f] }
 0x173   : > { %11332 = vmatpush1.bf16.xpose.msra.mxu0 %v11331_v27  ;;  %1564 = vmatprep.mubr.f32.mxu0 %v1420_v29  ;;  %v10532_v27 = vld [vmem:[%s14040_s3 + $0x160] sm:$0xff]  ;;  %v11496_v29 = vpack.c.bf16 %v10675_v24, %v10670_v15  ;;  %v10549_v15 = vld [vmem:[%s14040_s3 + $0x1e8] sm:$0xff]  ;;  %v10554_v24 = vld [vmem:[%s14040_s3 + $0x210] sm:$0x7f] }
 0x174   : > { %11333 = vmatprep.subr.bf16.mxu0 %v12085_v12  ;;  %v5422_v57 = vld [vmem:[#allocation2 + $0x53] ss:$8 sm:$0xf]  ;;  %v11358_v32 = vpack.c.bf16 %v10554_v24, %v10549_v15 }
 0x178   : > { %5023 = vmatmul.mubr.f32.vlgmr.msra.gmra.mrb[0].mxu1 %v4936_v42  ;;  %v10672_v42 = vld [vmem:[%s14040_s3 + $0x5c0] sm:$0xff] }
 0x179   : > { %11486 = vmatpush1.bf16.xpose.msra.mxu1 %v11485_v30  ;;  %5092 = vmatprep.mubr.f32.mxu1 %v4948_v43  ;;  %v11345_v30 = vpack.c.bf16 %v10537_v28, %v10532_v27  ;;  %v10677_v43 = vld [vmem:[%s14040_s3 + $0x5e8] sm:$0x7f] }
 0x17a   : > { %1565 = vmatmul.mubr.f32.vlgmr.msra.gmra.mrb[20].mxu0 %v1416_v41  ;;  %11487 = vmatprep.subr.bf16.mxu1 %v12085_v12  ;;  %v10679_v41 = vld [vmem:[%s14040_s3 + $0x5f8] sm:$0xff]  ;;  %v11499_v50 = vpack.c.bf16 %v10677_v43, %v10672_v42  ;;  %v10548_v42 = vld [vmem:[%s14040_s3 + $0x1e0] sm:$0xff]  ;;  %v10553_v43 = vld [vmem:[%s14040_s3 + $0x208] sm:$0x7f] }
 0x17b   : > { %11335 = vmatpush3.bf16.xpose.msra.mxu0 %v11334_v45  ;;  %11045 = vmatprep.mubr.msk.f32.mxu0 %vm12086_vm1, %v12083_v0  ;;  %v1895_v45 = vld [vmem:[#allocation2 + $0x5] ss:$8 sm:$0x10] }
 0x17c   : > { %11337 = vmatprep.subr.bf16.mxu0 %v11336_v46  ;;  %v10684_v46 = vld [vmem:[%s14040_s3 + $0x620] sm:$0x7f]  ;;  %v12748_v51 = vor.u32 %v1895_v45, %v1894_v49 }
 0x17d   : > { %v2146_v45 = vld [vmem:[#allocation2 + $0x6] ss:$8 sm:$0xf] }
 0x17e   : > { %v1920_v20 = vrot.slane %v12748_v51, %v12338_v56 }
 0x180   : > { %5093 = vmatmul.mubr.f32.vlgmr.msra.gmra.mrb[0].mxu1 %v4944_v60  ;;  %v5423_v60 = vld [vmem:[#allocation2 + $0x53] ss:$8 sm:$0x10] }
 0x181   : > { %11489 = vmatpush3.bf16.xpose.msra.mxu1 %v11488_v55  ;;  %11143 = vmatprep.mubr.msk.f32.mxu1 %vm12086_vm1, %v12083_v0  ;;  %v11501_v55 = vpack.c.bf16 %v10684_v46, %v10679_v41 }
 0x182   : > { %11046 = vmatmul.mubr.f32.vlgmr.msra.gmra.mrb[20].mxu0 %v1424_v1  ;;  %11491 = vmatprep.subr.bf16.mxu1 %v11490_v61  ;;  %v11351_v61 = vpack.c.bf16 %v10546_v53, %v10541_v52  ;;  %v10678_v1 = vld [vmem:[%s14040_s3 + $0x5f0] sm:$0xff]  ;;  %v11360_v52 = vpack.c.bf16 %v10553_v43, %v10548_v42  ;;  %v1928_v53 = vrot.slane %v12748_v51, %v12286_v25  ;;  %v10561_v42 = vld [vmem:[%s14040_s3 + $0x248] sm:$0xff] }
 0x183   : > { %11339 = vmatpush1.bf16.xpose.msra.mxu0 %v11338_v63  ;;  %1746 = vmatprep.mubr.f32.mxu0 %v1664_v5  ;;  %v1916_v63 = vrot.slane %v12748_v51, %v12289_v23  ;;  %v10681_v5 = vld [vmem:[%s14040_s3 + $0x608] sm:$0xff]  ;;  %v11503_v9 = vpack.c.bf16 %v10683_v2, %v10678_v1  ;;  %v10696_v1 = vld [vmem:[%s14040_s3 + $0x680] sm:$0x7f]  ;;  %v10550_v2 = vld [vmem:[%s14040_s3 + $0x1f0] sm:$0xff] }
 0x184   : > { %11341 = vmatprep.subr.bf16.mxu0 %v11340_v3  ;;  %v12770_v3 = vor.u32 %v5423_v60, %v5422_v57  ;;  %v11505_v13 = vpack.c.bf16 %v10686_v6, %v10681_v5  ;;  %v10693_v60 = vld [vmem:[%s14040_s3 + $0x668] sm:$0x7f]  ;;  %v10555_v57 = vld [vmem:[%s14040_s3 + $0x218] sm:$0x7f]  ;;  %v10566_v43 = vld [vmem:[%s14040_s3 + $0x270] sm:$0x7f] }
 0x186   : > { %v5444_v4 = vrot.slane %v12770_v3, %v12289_v23  ;;  %v5440_v27 = vrot.slane %v12770_v3, %v12298_v31  ;;  %v5452_v28 = vrot.slane %v12770_v3, %v12313_v44  ;;  %v5448_v49 = vrot.slane %v12770_v3, %v12338_v56 }
 0x187   : > { %v5456_v6 = vrot.slane %v12770_v3, %v12286_v25  ;;  %v10690_v3 = vld [vmem:[%s14040_s3 + $0x650] sm:$0xff] }
 0x188   : > { %11144 = vmatmul.mubr.f32.vlgmr.msra.gmra.mrb[0].mxu1 %v4952_v17  ;;  %v1912_v17 = vrot.slane %v12748_v51, %v12298_v31 }
 0x189   : > { %11493 = vmatpush1.bf16.xpose.msra.mxu1 %v11492_v16  ;;  %5274 = vmatprep.mubr.f32.mxu1 %v5192_v14  ;;  %v11353_v16 = vpack.c.bf16 %v10545_v62, %v10540_v7  ;;  %v10685_v14 = vld [vmem:[%s14040_s3 + $0x628] sm:$0x7f] }
 0x18a   : > { %1747 = vmatmul.mubr.f32.vlgmr.msra.gmra.mrb[20].mxu0 %v1660_v21  ;;  %11495 = vmatprep.subr.bf16.mxu1 %v11494_v18  ;;  %v1924_v18 = vrot.slane %v12748_v51, %v12313_v44  ;;  %v10547_v21 = vld [vmem:[%s14040_s3 + $0x1d8] sm:$0x7f] }
 0x18b   : > { %11343 = vmatpush1.bf16.xpose.msra.mxu0 %v11342_v19  ;;  %1816 = vmatprep.mubr.f32.mxu0 %v1672_v22  ;;  %v10542_v19 = vld [vmem:[%s14040_s3 + $0x1b0] sm:$0xff]  ;;  %v11507_v22 = vpack.c.bf16 %v10685_v14, %v10680_v8  ;;  %v10559_v8 = vld [vmem:[%s14040_s3 + $0x238] sm:$0xff]  ;;  %v10564_v14 = vld [vmem:[%s14040_s3 + $0x260] sm:$0x7f] }
 0x18c   : > { %11344 = vmatprep.subr.bf16.mxu0 %v12085_v12  ;;  %v5674_v51 = vld [vmem:[#allocation2 + $0x54] ss:$8 sm:$0xf]  ;;  %v11369_v24 = vpack.c.bf16 %v10564_v14, %v10559_v8 }
 0x190   : > { %5275 = vmatmul.mubr.f32.vlgmr.msra.gmra.mrb[0].mxu1 %v5188_v33  ;;  %v10682_v33 = vld [vmem:[%s14040_s3 + $0x610] sm:$0xff] }
 0x191   : > { %11497 = vmatpush1.bf16.xpose.msra.mxu1 %v11496_v29  ;;  %5344 = vmatprep.mubr.f32.mxu1 %v5200_v37  ;;  %v11356_v29 = vpack.c.bf16 %v10547_v21, %v10542_v19  ;;  %v10687_v37 = vld [vmem:[%s14040_s3 + $0x638] sm:$0x7f] }
 0x192   : > { %1817 = vmatmul.mubr.f32.vlgmr.msra.gmra.mrb[20].mxu0 %v1668_v39  ;;  %11498 = vmatprep.subr.bf16.mxu1 %v12085_v12  ;;  %v10689_v39 = vld [vmem:[%s14040_s3 + $0x648] sm:$0xff]  ;;  %v11510_v41 = vpack.c.bf16 %v10687_v37, %v10682_v33  ;;  %v10558_v33 = vld [vmem:[%s14040_s3 + $0x230] sm:$0xff]  ;;  %v10563_v37 = vld [vmem:[%s14040_s3 + $0x258] sm:$0x7f] }
 0x193   : > { %11346 = vmatpush3.bf16.xpose.msra.mxu0 %v11345_v30  ;;  %11052 = vmatprep.mubr.msk.f32.mxu0 %vm12086_vm1, %v12083_v0  ;;  %v2147_v30 = vld [vmem:[#allocation2 + $0x6] ss:$8 sm:$0x10] }
 0x194   : > { %11348 = vmatprep.subr.bf16.mxu0 %v11347_v40  ;;  %v10694_v40 = vld [vmem:[%s14040_s3 + $0x670] sm:$0x7f]  ;;  %v12838_v46 = vor.u32 %v2147_v30, %v2146_v45  ;;  %v2398_v30 = vld [vmem:[#allocation2 + $0x7] ss:$8 sm:$0xf] }
 0x196   : > { %v2172_v15 = vrot.slane %v12838_v46, %v12338_v56 }
 0x198   : > { %5345 = vmatmul.mubr.f32.vlgmr.msra.gmra.mrb[0].mxu1 %v5196_v54  ;;  %v5675_v54 = vld [vmem:[#allocation2 + $0x54] ss:$8 sm:$0x10] }
 0x199   : > { %11500 = vmatpush3.bf16.xpose.msra.mxu1 %v11499_v50  ;;  %11150 = vmatprep.mubr.msk.f32.mxu1 %vm12086_vm1, %v12083_v0  ;;  %v11512_v50 = vpack.c.bf16 %v10694_v40, %v10689_v39 }
 0x19a   : > { %11053 = vmatmul.mubr.f32.vlgmr.msra.gmra.mrb[20].mxu0 %v1676_v59  ;;  %11502 = vmatprep.subr.bf16.mxu1 %v11501_v55  ;;  %v11362_v55 = vpack.c.bf16 %v10556_v48, %v10551_v47  ;;  %v10688_v59 = vld [vmem:[%s14040_s3 + $0x640] sm:$0xff]  ;;  %v11371_v47 = vpack.c.bf16 %v10563_v37, %v10558_v33  ;;  %v2180_v48 = vrot.slane %v12838_v46, %v12286_v25  ;;  %v10571_v33 = vld [vmem:[%s14040_s3 + $0x298] sm:$0xff] }
 0x19b   : > { %11350 = vmatpush1.bf16.xpose.msra.mxu0 %v11349_v58  ;;  %1998 = vmatprep.mubr.f32.mxu0 %v1916_v63  ;;  %v2168_v58 = vrot.slane %v12838_v46, %v12289_v23  ;;  %v10691_v63 = vld [vmem:[%s14040_s3 + $0x658] sm:$0xff]  ;;  %v11514_v5 = vpack.c.bf16 %v10693_v60, %v10688_v59  ;;  %v10706_v59 = vld [vmem:[%s14040_s3 + $0x6d0] sm:$0x7f]  ;;  %v10560_v60 = vld [vmem:[%s14040_s3 + $0x240] sm:$0xff] }
 0x19c   : > { %11352 = vmatprep.subr.bf16.mxu0 %v11351_v61  ;;  %v12860_v61 = vor.u32 %v5675_v54, %v5674_v51  ;;  %v11516_v7 = vpack.c.bf16 %v10696_v1, %v10691_v63  ;;  %v10703_v54 = vld [vmem:[%s14040_s3 + $0x6b8] sm:$0x7f]  ;;  %v10565_v51 = vld [vmem:[%s14040_s3 + $0x268] sm:$0x7f]  ;;  %v10576_v37 = vld [vmem:[%s14040_s3 + $0x2c0] sm:$0x7f] }
 0x19e   : > { %v5696_v62 = vrot.slane %v12860_v61, %v12289_v23  ;;  %v5692_v19 = vrot.slane %v12860_v61, %v12298_v31  ;;  %v5704_v21 = vrot.slane %v12860_v61, %v12313_v44  ;;  %v5700_v45 = vrot.slane %v12860_v61, %v12338_v56 }
 0x19f   : > { %v5708_v1 = vrot.slane %v12860_v61, %v12286_v25  ;;  %v10700_v61 = vld [vmem:[%s14040_s3 + $0x6a0] sm:$0xff] }
 0x1a0   : > { %11151 = vmatmul.mubr.f32.vlgmr.msra.gmra.mrb[0].mxu1 %v5204_v11  ;;  %v2164_v11 = vrot.slane %v12838_v46, %v12298_v31 }
 0x1a1   : > { %11504 = vmatpush1.bf16.xpose.msra.mxu1 %v11503_v9  ;;  %5526 = vmatprep.mubr.f32.mxu1 %v5444_v4  ;;  %v11364_v9 = vpack.c.bf16 %v10555_v57, %v10550_v2  ;;  %v10695_v4 = vld [vmem:[%s14040_s3 + $0x678] sm:$0x7f] }
 0x1a2   : > { %1999 = vmatmul.mubr.f32.vlgmr.msra.gmra.mrb[20].mxu0 %v1912_v17  ;;  %11506 = vmatprep.subr.bf16.mxu1 %v11505_v13  ;;  %v2176_v13 = vrot.slane %v12838_v46, %v12313_v44  ;;  %v10557_v17 = vld [vmem:[%s14040_s3 + $0x228] sm:$0x7f] }
 0x1a3   : > { %11354 = vmatpush1.bf16.xpose.msra.mxu0 %v11353_v16  ;;  %2068 = vmatprep.mubr.f32.mxu0 %v1924_v18  ;;  %v10552_v16 = vld [vmem:[%s14040_s3 + $0x200] sm:$0xff]  ;;  %v11518_v18 = vpack.c.bf16 %v10695_v4, %v10690_v3  ;;  %v10569_v3 = vld [vmem:[%s14040_s3 + $0x288] sm:$0xff]  ;;  %v10574_v4 = vld [vmem:[%s14040_s3 + $0x2b0] sm:$0x7f] }
 0x1a4   : > { %11355 = vmatprep.subr.bf16.mxu0 %v12085_v12  ;;  %v5926_v46 = vld [vmem:[#allocation2 + $0x55] ss:$8 sm:$0xf]  ;;  %v11380_v14 = vpack.c.bf16 %v10574_v4, %v10569_v3 }
 0x1a8   : > { %5527 = vmatmul.mubr.f32.vlgmr.msra.gmra.mrb[0].mxu1 %v5440_v27  ;;  %v10692_v27 = vld [vmem:[%s14040_s3 + $0x660] sm:$0xff] }
 0x1a9   : > { %11508 = vmatpush1.bf16.xpose.msra.mxu1 %v11507_v22  ;;  %5596 = vmatprep.mubr.f32.mxu1 %v5452_v28  ;;  %v11367_v22 = vpack.c.bf16 %v10557_v17, %v10552_v16  ;;  %v10697_v28 = vld [vmem:[%s14040_s3 + $0x688] sm:$0x7f] }
 0x1aa   : > { %2069 = vmatmul.mubr.f32.vlgmr.msra.gmra.mrb[20].mxu0 %v1920_v20  ;;  %11509 = vmatprep.subr.bf16.mxu1 %v12085_v12  ;;  %v10699_v20 = vld [vmem:[%s14040_s3 + $0x698] sm:$0xff]  ;;  %v11521_v39 = vpack.c.bf16 %v10697_v28, %v10692_v27  ;;  %v10568_v27 = vld [vmem:[%s14040_s3 + $0x280] sm:$0xff]  ;;  %v10573_v28 = vld [vmem:[%s14040_s3 + $0x2a8] sm:$0x7f] }
 0x1ab   : > { %11357 = vmatpush3.bf16.xpose.msra.mxu0 %v11356_v29  ;;  %11059 = vmatprep.mubr.msk.f32.mxu0 %vm12086_vm1, %v12083_v0  ;;  %v2399_v29 = vld [vmem:[#allocation2 + $0x7] ss:$8 sm:$0x10] }
 0x1ac   : > { %11359 = vmatprep.subr.bf16.mxu0 %v11358_v32  ;;  %v10704_v32 = vld [vmem:[%s14040_s3 + $0x6c0] sm:$0x7f]  ;;  %v12928_v40 = vor.u32 %v2399_v29, %v2398_v30 }
 0x1ad   : > { %v2650_v29 = vld [vmem:[#allocation2 + $0x28] ss:$8 sm:$0xf] }
 0x1ae   : > { %v2424_v8 = vrot.slane %v12928_v40, %v12338_v56 }
 0x1b0   : > { %5597 = vmatmul.mubr.f32.vlgmr.msra.gmra.mrb[0].mxu1 %v5448_v49  ;;  %v5927_v49 = vld [vmem:[#allocation2 + $0x55] ss:$8 sm:$0x10] }
 0x1b1   : > { %11511 = vmatpush3.bf16.xpose.msra.mxu1 %v11510_v41  ;;  %11157 = vmatprep.mubr.msk.f32.mxu1 %vm12086_vm1, %v12083_v0  ;;  %v11523_v41 = vpack.c.bf16 %v10704_v32, %v10699_v20 }
 0x1b2   : > { %11060 = vmatmul.mubr.f32.vlgmr.msra.gmra.mrb[20].mxu0 %v1928_v53  ;;  %11513 = vmatprep.subr.bf16.mxu1 %v11512_v50  ;;  %v11373_v50 = vpack.c.bf16 %v10566_v43, %v10561_v42  ;;  %v10698_v53 = vld [vmem:[%s14040_s3 + $0x690] sm:$0xff]  ;;  %v11382_v42 = vpack.c.bf16 %v10573_v28, %v10568_v27  ;;  %v2432_v43 = vrot.slane %v12928_v40, %v12286_v25  ;;  %v10581_v27 = vld [vmem:[%s14040_s3 + $0x2e8] sm:$0xff] }
 0x1b3   : > { %11361 = vmatpush1.bf16.xpose.msra.mxu0 %v11360_v52  ;;  %2250 = vmatprep.mubr.f32.mxu0 %v2168_v58  ;;  %v2420_v52 = vrot.slane %v12928_v40, %v12289_v23  ;;  %v10701_v58 = vld [vmem:[%s14040_s3 + $0x6a8] sm:$0xff]  ;;  %v11525_v63 = vpack.c.bf16 %v10703_v54, %v10698_v53  ;;  %v10716_v53 = vld [vmem:[%s14040_s3 + $0x720] sm:$0x7f]  ;;  %v10570_v54 = vld [vmem:[%s14040_s3 + $0x290] sm:$0xff] }
 0x1b4   : > { %11363 = vmatprep.subr.bf16.mxu0 %v11362_v55  ;;  %v12950_v55 = vor.u32 %v5927_v49, %v5926_v46  ;;  %v11527_v2 = vpack.c.bf16 %v10706_v59, %v10701_v58  ;;  %v10713_v49 = vld [vmem:[%s14040_s3 + $0x708] sm:$0x7f]  ;;  %v10575_v46 = vld [vmem:[%s14040_s3 + $0x2b8] sm:$0x7f]  ;;  %v10586_v28 = vld [vmem:[%s14040_s3 + $0x310] sm:$0x7f] }
 0x1b6   : > { %v5948_v57 = vrot.slane %v12950_v55, %v12289_v23  ;;  %v5944_v16 = vrot.slane %v12950_v55, %v12298_v31  ;;  %v5956_v17 = vrot.slane %v12950_v55, %v12313_v44  ;;  %v5952_v30 = vrot.slane %v12950_v55, %v12338_v56 }
 0x1b7   : > { %v5960_v59 = vrot.slane %v12950_v55, %v12286_v25  ;;  %v10710_v55 = vld [vmem:[%s14040_s3 + $0x6f0] sm:$0xff] }
 0x1b8   : > { %11158 = vmatmul.mubr.f32.vlgmr.msra.gmra.mrb[0].mxu1 %v5456_v6  ;;  %v2416_v6 = vrot.slane %v12928_v40, %v12298_v31 }
 0x1b9   : > { %11515 = vmatpush1.bf16.xpose.msra.mxu1 %v11514_v5  ;;  %5778 = vmatprep.mubr.f32.mxu1 %v5696_v62  ;;  %v11375_v5 = vpack.c.bf16 %v10565_v51, %v10560_v60  ;;  %v10705_v62 = vld [vmem:[%s14040_s3 + $0x6c8] sm:$0x7f] }
 0x1ba   : > { %2251 = vmatmul.mubr.f32.vlgmr.msra.gmra.mrb[20].mxu0 %v2164_v11  ;;  %11517 = vmatprep.subr.bf16.mxu1 %v11516_v7  ;;  %v2428_v7 = vrot.slane %v12928_v40, %v12313_v44  ;;  %v10567_v11 = vld [vmem:[%s14040_s3 + $0x278] sm:$0x7f] }
 0x1bb   : > { %11365 = vmatpush1.bf16.xpose.msra.mxu0 %v11364_v9  ;;  %2320 = vmatprep.mubr.f32.mxu0 %v2176_v13  ;;  %v10562_v9 = vld [vmem:[%s14040_s3 + $0x250] sm:$0xff]  ;;  %v11529_v13 = vpack.c.bf16 %v10705_v62, %v10700_v61  ;;  %v10579_v61 = vld [vmem:[%s14040_s3 + $0x2d8] sm:$0xff]  ;;  %v10584_v62 = vld [vmem:[%s14040_s3 + $0x300] sm:$0x7f] }
 0x1bc   : > { %11366 = vmatprep.subr.bf16.mxu0 %v12085_v12  ;;  %v6178_v40 = vld [vmem:[#allocation2 + $0x56] ss:$8 sm:$0xf]  ;;  %v11391_v4 = vpack.c.bf16 %v10584_v62, %v10579_v61 }
 0x1c0   : > { %5779 = vmatmul.mubr.f32.vlgmr.msra.gmra.mrb[0].mxu1 %v5692_v19  ;;  %v10702_v19 = vld [vmem:[%s14040_s3 + $0x6b0] sm:$0xff] }
 0x1c1   : > { %11519 = vmatpush1.bf16.xpose.msra.mxu1 %v11518_v18  ;;  %5848 = vmatprep.mubr.f32.mxu1 %v5704_v21  ;;  %v11378_v18 = vpack.c.bf16 %v10567_v11, %v10562_v9  ;;  %v10707_v21 = vld [vmem:[%s14040_s3 + $0x6d8] sm:$0x7f] }
 0x1c2   : > { %2321 = vmatmul.mubr.f32.vlgmr.msra.gmra.mrb[20].mxu0 %v2172_v15  ;;  %11520 = vmatprep.subr.bf16.mxu1 %v12085_v12  ;;  %v10709_v15 = vld [vmem:[%s14040_s3 + $0x6e8] sm:$0xff]  ;;  %v11532_v20 = vpack.c.bf16 %v10707_v21, %v10702_v19  ;;  %v10578_v19 = vld [vmem:[%s14040_s3 + $0x2d0] sm:$0xff]  ;;  %v10583_v21 = vld [vmem:[%s14040_s3 + $0x2f8] sm:$0x7f] }
 0x1c3   : > { %11368 = vmatpush3.bf16.xpose.msra.mxu0 %v11367_v22  ;;  %11066 = vmatprep.mubr.msk.f32.mxu0 %vm12086_vm1, %v12083_v0  ;;  %v2651_v22 = vld [vmem:[#allocation2 + $0x28] ss:$8 sm:$0x10] }
 0x1c4   : > { %11370 = vmatprep.subr.bf16.mxu0 %v11369_v24  ;;  %v10714_v24 = vld [vmem:[%s14040_s3 + $0x710] sm:$0x7f]  ;;  %v13018_v32 = vor.u32 %v2651_v22, %v2650_v29 }
 0x1c5   : > { %v2902_v22 = vld [vmem:[#allocation2 + $0x29] ss:$8 sm:$0xf] }
 0x1c6   : > { %v2676_v3 = vrot.slane %v13018_v32, %v12338_v56 }
 0x1c8   : > { %5849 = vmatmul.mubr.f32.vlgmr.msra.gmra.mrb[0].mxu1 %v5700_v45  ;;  %v6179_v45 = vld [vmem:[#allocation2 + $0x56] ss:$8 sm:$0x10] }
 0x1c9   : > { %11522 = vmatpush3.bf16.xpose.msra.mxu1 %v11521_v39  ;;  %11164 = vmatprep.mubr.msk.f32.mxu1 %vm12086_vm1, %v12083_v0  ;;  %v11534_v39 = vpack.c.bf16 %v10714_v24, %v10709_v15 }
 0x1ca   : > { %11067 = vmatmul.mubr.f32.vlgmr.msra.gmra.mrb[20].mxu0 %v2180_v48  ;;  %11524 = vmatprep.subr.bf16.mxu1 %v11523_v41  ;;  %v11384_v41 = vpack.c.bf16 %v10576_v37, %v10571_v33  ;;  %v10708_v48 = vld [vmem:[%s14040_s3 + $0x6e0] sm:$0xff]  ;;  %v11393_v33 = vpack.c.bf16 %v10583_v21, %v10578_v19  ;;  %v2684_v37 = vrot.slane %v13018_v32, %v12286_v25  ;;  %v10591_v19 = vld [vmem:[%s14040_s3 + $0x338] sm:$0xff] }
 0x1cb   : > { %11372 = vmatpush1.bf16.xpose.msra.mxu0 %v11371_v47  ;;  %2502 = vmatprep.mubr.f32.mxu0 %v2420_v52  ;;  %v2672_v47 = vrot.slane %v13018_v32, %v12289_v23  ;;  %v10711_v52 = vld [vmem:[%s14040_s3 + $0x6f8] sm:$0xff]  ;;  %v11536_v58 = vpack.c.bf16 %v10713_v49, %v10708_v48  ;;  %v10726_v48 = vld [vmem:[%s14040_s3 + $0x770] sm:$0x7f]  ;;  %v10580_v49 = vld [vmem:[%s14040_s3 + $0x2e0] sm:$0xff] }
 0x1cc   : > { %11374 = vmatprep.subr.bf16.mxu0 %v11373_v50  ;;  %v13040_v50 = vor.u32 %v6179_v45, %v6178_v40  ;;  %v11538_v60 = vpack.c.bf16 %v10716_v53, %v10711_v52  ;;  %v10723_v45 = vld [vmem:[%s14040_s3 + $0x758] sm:$0x7f]  ;;  %v10585_v40 = vld [vmem:[%s14040_s3 + $0x308] sm:$0x7f]  ;;  %v10596_v21 = vld [vmem:[%s14040_s3 + $0x360] sm:$0x7f] }
 0x1ce   : > { %v6200_v51 = vrot.slane %v13040_v50, %v12289_v23  ;;  %v6196_v9 = vrot.slane %v13040_v50, %v12298_v31  ;;  %v6208_v11 = vrot.slane %v13040_v50, %v12313_v44  ;;  %v6204_v29 = vrot.slane %v13040_v50, %v12338_v56 }
 0x1cf   : > { %v6212_v53 = vrot.slane %v13040_v50, %v12286_v25  ;;  %v10720_v50 = vld [vmem:[%s14040_s3 + $0x740] sm:$0xff] }
 0x1d0   : > { %11165 = vmatmul.mubr.f32.vlgmr.msra.gmra.mrb[0].mxu1 %v5708_v1  ;;  %v2668_v1 = vrot.slane %v13018_v32, %v12298_v31 }
 0x1d1   : > { %11526 = vmatpush1.bf16.xpose.msra.mxu1 %v11525_v63  ;;  %6030 = vmatprep.mubr.f32.mxu1 %v5948_v57  ;;  %v11386_v63 = vpack.c.bf16 %v10575_v46, %v10570_v54  ;;  %v10715_v57 = vld [vmem:[%s14040_s3 + $0x718] sm:$0x7f] }
 0x1d2   : > { %2503 = vmatmul.mubr.f32.vlgmr.msra.gmra.mrb[20].mxu0 %v2416_v6  ;;  %11528 = vmatprep.subr.bf16.mxu1 %v11527_v2  ;;  %v2680_v2 = vrot.slane %v13018_v32, %v12313_v44  ;;  %v10577_v6 = vld [vmem:[%s14040_s3 + $0x2c8] sm:$0x7f]  ;;  %v6430_v32 = vld [vmem:[#allocation2 + $0x57] ss:$8 sm:$0xf] }
 0x1d3   : > { %11376 = vmatpush1.bf16.xpose.msra.mxu0 %v11375_v5  ;;  %2572 = vmatprep.mubr.f32.mxu0 %v2428_v7  ;;  %v10572_v5 = vld [vmem:[%s14040_s3 + $0x2a0] sm:$0xff]  ;;  %v11540_v7 = vpack.c.bf16 %v10715_v57, %v10710_v55  ;;  %v10589_v55 = vld [vmem:[%s14040_s3 + $0x328] sm:$0xff]  ;;  %v10594_v57 = vld [vmem:[%s14040_s3 + $0x350] sm:$0x7f] }
 0x1d4   : > { %11377 = vmatprep.subr.bf16.mxu0 %v12085_v12  ;;  %v11402_v62 = vpack.c.bf16 %v10594_v57, %v10589_v55 }
 0x1d8   : > { %6031 = vmatmul.mubr.f32.vlgmr.msra.gmra.mrb[0].mxu1 %v5944_v16  ;;  %v10712_v16 = vld [vmem:[%s14040_s3 + $0x700] sm:$0xff] }
 0x1d9   : > { %11530 = vmatpush1.bf16.xpose.msra.mxu1 %v11529_v13  ;;  %6100 = vmatprep.mubr.f32.mxu1 %v5956_v17  ;;  %v11389_v13 = vpack.c.bf16 %v10577_v6, %v10572_v5  ;;  %v10717_v17 = vld [vmem:[%s14040_s3 + $0x728] sm:$0x7f] }
 0x1da   : > { %2573 = vmatmul.mubr.f32.vlgmr.msra.gmra.mrb[20].mxu0 %v2424_v8  ;;  %11531 = vmatprep.subr.bf16.mxu1 %v12085_v12  ;;  %v10719_v8 = vld [vmem:[%s14040_s3 + $0x738] sm:$0xff]  ;;  %v11543_v15 = vpack.c.bf16 %v10717_v17, %v10712_v16  ;;  %v10588_v16 = vld [vmem:[%s14040_s3 + $0x320] sm:$0xff]  ;;  %v10593_v17 = vld [vmem:[%s14040_s3 + $0x348] sm:$0x7f] }
 0x1db   : > { %11379 = vmatpush3.bf16.xpose.msra.mxu0 %v11378_v18  ;;  %11073 = vmatprep.mubr.msk.f32.mxu0 %vm12086_vm1, %v12083_v0  ;;  %v2903_v18 = vld [vmem:[#allocation2 + $0x29] ss:$8 sm:$0x10] }
 0x1dc   : > { %11381 = vmatprep.subr.bf16.mxu0 %v11380_v14  ;;  %v10724_v14 = vld [vmem:[%s14040_s3 + $0x760] sm:$0x7f]  ;;  %v13108_v24 = vor.u32 %v2903_v18, %v2902_v22 }
 0x1dd   : > { %v3154_v18 = vld [vmem:[#allocation2 + $0x2a] ss:$8 sm:$0xf] }
 0x1de   : > { %v2928_v61 = vrot.slane %v13108_v24, %v12338_v56 }
 0x1e0   : > { %6101 = vmatmul.mubr.f32.vlgmr.msra.gmra.mrb[0].mxu1 %v5952_v30  ;;  %v6431_v30 = vld [vmem:[#allocation2 + $0x57] ss:$8 sm:$0x10] }
 0x1e1   : > { %11533 = vmatpush3.bf16.xpose.msra.mxu1 %v11532_v20  ;;  %11171 = vmatprep.mubr.msk.f32.mxu1 %vm12086_vm1, %v12083_v0  ;;  %v11545_v20 = vpack.c.bf16 %v10724_v14, %v10719_v8 }
 0x1e2   : > { %11074 = vmatmul.mubr.f32.vlgmr.msra.gmra.mrb[20].mxu0 %v2432_v43  ;;  %11535 = vmatprep.subr.bf16.mxu1 %v11534_v39  ;;  %v11395_v39 = vpack.c.bf16 %v10586_v28, %v10581_v27  ;;  %v10718_v43 = vld [vmem:[%s14040_s3 + $0x730] sm:$0xff]  ;;  %v11404_v27 = vpack.c.bf16 %v10593_v17, %v10588_v16  ;;  %v2936_v28 = vrot.slane %v13108_v24, %v12286_v25  ;;  %v10601_v16 = vld [vmem:[%s14040_s3 + $0x388] sm:$0xff] }
 0x1e3   : > { %11383 = vmatpush1.bf16.xpose.msra.mxu0 %v11382_v42  ;;  %2754 = vmatprep.mubr.f32.mxu0 %v2672_v47  ;;  %v2924_v42 = vrot.slane %v13108_v24, %v12289_v23  ;;  %v10721_v47 = vld [vmem:[%s14040_s3 + $0x748] sm:$0xff]  ;;  %v11547_v52 = vpack.c.bf16 %v10723_v45, %v10718_v43  ;;  %v10736_v43 = vld [vmem:[%s14040_s3 + $0x7c0] sm:$0x7f]  ;;  %v10590_v45 = vld [vmem:[%s14040_s3 + $0x330] sm:$0xff] }
 0x1e4   : > { %11385 = vmatprep.subr.bf16.mxu0 %v11384_v41  ;;  %v13130_v41 = vor.u32 %v6431_v30, %v6430_v32  ;;  %v11549_v54 = vpack.c.bf16 %v10726_v48, %v10721_v47  ;;  %v10733_v30 = vld [vmem:[%s14040_s3 + $0x7a8] sm:$0x7f]  ;;  %v10595_v32 = vld [vmem:[%s14040_s3 + $0x358] sm:$0x7f]  ;;  %v10606_v17 = vld [vmem:[%s14040_s3 + $0x3b0] sm:$0x7f] }
 0x1e6   : > { %v6452_v46 = vrot.slane %v13130_v41, %v12289_v23  ;;  %v6448_v5 = vrot.slane %v13130_v41, %v12298_v31  ;;  %v6460_v6 = vrot.slane %v13130_v41, %v12313_v44  ;;  %v6456_v22 = vrot.slane %v13130_v41, %v12338_v56 }
 0x1e7   : > { %v6464_v48 = vrot.slane %v13130_v41, %v12286_v25  ;;  %v10730_v41 = vld [vmem:[%s14040_s3 + $0x790] sm:$0xff] }
 0x1e8   : > { %11172 = vmatmul.mubr.f32.vlgmr.msra.gmra.mrb[0].mxu1 %v5960_v59  ;;  %v2920_v59 = vrot.slane %v13108_v24, %v12298_v31 }
 0x1e9   : > { %11537 = vmatpush1.bf16.xpose.msra.mxu1 %v11536_v58  ;;  %6282 = vmatprep.mubr.f32.mxu1 %v6200_v51  ;;  %v11397_v58 = vpack.c.bf16 %v10585_v40, %v10580_v49  ;;  %v10725_v51 = vld [vmem:[%s14040_s3 + $0x768] sm:$0x7f] }
 0x1ea   : > { %2755 = vmatmul.mubr.f32.vlgmr.msra.gmra.mrb[20].mxu0 %v2668_v1  ;;  %11539 = vmatprep.subr.bf16.mxu1 %v11538_v60  ;;  %v2932_v60 = vrot.slane %v13108_v24, %v12313_v44  ;;  %v10587_v1 = vld [vmem:[%s14040_s3 + $0x318] sm:$0x7f] }
 0x1eb   : > { %11387 = vmatpush1.bf16.xpose.msra.mxu0 %v11386_v63  ;;  %2824 = vmatprep.mubr.f32.mxu0 %v2680_v2  ;;  %v10582_v63 = vld [vmem:[%s14040_s3 + $0x2f0] sm:$0xff]  ;;  %v11551_v2 = vpack.c.bf16 %v10725_v51, %v10720_v50  ;;  %v10599_v50 = vld [vmem:[%s14040_s3 + $0x378] sm:$0xff]  ;;  %v10604_v51 = vld [vmem:[%s14040_s3 + $0x3a0] sm:$0x7f] }
 0x1ec   : > { %11388 = vmatprep.subr.bf16.mxu0 %v12085_v12  ;;  %v6682_v24 = vld [vmem:[#allocation2 + $0x78] ss:$8 sm:$0xf]  ;;  %v11413_v57 = vpack.c.bf16 %v10604_v51, %v10599_v50 }
 0x1f0   : > { %6283 = vmatmul.mubr.f32.vlgmr.msra.gmra.mrb[0].mxu1 %v6196_v9  ;;  %v10722_v9 = vld [vmem:[%s14040_s3 + $0x750] sm:$0xff] }
 0x1f1   : > { %11541 = vmatpush1.bf16.xpose.msra.mxu1 %v11540_v7  ;;  %6352 = vmatprep.mubr.f32.mxu1 %v6208_v11  ;;  %v11400_v7 = vpack.c.bf16 %v10587_v1, %v10582_v63  ;;  %v10727_v11 = vld [vmem:[%s14040_s3 + $0x778] sm:$0x7f] }
 0x1f2   : > { %2825 = vmatmul.mubr.f32.vlgmr.msra.gmra.mrb[20].mxu0 %v2676_v3  ;;  %11542 = vmatprep.subr.bf16.mxu1 %v12085_v12  ;;  %v10729_v3 = vld [vmem:[%s14040_s3 + $0x788] sm:$0xff]  ;;  %v11554_v8 = vpack.c.bf16 %v10727_v11, %v10722_v9  ;;  %v10598_v9 = vld [vmem:[%s14040_s3 + $0x370] sm:$0xff]  ;;  %v10603_v11 = vld [vmem:[%s14040_s3 + $0x398] sm:$0x7f] }
 0x1f3   : > { %11390 = vmatpush3.bf16.xpose.msra.mxu0 %v11389_v13  ;;  %11080 = vmatprep.mubr.msk.f32.mxu0 %vm12086_vm1, %v12083_v0  ;;  %v3155_v13 = vld [vmem:[#allocation2 + $0x2a] ss:$8 sm:$0x10] }
 0x1f4   : > { %11392 = vmatprep.subr.bf16.mxu0 %v11391_v4  ;;  %v10734_v4 = vld [vmem:[%s14040_s3 + $0x7b0] sm:$0x7f]  ;;  %v13198_v14 = vor.u32 %v3155_v13, %v3154_v18 }
 0x1f5   : > { %v3406_v13 = vld [vmem:[#allocation2 + $0x2b] ss:$8 sm:$0xf] }
 0x1f6   : > { %v3180_v55 = vrot.slane %v13198_v14, %v12338_v56 }
 0x1f8   : > { %6353 = vmatmul.mubr.f32.vlgmr.msra.gmra.mrb[0].mxu1 %v6204_v29  ;;  %v6683_v29 = vld [vmem:[#allocation2 + $0x78] ss:$8 sm:$0x10] }
 0x1f9   : > { %11544 = vmatpush3.bf16.xpose.msra.mxu1 %v11543_v15  ;;  %11178 = vmatprep.mubr.msk.f32.mxu1 %vm12086_vm1, %v12083_v0  ;;  %v11556_v15 = vpack.c.bf16 %v10734_v4, %v10729_v3 }
 0x1fa   : > { %11081 = vmatmul.mubr.f32.vlgmr.msra.gmra.mrb[20].mxu0 %v2684_v37  ;;  %11546 = vmatprep.subr.bf16.mxu1 %v11545_v20  ;;  %v11406_v20 = vpack.c.bf16 %v10596_v21, %v10591_v19  ;;  %v10728_v37 = vld [vmem:[%s14040_s3 + $0x780] sm:$0xff]  ;;  %v11415_v19 = vpack.c.bf16 %v10603_v11, %v10598_v9  ;;  %v3188_v21 = vrot.slane %v13198_v14, %v12286_v25  ;;  %v10611_v9 = vld [vmem:[%s14040_s3 + $0x3d8] sm:$0xff] }
 0x1fb   : > { %11394 = vmatpush1.bf16.xpose.msra.mxu0 %v11393_v33  ;;  %3006 = vmatprep.mubr.f32.mxu0 %v2924_v42  ;;  %v3176_v33 = vrot.slane %v13198_v14, %v12289_v23  ;;  %v10731_v42 = vld [vmem:[%s14040_s3 + $0x798] sm:$0xff]  ;;  %v11558_v47 = vpack.c.bf16 %v10733_v30, %v10728_v37  ;;  %v10746_v37 = vld [vmem:[%s14040_s3 + $0x810] sm:$0x7f]  ;;  %v10600_v30 = vld [vmem:[%s14040_s3 + $0x380] sm:$0xff] }
 0x1fc   : > { %11396 = vmatprep.subr.bf16.mxu0 %v11395_v39  ;;  %v13220_v39 = vor.u32 %v6683_v29, %v6682_v24  ;;  %v11560_v49 = vpack.c.bf16 %v10736_v43, %v10731_v42  ;;  %v10743_v29 = vld [vmem:[%s14040_s3 + $0x7f8] sm:$0x7f]  ;;  %v10605_v24 = vld [vmem:[%s14040_s3 + $0x3a8] sm:$0x7f]  ;;  %v10616_v11 = vld [vmem:[%s14040_s3 + $0x400] sm:$0x7f] }
 0x1fe   : > { %v6704_v40 = vrot.slane %v13220_v39, %v12289_v23  ;;  %v6700_v63 = vrot.slane %v13220_v39, %v12298_v31  ;;  %v6712_v1 = vrot.slane %v13220_v39, %v12313_v44  ;;  %v6708_v18 = vrot.slane %v13220_v39, %v12338_v56 }
 0x1ff   : > { %v6716_v43 = vrot.slane %v13220_v39, %v12286_v25  ;;  %v10740_v39 = vld [vmem:[%s14040_s3 + $0x7e0] sm:$0xff] }
 0x200   : > { %11179 = vmatmul.mubr.f32.vlgmr.msra.gmra.mrb[0].mxu1 %v6212_v53  ;;  %v3172_v53 = vrot.slane %v13198_v14, %v12298_v31 }
 0x201   : > { %11548 = vmatpush1.bf16.xpose.msra.mxu1 %v11547_v52  ;;  %6534 = vmatprep.mubr.f32.mxu1 %v6452_v46  ;;  %v11408_v52 = vpack.c.bf16 %v10595_v32, %v10590_v45  ;;  %v10735_v46 = vld [vmem:[%s14040_s3 + $0x7b8] sm:$0x7f] }
 0x202   : > { %3007 = vmatmul.mubr.f32.vlgmr.msra.gmra.mrb[20].mxu0 %v2920_v59  ;;  %11550 = vmatprep.subr.bf16.mxu1 %v11549_v54  ;;  %v3184_v54 = vrot.slane %v13198_v14, %v12313_v44  ;;  %v10597_v59 = vld [vmem:[%s14040_s3 + $0x368] sm:$0x7f] }
 0x203   : > { %11398 = vmatpush1.bf16.xpose.msra.mxu0 %v11397_v58  ;;  %3076 = vmatprep.mubr.f32.mxu0 %v2932_v60  ;;  %v10592_v58 = vld [vmem:[%s14040_s3 + $0x340] sm:$0xff]  ;;  %v11562_v60 = vpack.c.bf16 %v10735_v46, %v10730_v41  ;;  %v10609_v41 = vld [vmem:[%s14040_s3 + $0x3c8] sm:$0xff]  ;;  %v10614_v46 = vld [vmem:[%s14040_s3 + $0x3f0] sm:$0x7f] }
 0x204   : > { %11399 = vmatprep.subr.bf16.mxu0 %v12085_v12  ;;  %v6934_v14 = vld [vmem:[#allocation2 + $0x79] ss:$8 sm:$0xf]  ;;  %v11424_v51 = vpack.c.bf16 %v10614_v46, %v10609_v41 }
 0x208   : > { %6535 = vmatmul.mubr.f32.vlgmr.msra.gmra.mrb[0].mxu1 %v6448_v5  ;;  %v10732_v5 = vld [vmem:[%s14040_s3 + $0x7a0] sm:$0xff] }
 0x209   : > { %11552 = vmatpush1.bf16.xpose.msra.mxu1 %v11551_v2  ;;  %6604 = vmatprep.mubr.f32.mxu1 %v6460_v6  ;;  %v11411_v2 = vpack.c.bf16 %v10597_v59, %v10592_v58  ;;  %v10737_v6 = vld [vmem:[%s14040_s3 + $0x7c8] sm:$0x7f] }
 0x20a   : > { %3077 = vmatmul.mubr.f32.vlgmr.msra.gmra.mrb[20].mxu0 %v2928_v61  ;;  %11553 = vmatprep.subr.bf16.mxu1 %v12085_v12  ;;  %v10739_v61 = vld [vmem:[%s14040_s3 + $0x7d8] sm:$0xff]  ;;  %v11565_v3 = vpack.c.bf16 %v10737_v6, %v10732_v5  ;;  %v10608_v5 = vld [vmem:[%s14040_s3 + $0x3c0] sm:$0xff]  ;;  %v10613_v6 = vld [vmem:[%s14040_s3 + $0x3e8] sm:$0x7f] }
 0x20b   : > { %11401 = vmatpush3.bf16.xpose.msra.mxu0 %v11400_v7  ;;  %11087 = vmatprep.mubr.msk.f32.mxu0 %vm12086_vm1, %v12083_v0  ;;  %v3407_v7 = vld [vmem:[#allocation2 + $0x2b] ss:$8 sm:$0x10] }
 0x20c   : > { %11403 = vmatprep.subr.bf16.mxu0 %v11402_v62  ;;  %v10744_v62 = vld [vmem:[%s14040_s3 + $0x800] sm:$0x7f]  ;;  %v13288_v4 = vor.u32 %v3407_v7, %v3406_v13 }
 0x20d   : > { %v3658_v7 = vld [vmem:[#allocation2 + $0x2c] ss:$8 sm:$0xf] }
 0x20e   : > { %v3432_v50 = vrot.slane %v13288_v4, %v12338_v56 }
 0x210   : > { %6605 = vmatmul.mubr.f32.vlgmr.msra.gmra.mrb[0].mxu1 %v6456_v22  ;;  %v6935_v22 = vld [vmem:[#allocation2 + $0x79] ss:$8 sm:$0x10] }
 0x211   : > { %11555 = vmatpush3.bf16.xpose.msra.mxu1 %v11554_v8  ;;  %11185 = vmatprep.mubr.msk.f32.mxu1 %vm12086_vm1, %v12083_v0  ;;  %v11567_v8 = vpack.c.bf16 %v10744_v62, %v10739_v61 }
 0x212   : > { %11088 = vmatmul.mubr.f32.vlgmr.msra.gmra.mrb[20].mxu0 %v2936_v28  ;;  %11557 = vmatprep.subr.bf16.mxu1 %v11556_v15  ;;  %v11417_v15 = vpack.c.bf16 %v10606_v17, %v10601_v16  ;;  %v10738_v28 = vld [vmem:[%s14040_s3 + $0x7d0] sm:$0xff]  ;;  %v11426_v16 = vpack.c.bf16 %v10613_v6, %v10608_v5  ;;  %v3440_v17 = vrot.slane %v13288_v4, %v12286_v25 }
 0x213   : > { %11405 = vmatpush1.bf16.xpose.msra.mxu0 %v11404_v27  ;;  %3258 = vmatprep.mubr.f32.mxu0 %v3176_v33  ;;  %v3428_v27 = vrot.slane %v13288_v4, %v12289_v23  ;;  %v10741_v33 = vld [vmem:[%s14040_s3 + $0x7e8] sm:$0xff]  ;;  %v11569_v42 = vpack.c.bf16 %v10743_v29, %v10738_v28  ;;  %v10756_v28 = vld [vmem:[%s14040_s3 + $0x860] sm:$0x7f]  ;;  %v10610_v29 = vld [vmem:[%s14040_s3 + $0x3d0] sm:$0xff] }
 0x214   : > { %11407 = vmatprep.subr.bf16.mxu0 %v11406_v20  ;;  %v13310_v20 = vor.u32 %v6935_v22, %v6934_v14  ;;  %v11571_v45 = vpack.c.bf16 %v10746_v37, %v10741_v33  ;;  %v10753_v22 = vld [vmem:[%s14040_s3 + $0x848] sm:$0x7f]  ;;  %v10615_v14 = vld [vmem:[%s14040_s3 + $0x3f8] sm:$0x7f] }
 0x216   : > { %v6956_v32 = vrot.slane %v13310_v20, %v12289_v23  ;;  %v6952_v58 = vrot.slane %v13310_v20, %v12298_v31  ;;  %v6964_v59 = vrot.slane %v13310_v20, %v12313_v44  ;;  %v6960_v13 = vrot.slane %v13310_v20, %v12338_v56 }
 0x217   : > { %v6968_v37 = vrot.slane %v13310_v20, %v12286_v25  ;;  %v10750_v20 = vld [vmem:[%s14040_s3 + $0x830] sm:$0xff] }
 0x218   : > { %11186 = vmatmul.mubr.f32.vlgmr.msra.gmra.mrb[0].mxu1 %v6464_v48  ;;  %v3424_v48 = vrot.slane %v13288_v4, %v12298_v31 }
 0x219   : > { %11559 = vmatpush1.bf16.xpose.msra.mxu1 %v11558_v47  ;;  %6786 = vmatprep.mubr.f32.mxu1 %v6704_v40  ;;  %v11419_v47 = vpack.c.bf16 %v10605_v24, %v10600_v30  ;;  %v10745_v40 = vld [vmem:[%s14040_s3 + $0x808] sm:$0x7f] }
 0x21a   : > { %3259 = vmatmul.mubr.f32.vlgmr.msra.gmra.mrb[20].mxu0 %v3172_v53  ;;  %11561 = vmatprep.subr.bf16.mxu1 %v11560_v49  ;;  %v3436_v49 = vrot.slane %v13288_v4, %v12313_v44  ;;  %v10607_v53 = vld [vmem:[%s14040_s3 + $0x3b8] sm:$0x7f] }
 0x21b   : > { %11409 = vmatpush1.bf16.xpose.msra.mxu0 %v11408_v52  ;;  %3328 = vmatprep.mubr.f32.mxu0 %v3184_v54  ;;  %v10602_v52 = vld [vmem:[%s14040_s3 + $0x390] sm:$0xff]  ;;  %v11573_v54 = vpack.c.bf16 %v10745_v40, %v10740_v39  ;;  %v10619_v39 = vld [vmem:[%s14040_s3 + $0x418] sm:$0xff]  ;;  %v10624_v40 = vld [vmem:[%s14040_s3 + $0x440] sm:$0x7f] }
 0x21c   : > { %11410 = vmatprep.subr.bf16.mxu0 %v12085_v12  ;;  %v7186_v4 = vld [vmem:[#allocation2 + $0x7a] ss:$8 sm:$0xf]  ;;  %v11435_v46 = vpack.c.bf16 %v10624_v40, %v10619_v39 }
 0x220   : > { %6787 = vmatmul.mubr.f32.vlgmr.msra.gmra.mrb[0].mxu1 %v6700_v63  ;;  %v10742_v63 = vld [vmem:[%s14040_s3 + $0x7f0] sm:$0xff] }
 0x221   : > { %11563 = vmatpush1.bf16.xpose.msra.mxu1 %v11562_v60  ;;  %6856 = vmatprep.mubr.f32.mxu1 %v6712_v1  ;;  %v11422_v60 = vpack.c.bf16 %v10607_v53, %v10602_v52  ;;  %v10747_v1 = vld [vmem:[%s14040_s3 + $0x818] sm:$0x7f] }
 0x222   : > { %3329 = vmatmul.mubr.f32.vlgmr.msra.gmra.mrb[20].mxu0 %v3180_v55  ;;  %11564 = vmatprep.subr.bf16.mxu1 %v12085_v12  ;;  %v10749_v55 = vld [vmem:[%s14040_s3 + $0x828] sm:$0xff]  ;;  %v11576_v61 = vpack.c.bf16 %v10747_v1, %v10742_v63  ;;  %v10623_v63 = vld [vmem:[%s14040_s3 + $0x438] sm:$0x7f] }
 0x223   : > { %11412 = vmatpush3.bf16.xpose.msra.mxu0 %v11411_v2  ;;  %11094 = vmatprep.mubr.msk.f32.mxu0 %vm12086_vm1, %v12083_v0  ;;  %v3659_v2 = vld [vmem:[#allocation2 + $0x2c] ss:$8 sm:$0x10] }
 0x224   : > { %11414 = vmatprep.subr.bf16.mxu0 %v11413_v57  ;;  %v10754_v57 = vld [vmem:[%s14040_s3 + $0x850] sm:$0x7f]  ;;  %v13378_v62 = vor.u32 %v3659_v2, %v3658_v7  ;;  %v10621_v2 = vld [vmem:[%s14040_s3 + $0x428] sm:$0xff] }
 0x226   : > { %v3684_v41 = vrot.slane %v13378_v62, %v12338_v56  ;;  %v3692_v7 = vrot.slane %v13378_v62, %v12286_v25 }
 0x228   : > { %6857 = vmatmul.mubr.f32.vlgmr.msra.gmra.mrb[0].mxu1 %v6708_v18  ;;  %v7187_v18 = vld [vmem:[#allocation2 + $0x7a] ss:$8 sm:$0x10] }
 0x229   : > { %11566 = vmatpush3.bf16.xpose.msra.mxu1 %v11565_v3  ;;  %11192 = vmatprep.mubr.msk.f32.mxu1 %vm12086_vm1, %v12083_v0  ;;  %v11578_v3 = vpack.c.bf16 %v10754_v57, %v10749_v55  ;;  %v10626_v55 = vld [vmem:[%s14040_s3 + $0x450] sm:$0x7f] }
 0x22a   : > { %11095 = vmatmul.mubr.f32.vlgmr.msra.gmra.mrb[20].mxu0 %v3188_v21  ;;  %11568 = vmatprep.subr.bf16.mxu1 %v11567_v8  ;;  %v11428_v8 = vpack.c.bf16 %v10616_v11, %v10611_v9  ;;  %v10748_v21 = vld [vmem:[%s14040_s3 + $0x820] sm:$0xff]  ;;  %v11439_v9 = vpack.c.bf16 %v10626_v55, %v10621_v2  ;;  %v10758_v11 = vld [vmem:[%s14040_s3 + $0x870] sm:$0xff]  ;;  %v7943_v2 = vld [vmem:[#allocation2 + $0x7d] ss:$8 sm:$0x10] }
 0x22b   : > { %11416 = vmatpush1.bf16.xpose.msra.mxu0 %v11415_v19  ;;  %3510 = vmatprep.mubr.f32.mxu0 %v3428_v27  ;;  %v3680_v19 = vrot.slane %v13378_v62, %v12289_v23  ;;  %v10751_v27 = vld [vmem:[%s14040_s3 + $0x838] sm:$0xff]  ;;  %v11580_v33 = vpack.c.bf16 %v10753_v22, %v10748_v21  ;;  %v10778_v55 = vld [vmem:[%s14040_s3 + $0x910] sm:$0xff] }
 0x22c   : > { %11418 = vmatprep.subr.bf16.mxu0 %v11417_v15  ;;  %v13400_v15 = vor.u32 %v7187_v18, %v7186_v4  ;;  %v11582_v30 = vpack.c.bf16 %v10756_v28, %v10751_v27  ;;  %v10620_v18 = vld [vmem:[%s14040_s3 + $0x420] sm:$0xff] }
 0x22d   : > { %v10760_v27 = vld [vmem:[%s14040_s3 + $0x880] sm:$0xff] }
 0x22e   : > { %v7208_v24 = vrot.slane %v13400_v15, %v12289_v23  ;;  %v7204_v52 = vrot.slane %v13400_v15, %v12298_v31  ;;  %v7216_v53 = vrot.slane %v13400_v15, %v12313_v44  ;;  %v7212_v57 = vrot.slane %v13400_v15, %v12338_v56 }
 0x230   : > { %11193 = vmatmul.mubr.f32.vlgmr.msra.gmra.mrb[0].mxu1 %v6716_v43  ;;  %v3676_v43 = vrot.slane %v13378_v62, %v12298_v31 }
 0x231   : > { %11570 = vmatpush1.bf16.xpose.msra.mxu1 %v11569_v42  ;;  %7038 = vmatprep.mubr.f32.mxu1 %v6956_v32  ;;  %v11430_v42 = vpack.c.bf16 %v10615_v14, %v10610_v29  ;;  %v10755_v32 = vld [vmem:[%s14040_s3 + $0x858] sm:$0x7f] }
 0x232   : > { %3511 = vmatmul.mubr.f32.vlgmr.msra.gmra.mrb[20].mxu0 %v3424_v48  ;;  %11572 = vmatprep.subr.bf16.mxu1 %v11571_v45  ;;  %v3688_v45 = vrot.slane %v13378_v62, %v12313_v44  ;;  %v10617_v48 = vld [vmem:[%s14040_s3 + $0x408] sm:$0x7f] }
 0x233   : > { %11420 = vmatpush1.bf16.xpose.msra.mxu0 %v11419_v47  ;;  %3580 = vmatprep.mubr.f32.mxu0 %v3436_v49  ;;  %v10612_v47 = vld [vmem:[%s14040_s3 + $0x3e0] sm:$0xff]  ;;  %v11584_v49 = vpack.c.bf16 %v10755_v32, %v10750_v20  ;;  %v10771_v32 = vld [vmem:[%s14040_s3 + $0x8d8] sm:$0xff] }
 0x234   : > { %11421 = vmatprep.subr.bf16.mxu0 %v12085_v12 }
 0x238   : > { %7039 = vmatmul.mubr.f32.vlgmr.msra.gmra.mrb[0].mxu1 %v6952_v58  ;;  %v10752_v58 = vld [vmem:[%s14040_s3 + $0x840] sm:$0xff] }
 0x239   : > { %11574 = vmatpush1.bf16.xpose.msra.mxu1 %v11573_v54  ;;  %7108 = vmatprep.mubr.f32.mxu1 %v6964_v59  ;;  %v11433_v54 = vpack.c.bf16 %v10617_v48, %v10612_v47  ;;  %v10757_v59 = vld [vmem:[%s14040_s3 + $0x868] sm:$0x7f]  ;;  %v10776_v47 = vld [vmem:[%s14040_s3 + $0x900] sm:$0x7f] }
 0x23a   : > { %3581 = vmatmul.mubr.f32.vlgmr.msra.gmra.mrb[20].mxu0 %v3432_v50  ;;  %11575 = vmatprep.subr.bf16.mxu1 %v12085_v12  ;;  %v10764_v50 = vld [vmem:[%s14040_s3 + $0x8a0] sm:$0x7f]  ;;  %v11587_v1 = vpack.c.bf16 %v10757_v59, %v10752_v58  ;;  %v11604_v39 = vpack.c.bf16 %v10776_v47, %v10771_v32  ;;  %v10777_v59 = vld [vmem:[%s14040_s3 + $0x908] sm:$0x7f] }
 0x23b   : > { %11423 = vmatpush3.bf16.xpose.msra.mxu0 %v11422_v60  ;;  %11101 = vmatprep.mubr.msk.f32.mxu0 %vm12086_vm1, %v12083_v0  ;;  %v10759_v60 = vld [vmem:[%s14040_s3 + $0x878] sm:$0xff]  ;;  %v10772_v58 = vld [vmem:[%s14040_s3 + $0x8e0] sm:$0xff] }
 0x23c   : > { %11425 = vmatprep.subr.bf16.mxu0 %v11424_v51  ;;  %v10618_v51 = vld [vmem:[%s14040_s3 + $0x410] sm:$0xff]  ;;  %v11589_v5 = vpack.c.bf16 %v10764_v50, %v10759_v60  ;;  %v10779_v60 = vld [vmem:[%s14040_s3 + $0x918] sm:$0xff]  ;;  %v10784_v50 = vld [vmem:[%s14040_s3 + $0x940] sm:$0x7f] }
 0x23d   : > { %v11437_v6 = vpack.c.bf16 %v10623_v63, %v10618_v51  ;;  %v11609_v51 = vpack.c.bf16 %v10777_v59, %v10772_v58  ;;  %v10792_v47 = vld [vmem:[%s14040_s3 + $0x980] sm:$0xff] }
 0x23e   : > { %v8446_v58 = vld [vmem:[#allocation2 + $0x7f] ss:$8 sm:$0xf] }
 0x240   : > { %7109 = vmatmul.mubr.f32.vlgmr.msra.gmra.mrb[0].mxu1 %v6960_v13  ;;  %v10763_v13 = vld [vmem:[%s14040_s3 + $0x898] sm:$0x7f] }
 0x241   : > { %11577 = vmatpush3.bf16.xpose.msra.mxu1 %v11576_v61  ;;  %11199 = vmatprep.mubr.msk.f32.mxu1 %vm12086_vm1, %v12083_v0  ;;  %v7439_v61 = vld [vmem:[#allocation2 + $0x7b] ss:$8 sm:$0x10] }
 0x242   : > { %11102 = vmatmul.mubr.f32.vlgmr.msra.gmra.mrb[20].mxu0 %v3440_v17  ;;  %11579 = vmatprep.subr.bf16.mxu1 %v11578_v3  ;;  %v7438_v3 = vld [vmem:[#allocation2 + $0x7b] ss:$8 sm:$0xf] }
 0x243   : > { %11427 = vmatpush1.bf16.xpose.msra.mxu0 %v11426_v16  ;;  %3762 = vmatprep.mubr.f32.mxu0 %v3680_v19  ;;  %v7440_v62 = vor.u32 %v7439_v61, %v7438_v3  ;;  %v10761_v16 = vld [vmem:[%s14040_s3 + $0x888] sm:$0xff]  ;;  %v10766_v17 = vld [vmem:[%s14040_s3 + $0x8b0] sm:$0x7f]  ;;  %v11591_v19 = vpack.c.bf16 %v10763_v13, %v10758_v11 }
 0x244   : > { %11429 = vmatprep.subr.bf16.mxu0 %v11428_v8  ;;  %v10625_v8 = vld [vmem:[%s14040_s3 + $0x448] sm:$0x7f]  ;;  %v11593_v21 = vpack.c.bf16 %v10766_v17, %v10761_v16  ;;  %v10786_v61 = vld [vmem:[%s14040_s3 + $0x950] sm:$0x7f] }
 0x245   : > { %v7460_v22 = vrot.slane %v7440_v62, %v12289_v23  ;;  %v11441_v4 = vpack.c.bf16 %v10625_v8, %v10620_v18  ;;  %v7456_v29 = vrot.slane %v7440_v62, %v12298_v31  ;;  %v7468_v14 = vrot.slane %v7440_v62, %v12313_v44  ;;  %v10785_v16 = vld [vmem:[%s14040_s3 + $0x948] sm:$0x7f] }
 0x248   : > { %11200 = vmatmul.mubr.f32.vlgmr.msra.gmra.mrb[0].mxu1 %v6968_v37  ;;  %v10774_v37 = vld [vmem:[%s14040_s3 + $0x8f0] sm:$0x7f] }
 0x249   : > { %11581 = vmatpush1.bf16.xpose.msra.mxu1 %v11580_v33  ;;  %7290 = vmatprep.mubr.f32.mxu1 %v7208_v24  ;;  %v10769_v33 = vld [vmem:[%s14040_s3 + $0x8c8] sm:$0xff]  ;;  %v7691_v24 = vld [vmem:[#allocation2 + $0x7c] ss:$8 sm:$0x10] }
 0x24a   : > { %3763 = vmatmul.mubr.f32.vlgmr.msra.gmra.mrb[20].mxu0 %v3676_v43  ;;  %11583 = vmatprep.subr.bf16.mxu1 %v11582_v30  ;;  %v11600_v30 = vpack.c.bf16 %v10774_v37, %v10769_v33  ;;  %v10773_v43 = vld [vmem:[%s14040_s3 + $0x8e8] sm:$0x7f]  ;;  %v10791_v33 = vld [vmem:[%s14040_s3 + $0x978] sm:$0xff]  ;;  %v10796_v37 = vld [vmem:[%s14040_s3 + $0x9a0] sm:$0x7f] }
 0x24b   : > { %11431 = vmatpush1.bf16.xpose.msra.mxu0 %v11430_v42  ;;  %3832 = vmatprep.mubr.f32.mxu0 %v3688_v45  ;;  %v10768_v42 = vld [vmem:[%s14040_s3 + $0x8c0] sm:$0xff] }
 0x24c   : > { %11432 = vmatprep.subr.bf16.mxu0 %v12085_v12  ;;  %v7690_v45 = vld [vmem:[#allocation2 + $0x7c] ss:$8 sm:$0xf]  ;;  %v11602_v48 = vpack.c.bf16 %v10773_v43, %v10768_v42 }
 0x24d   : > { %v7692_v20 = vor.u32 %v7691_v24, %v7690_v45  ;;  %v10790_v42 = vld [vmem:[%s14040_s3 + $0x970] sm:$0xff]  ;;  %v10795_v43 = vld [vmem:[%s14040_s3 + $0x998] sm:$0x7f] }
 0x24e   : > { %v11628_v45 = vpack.c.bf16 %v10795_v43, %v10790_v42  ;;  %v8703_v42 = vld [vmem:[%s14042_s5 + $0x30] sm:$0xff] }
 0x24f   : > { %v7712_v40 = vrot.slane %v7692_v20, %v12289_v23  ;;  %v7716_v63 = vrot.slane %v7692_v20, %v12338_v56  ;;  %v7724_v11 = vrot.slane %v7692_v20, %v12286_v25  ;;  %v8735_v43 = vld [vmem:[%s14042_s5 + $0x130] sm:$0x7f] }
 0x250   : > { %7291 = vmatmul.mubr.f32.vlgmr.msra.gmra.mrb[0].mxu1 %v7204_v52  ;;  %v10770_v52 = vld [vmem:[%s14040_s3 + $0x8d0] sm:$0xff] }
 0x251   : > { %11585 = vmatpush1.bf16.xpose.msra.mxu1 %v11584_v49  ;;  %7360 = vmatprep.mubr.f32.mxu1 %v7216_v53  ;;  %v7472_v49 = vrot.slane %v7440_v62, %v12286_v25  ;;  %v10775_v53 = vld [vmem:[%s14040_s3 + $0x8f8] sm:$0x7f] }
 0x252   : > { %3833 = vmatmul.mubr.f32.vlgmr.msra.gmra.mrb[20].mxu0 %v3684_v41  ;;  %11586 = vmatprep.subr.bf16.mxu1 %v12085_v12  ;;  %v7708_v41 = vrot.slane %v7692_v20, %v12298_v31 }
 0x253   : > { %11434 = vmatpush3.bf16.xpose.msra.mxu0 %v11433_v54  ;;  %11108 = vmatprep.mubr.msk.f32.mxu0 %vm12086_vm1, %v12083_v0  ;;  %v11606_v54 = vpack.c.bf16 %v10775_v53, %v10770_v52 }
 0x254   : > { %11436 = vmatprep.subr.bf16.mxu0 %v11435_v46  ;;  %v7720_v46 = vrot.slane %v7692_v20, %v12313_v44 }
 0x258   : > { %7361 = vmatmul.mubr.f32.vlgmr.msra.gmra.mrb[0].mxu1 %v7212_v57  ;;  %v10783_v57 = vld [vmem:[%s14040_s3 + $0x938] sm:$0x7f] }
 0x259   : > { %11588 = vmatpush3.bf16.xpose.msra.mxu1 %v11587_v1  ;;  %11206 = vmatprep.mubr.msk.f32.mxu1 %vm12086_vm1, %v12083_v0  ;;  %v11611_v1 = vpack.c.bf16 %v10784_v50, %v10779_v60  ;;  %v10801_v60 = vld [vmem:[%s14040_s3 + $0x9c8] sm:$0xff]  ;;  %v10806_v50 = vld [vmem:[%s14040_s3 + $0x9f0] sm:$0x7f] }
 0x25a   : > { %11109 = vmatmul.mubr.f32.vlgmr.msra.gmra.mrb[20].mxu0 %v3692_v7  ;;  %11590 = vmatprep.subr.bf16.mxu1 %v11589_v5  ;;  %v7942_v5 = vld [vmem:[#allocation2 + $0x7d] ss:$8 sm:$0xf] }
 0x25b   : > { %11438 = vmatpush1.bf16.xpose.msra.mxu0 %v11437_v6  ;;  %4014 = vmatprep.mubr.f32.mxu0 %v3932_v10  ;;  %v7220_v10 = vrot.slane %v13400_v15, %v12286_v25  ;;  %v10765_v15 = vld [vmem:[%s14040_s3 + $0x8a8] sm:$0x7f]  ;;  %v7944_v6 = vor.u32 %v7943_v2, %v7942_v5 }
 0x25c   : > { %11440 = vmatprep.subr.bf16.mxu0 %v11439_v9  ;;  %v11595_v28 = vpack.c.bf16 %v10765_v15, %v10760_v27  ;;  %v10781_v7 = vld [vmem:[%s14040_s3 + $0x928] sm:$0xff]  ;;  %v11613_v9 = vpack.c.bf16 %v10783_v57, %v10778_v55 }
 0x25d   : > { %v11615_v13 = vpack.c.bf16 %v10786_v61, %v10781_v7  ;;  %v7964_v3 = vrot.slane %v7944_v6, %v12289_v23  ;;  %v7960_v18 = vrot.slane %v7944_v6, %v12298_v31  ;;  %v7972_v8 = vrot.slane %v7944_v6, %v12313_v44  ;;  %v8698_v2 = vld [vmem:[%s14042_s5 + $0x8] sm:$0xff]  ;;  %v10800_v7 = vld [vmem:[%s14040_s3 + $0x9c0] sm:$0xff] }
 0x25e   : > { %v7968_v27 = vrot.slane %v7944_v6, %v12338_v56  ;;  %v8730_v55 = vld [vmem:[%s14042_s5 + $0x108] sm:$0x7f] }
 0x25f   : > { %v11644_v5 = vpack.c.bf16 %v8730_v55, %v8698_v2  ;;  %v10805_v61 = vld [vmem:[%s14040_s3 + $0x9e8] sm:$0x7f] }
 0x260   : > { %11207 = vmatmul.mubr.f32.vlgmr.msra.gmra.mrb[0].mxu1 %v7220_v10  ;;  %v10787_v10 = vld [vmem:[%s14040_s3 + $0x958] sm:$0x7f] }
 0x261   : > { %11592 = vmatpush1.bf16.xpose.msra.mxu1 %v11591_v19  ;;  %7542 = vmatprep.mubr.f32.mxu1 %v7460_v22  ;;  %v10782_v19 = vld [vmem:[%s14040_s3 + $0x930] sm:$0xff] }
 0x262   : > { %4015 = vmatmul.mubr.f32.vlgmr.msra.gmra.mrb[20].mxu0 %v3928_v34  ;;  %11594 = vmatprep.subr.bf16.mxu1 %v11593_v21  ;;  %v10762_v34 = vld [vmem:[%s14040_s3 + $0x890] sm:$0xff]  ;;  %v10789_v21 = vld [vmem:[%s14040_s3 + $0x968] sm:$0xff] }
 0x263   : > { %11442 = vmatpush1.bf16.xpose.msra.mxu0 %v11441_v4  ;;  %4084 = vmatprep.mubr.f32.mxu0 %v3940_v35  ;;  %v10767_v35 = vld [vmem:[%s14040_s3 + $0x8b8] sm:$0x7f]  ;;  %v10794_v22 = vld [vmem:[%s14040_s3 + $0x990] sm:$0x7f]  ;;  %v11620_v4 = vpack.c.bf16 %v10787_v10, %v10782_v19  ;;  %v634_v10 = vld [vmem:[%s14041_s4] sm:$0x1] }
 0x264   : > { %v11598_v38 = vpack.c.bf16 %v10767_v35, %v10762_v34  ;;  %v11622_v15 = vpack.c.bf16 %v10794_v22, %v10789_v21  ;;  %v8194_v34 = vld [vmem:[#allocation2 + $0x7e] ss:$8 sm:$0xf]  ;;  %11646 = vmatprep.subr.msk.bf16.mxu0 %vm13672_vm4, %v11644_v5 }
 0x265   : > { %v8699_v21 = vld [vmem:[%s14042_s5 + $0x10] sm:$0xff] }
 0x266   : > { %v8731_v22 = vld [vmem:[%s14042_s5 + $0x110] sm:$0x7f] }
 0x267   : > { %v8743_v5 = vld [vmem:[%s14042_s5 + $0x170] sm:$0x7f] }
 0x268   : > { %7543 = vmatmul.mubr.f32.vlgmr.msra.gmra.mrb[0].mxu1 %v7456_v29  ;;  %v10788_v29 = vld [vmem:[%s14040_s3 + $0x960] sm:$0xff] }
 0x269   : > { %11596 = vmatpush1.bf16.xpose.msra.mxu1 %v11595_v28  ;;  %7612 = vmatprep.mubr.f32.mxu1 %v7468_v14  ;;  %v8195_v28 = vld [vmem:[#allocation2 + $0x7e] ss:$8 sm:$0x10]  ;;  %v10793_v14 = vld [vmem:[%s14040_s3 + $0x988] sm:$0x7f] }
 0x26a   : > { %4085 = vmatmul.mubr.f32.vlgmr.msra.gmra.mrb[20].mxu0 %v3936_v36  ;;  %11597 = vmatprep.subr.bf16.mxu1 %v12085_v12  ;;  %v7464_v36 = vrot.slane %v7440_v62, %v12338_v56  ;;  %v10780_v62 = vld [vmem:[%s14040_s3 + $0x920] sm:$0xff]  ;;  %v8196_v35 = vor.u32 %v8195_v28, %v8194_v34 }
 0x26b   : > { %8926 = vmatprep.mubr.f32.mxu0 %v12083_v0  ;;  %v11617_v17 = vpack.c.bf16 %v10785_v16, %v10780_v62 }
 0x26c   : > { %v8216_v24 = vrot.slane %v8196_v35, %v12289_v23  ;;  %v8212_v20 = vrot.slane %v8196_v35, %v12298_v31  ;;  %v8224_v32 = vrot.slane %v8196_v35, %v12313_v44  ;;  %v8220_v52 = vrot.slane %v8196_v35, %v12338_v56 }
 0x270   : > { %7613 = vmatmul.mubr.f32.vlgmr.msra.gmra.mrb[0].mxu1 %v7464_v36  ;;  %v7976_v36 = vrot.slane %v7944_v6, %v12286_v25 }
 0x271   : > { %11599 = vmatpush3.bf16.xpose.msra.mxu1 %v11598_v38  ;;  %11213 = vmatprep.mubr.msk.f32.mxu1 %vm12086_vm1, %v12083_v0  ;;  %v11624_v38 = vpack.c.bf16 %v10793_v14, %v10788_v29  ;;  %v11653_v29 = vpack.c.bf16 %v8731_v22, %v8699_v21  ;;  %v8752_v21 = vld [vmem:[%s14042_s5 + $0x1b8] sm:$0x7f] }
 0x272   : > { %11601 = vmatprep.subr.bf16.mxu1 %v11600_v30  ;;  %v11626_v30 = vpack.c.bf16 %v10796_v37, %v10791_v33  ;;  %v8701_v33 = vld [vmem:[%s14042_s5 + $0x20] sm:$0xff] }
 0x273   : > { %v8733_v37 = vld [vmem:[%s14042_s5 + $0x120] sm:$0x7f] }
 0x278   : > { %11214 = vmatmul.mubr.f32.vlgmr.msra.gmra.mrb[0].mxu1 %v7472_v49  ;;  %v10799_v49 = vld [vmem:[%s14040_s3 + $0x9b8] sm:$0xff] }
 0x279   : > { %11603 = vmatpush1.bf16.xpose.msra.mxu1 %v11602_v48  ;;  %7794 = vmatprep.mubr.f32.mxu1 %v7712_v40  ;;  %v10797_v48 = vld [vmem:[%s14040_s3 + $0x9a8] sm:$0x7f] }
 0x27a   : > { %11605 = vmatprep.subr.bf16.mxu1 %v11604_v39  ;;  %v10804_v39 = vld [vmem:[%s14040_s3 + $0x9e0] sm:$0x7f]  ;;  %v11631_v40 = vpack.c.bf16 %v10797_v48, %v10792_v47 }
 0x27b   : > { %v11633_v53 = vpack.c.bf16 %v10804_v39, %v10799_v49  ;;  %v8705_v48 = vld [vmem:[%s14042_s5 + $0x40] sm:$0xff]  ;;  %v8708_v39 = vld [vmem:[%s14042_s5 + $0x58] sm:$0xff] }
 0x27c   : > { %v8737_v49 = vld [vmem:[%s14042_s5 + $0x140] sm:$0x7f] }
 0x280   : > { %7795 = vmatmul.mubr.f32.vlgmr.msra.gmra.mrb[0].mxu1 %v7708_v41  ;;  %v10798_v41 = vld [vmem:[%s14040_s3 + $0x9b0] sm:$0xff] }
 0x281   : > { %11607 = vmatpush1.bf16.xpose.msra.mxu1 %v11606_v54  ;;  %7864 = vmatprep.mubr.f32.mxu1 %v7720_v46  ;;  %v8447_v54 = vld [vmem:[#allocation2 + $0x7f] ss:$8 sm:$0x10]  ;;  %v10803_v46 = vld [vmem:[%s14040_s3 + $0x9d8] sm:$0x7f] }
 0x282   : > { %11608 = vmatprep.subr.bf16.mxu1 %v12085_v12  ;;  %v8448_v59 = vor.u32 %v8447_v54, %v8446_v58  ;;  %v8707_v54 = vld [vmem:[%s14042_s5 + $0x50] sm:$0xff]  ;;  %v8742_v58 = vld [vmem:[%s14042_s5 + $0x168] sm:$0x7f] }
 0x284   : > { %v8468_v57 = vrot.slane %v8448_v59, %v12289_v23  ;;  %v11639_v23 = vpack.c.bf16 %v10805_v61, %v10800_v7  ;;  %v8472_v16 = vrot.slane %v8448_v59, %v12338_v56  ;;  %v8700_v56 = vld [vmem:[%s14042_s5 + $0x18] sm:$0xff]  ;;  %v8714_v7 = vld [vmem:[%s14042_s5 + $0x88] sm:$0xff] }
 0x285   : > { %v8746_v61 = vld [vmem:[%s14042_s5 + $0x188] sm:$0x7f] }
 0x288   : > { %7865 = vmatmul.mubr.f32.vlgmr.msra.gmra.mrb[0].mxu1 %v7716_v63  ;;  %v8228_v63 = vrot.slane %v8196_v35, %v12286_v25 }
 0x289   : > { %11610 = vmatpush3.bf16.xpose.msra.mxu1 %v11609_v51  ;;  %11220 = vmatprep.mubr.msk.f32.mxu1 %vm12086_vm1, %v12083_v0  ;;  %v11635_v51 = vpack.c.bf16 %v10803_v46, %v10798_v41  ;;  %v8739_v41 = vld [vmem:[%s14042_s5 + $0x150] sm:$0x7f]  ;;  %v8710_v46 = vld [vmem:[%s14042_s5 + $0x68] sm:$0xff] }
 0x28a   : > { %11612 = vmatprep.subr.bf16.mxu1 %v11611_v1  ;;  %v11637_v1 = vpack.c.bf16 %v10806_v50, %v10801_v60  ;;  %v11680_v60 = vpack.c.bf16 %v8742_v58, %v8710_v46  ;;  %v8709_v50 = vld [vmem:[%s14042_s5 + $0x60] sm:$0xff] }
 0x290   : > { %11221 = vmatmul.mubr.f32.vlgmr.msra.gmra.mrb[0].mxu1 %v7724_v11  ;;  %v8476_v11 = vrot.slane %v8448_v59, %v12313_v44  ;;  %v8729_v44 = vld [vmem:[%s14042_s5 + $0x100] sm:$0x7f] }
 0x291   : > { %11614 = vmatpush1.bf16.xpose.msra.mxu1 %v11613_v9  ;;  %8046 = vmatprep.mubr.f32.mxu1 %v7964_v3  ;;  %v8464_v9 = vrot.slane %v8448_v59, %v12298_v31  ;;  %v10807_v3 = vld [vmem:[%s14040_s3 + $0x9f8] sm:$0x7f]  ;;  %v8480_v31 = vrot.slane %v8448_v59, %v12286_v25  ;;  %v11677_v59 = vpack.c.bf16 %v8739_v41, %v8707_v54  ;;  %v8727_v54 = vld [vmem:[%s14042_s5 + $0xf0] sm:$0xff] }
 0x292   : > { %11616 = vmatprep.subr.bf16.mxu1 %v11615_v13  ;;  %v10802_v13 = vld [vmem:[%s14040_s3 + $0x9d0] sm:$0xff] }
 0x293   : > { %v11642_v62 = vpack.c.bf16 %v10807_v3, %v10802_v13  ;;  %v8745_v13 = vld [vmem:[%s14042_s5 + $0x180] sm:$0x7f]  ;;  %v8716_v3 = vld [vmem:[%s14042_s5 + $0x98] sm:$0xff]  ;;  %v8759_v41 = vld [vmem:[%s14042_s5 + $0x1f0] sm:$0x7f] }
 0x294   : > { %v11737_v46 = vpack.c.bf16 %v8759_v41, %v8727_v54 }
 0x298   : > { %8047 = vmatmul.mubr.f32.vlgmr.msra.gmra.mrb[0].mxu1 %v7960_v18  ;;  %v8732_v18 = vld [vmem:[%s14042_s5 + $0x118] sm:$0x7f] }
 0x299   : > { %11618 = vmatpush1.bf16.xpose.msra.mxu1 %v11617_v17  ;;  %8116 = vmatprep.mubr.f32.mxu1 %v7972_v8  ;;  %v11650_v25 = vpack.c.bf16 %v8732_v18, %v8700_v56  ;;  %v8750_v56 = vld [vmem:[%s14042_s5 + $0x1a8] sm:$0x7f] }
 0x29a   : > { %11619 = vmatprep.subr.bf16.mxu1 %v12085_v12 }
 0x2a0   : > { %8117 = vmatmul.mubr.f32.vlgmr.msra.gmra.mrb[0].mxu1 %v7968_v27  ;;  %v8734_v27 = vld [vmem:[%s14042_s5 + $0x128] sm:$0x7f] }
 0x2a1   : > { %11621 = vmatpush3.bf16.xpose.msra.mxu1 %v11620_v4  ;;  %11227 = vmatprep.mubr.msk.f32.mxu1 %vm12086_vm1, %v12083_v0  ;;  %v8702_v4 = vld [vmem:[%s14042_s5 + $0x28] sm:$0xff] }
 0x2a2   : > { %11623 = vmatprep.subr.bf16.mxu1 %v11622_v15  ;;  %v11656_v35 = vpack.c.bf16 %v8734_v27, %v8702_v4  ;;  %v8719_v27 = vld [vmem:[%s14042_s5 + $0xb0] sm:$0xff] }
 0x2a8   : > { %11228 = vmatmul.mubr.f32.vlgmr.msra.gmra.mrb[0].mxu1 %v7976_v36  ;;  %v8736_v36 = vld [vmem:[%s14042_s5 + $0x138] sm:$0x7f] }
 0x2a9   : > { %11625 = vmatpush1.bf16.xpose.msra.mxu1 %v11624_v38  ;;  %8298 = vmatprep.mubr.f32.mxu1 %v8216_v24  ;;  %v8704_v38 = vld [vmem:[%s14042_s5 + $0x38] sm:$0xff] }
 0x2aa   : > { %11627 = vmatprep.subr.bf16.mxu1 %v11626_v30  ;;  %v11659_v30 = vpack.c.bf16 %v8733_v37, %v8701_v33  ;;  %v11662_v24 = vpack.c.bf16 %v8736_v36, %v8704_v38  ;;  %v8721_v33 = vld [vmem:[%s14042_s5 + $0xc0] sm:$0xff]  ;;  %v8724_v38 = vld [vmem:[%s14042_s5 + $0xd8] sm:$0xff] }
 0x2ab   : > { %v8753_v37 = vld [vmem:[%s14042_s5 + $0x1c0] sm:$0x7f]  ;;  %v8756_v36 = vld [vmem:[%s14042_s5 + $0x1d8] sm:$0x7f] }
 0x2b0   : > { %8299 = vmatmul.mubr.f32.vlgmr.msra.gmra.mrb[0].mxu1 %v8212_v20  ;;  %v8738_v20 = vld [vmem:[%s14042_s5 + $0x148] sm:$0x7f] }
 0x2b1   : > { %11629 = vmatpush1.bf16.xpose.msra.mxu1 %v11628_v45  ;;  %8368 = vmatprep.mubr.f32.mxu1 %v8224_v32  ;;  %v8706_v45 = vld [vmem:[%s14042_s5 + $0x48] sm:$0xff]  ;;  %v11665_v32 = vpack.c.bf16 %v8735_v43, %v8703_v42  ;;  %v8723_v42 = vld [vmem:[%s14042_s5 + $0xd0] sm:$0xff] }
 0x2b2   : > { %11630 = vmatprep.subr.bf16.mxu1 %v12085_v12  ;;  %v11668_v47 = vpack.c.bf16 %v8738_v20, %v8706_v45  ;;  %v8755_v43 = vld [vmem:[%s14042_s5 + $0x1d0] sm:$0x7f]  ;;  %v8726_v45 = vld [vmem:[%s14042_s5 + $0xe8] sm:$0xff] }
 0x2b3   : > { %v8758_v20 = vld [vmem:[%s14042_s5 + $0x1e8] sm:$0x7f] }
 0x2b8   : > { %8369 = vmatmul.mubr.f32.vlgmr.msra.gmra.mrb[0].mxu1 %v8220_v52  ;;  %v11671_v52 = vpack.c.bf16 %v8737_v49, %v8705_v48  ;;  %v8725_v48 = vld [vmem:[%s14042_s5 + $0xe0] sm:$0xff] }
 0x2b9   : > { %11632 = vmatpush3.bf16.xpose.msra.mxu1 %v11631_v40  ;;  %11234 = vmatprep.mubr.msk.f32.mxu1 %vm12086_vm1, %v12083_v0  ;;  %v8740_v40 = vld [vmem:[%s14042_s5 + $0x158] sm:$0x7f]  ;;  %v8757_v49 = vld [vmem:[%s14042_s5 + $0x1e0] sm:$0x7f] }
 0x2ba   : > { %11634 = vmatprep.subr.bf16.mxu1 %v11633_v53  ;;  %v11674_v53 = vpack.c.bf16 %v8740_v40, %v8708_v39  ;;  %v8728_v39 = vld [vmem:[%s14042_s5 + $0xf8] sm:$0xff] }
 0x2bb   : > { %v8760_v40 = vld [vmem:[%s14042_s5 + $0x1f8] sm:$0x7f] }
 0x2c0   : > { %11235 = vmatmul.mubr.f32.vlgmr.msra.gmra.mrb[0].mxu1 %v8228_v63  ;;  %v8712_v63 = vld [vmem:[%s14042_s5 + $0x78] sm:$0xff] }
 0x2c1   : > { %11636 = vmatpush1.bf16.xpose.msra.mxu1 %v11635_v51  ;;  %8550 = vmatprep.mubr.f32.mxu1 %v8468_v57  ;;  %v8741_v51 = vld [vmem:[%s14042_s5 + $0x160] sm:$0x7f]  ;;  %v8711_v57 = vld [vmem:[%s14042_s5 + $0x70] sm:$0xff] }
 0x2c2   : > { %11638 = vmatprep.subr.bf16.mxu1 %v11637_v1  ;;  %v8744_v1 = vld [vmem:[%s14042_s5 + $0x178] sm:$0x7f]  ;;  %v11683_v2 = vpack.c.bf16 %v8741_v51, %v8709_v50 }
 0x2c3   : > { %v11686_v55 = vpack.c.bf16 %v8744_v1, %v8712_v63 }
 0x2c8   : > { %8551 = vmatmul.mubr.f32.vlgmr.msra.gmra.mrb[0].mxu1 %v8464_v9  ;;  %v11692_v9 = vpack.c.bf16 %v8746_v61, %v8714_v7 }
 0x2c9   : > { %11640 = vmatpush1.bf16.xpose.msra.mxu1 %v11639_v23  ;;  %8620 = vmatprep.mubr.f32.mxu1 %v8476_v11  ;;  %v11689_v23 = vpack.c.bf16 %v8743_v5, %v8711_v57  ;;  %v8713_v11 = vld [vmem:[%s14042_s5 + $0x80] sm:$0xff] }
 0x2ca   : > { %11641 = vmatprep.subr.bf16.mxu1 %v12085_v12  ;;  %v8697_v12 = vld [vmem:[%s14042_s5] sm:$0xff] }
 0x2cb   : > { %v11647_v17 = vpack.c.bf16 %v8729_v44, %v8697_v12  ;;  %v8715_v12 = vld [vmem:[%s14042_s5 + $0x90] sm:$0xff] }
 0x2cc   : > { %v8747_v44 = vld [vmem:[%s14042_s5 + $0x190] sm:$0x7f] }
 0x2cd   : > { %11649 = vmatpush1.bf16.msk.msra.mxu0 %vm13672_vm4, %v11647_v17  ;;  %v8718_v17 = vld [vmem:[%s14042_s5 + $0xa8] sm:$0xff]  ;;  %v11701_v18 = vpack.c.bf16 %v8747_v44, %v8715_v12 }
 0x2ce   : > { %11652 = vmatprep.subr.msk.bf16.mxu0 %vm13672_vm4, %v11650_v25  ;;  %v11704_v25 = vpack.c.bf16 %v8750_v56, %v8718_v17 }
 0x2d0   : > { %8621 = vmatmul.mubr.f32.vlgmr.msra.gmra.mrb[0].mxu1 %v8472_v16  ;;  %v11695_v16 = vpack.c.bf16 %v8745_v13, %v8713_v11 }
 0x2d1   : > { %11643 = vmatpush3.bf16.xpose.msra.mxu1 %v11642_v62  ;;  %11241 = vmatprep.mubr.msk.f32.mxu1 %vm12086_vm1, %v12083_v0  ;;  %v8748_v62 = vld [vmem:[%s14042_s5 + $0x198] sm:$0x7f] }
 0x2d8   : > { %11242 = vmatmul.mubr.f32.vlgmr.msra.gmra.mrb[0].mxu1 %v8480_v31  ;;  %v11698_v31 = vpack.c.bf16 %v8748_v62, %v8716_v3 }
 0x33d   : > { %v4086_v8 = vpop.f32.mrb[20].mxu0 }
 0x33e   : > { %v4088_v19 = vpop.f32.mrb[21].mxu0  ;;  %v11740_v15 = vadd.f32 %v4086_v8, %v634_v10  ;;  %v8717_v8 = vld [vmem:[%s14042_s5 + $0xa0] sm:$0xff]  ;;  %v8720_v10 = vld [vmem:[%s14042_s5 + $0xb8] sm:$0xff] }
 0x33f   : > { %v8749_v19 = vld [vmem:[%s14042_s5 + $0x1a0] sm:$0x7f]  ;;  %v11710_v4 = vpack.c.bf16 %v8752_v21, %v8720_v10 }
 0x340   : > { %v11707_v22 = vpack.c.bf16 %v8749_v19, %v8717_v8  ;;  %v12088_v8 = vmov 1966171168  }
 0x341   : > { %v10227_v19 = vunpack.c.l.s4 %v12088_v8 }
 0x3ab   : > { %v8692_v28 = vpop.f32.mrb[0].mxu1 }
 0x3ac   : > { %v13728_v14 = vadd.f32 %v11740_v15, %v8692_v28  ;;  %v11243_v34 = vpop.f32.mrb[1].mxu1  ;;  %v8751_v15 = vld [vmem:[%s14042_s5 + $0x1b0] sm:$0x7f]  ;;  %v8722_v28 = vld [vmem:[%s14042_s5 + $0xc8] sm:$0xff] }
 0x3ad   : > { %v11713_v34 = vpack.c.bf16 %v8751_v15, %v8719_v27 }
 0x3ae   : > { %10810 = vmatmul.mubr.msk.f32.vlgmr.msra.gmra.mrb[22].mxu0 %vm8761_vm5, %v13728_v14 }
 0x3af   : > { %11655 = vmatpush1.bf16.msk.msra.mxu0 %vm13672_vm4, %v11653_v29  ;;  %8997 = vmatprep.mubr.f32.mxu0 %v12083_v0  ;;  %v8754_v29 = vld [vmem:[%s14042_s5 + $0x1c8] sm:$0x7f] }
 0x3b0   : > { %11658 = vmatprep.subr.msk.bf16.mxu0 %vm13672_vm4, %v11656_v35  ;;  %v11716_v35 = vpack.c.bf16 %v8754_v29, %v8722_v28 }
 0x3b2   : > { %10813 = vmatmul.mubr.msk.f32.vlgmr.msra.gmra.mrb[24].mxu0 %vm8761_vm5, %v13728_v14 }
 0x3b3   : > { %11661 = vmatpush1.bf16.msk.msra.mxu0 %vm13672_vm4, %v11659_v30  ;;  %9068 = vmatprep.mubr.f32.mxu0 %v12083_v0  ;;  %v11719_v30 = vpack.c.bf16 %v8753_v37, %v8721_v33 }
 0x3b4   : > { %11664 = vmatprep.subr.msk.bf16.mxu0 %vm13672_vm4, %v11662_v24  ;;  %v11722_v24 = vpack.c.bf16 %v8756_v36, %v8724_v38 }
 0x3b6   : > { %10816 = vmatmul.mubr.msk.f32.vlgmr.msra.gmra.mrb[26].mxu0 %vm8761_vm5, %v13728_v14 }
 0x3b7   : > { %11667 = vmatpush1.bf16.msk.msra.mxu0 %vm13672_vm4, %v11665_v32  ;;  %9139 = vmatprep.mubr.f32.mxu0 %v12083_v0  ;;  %v11725_v32 = vpack.c.bf16 %v8755_v43, %v8723_v42 }
 0x3b8   : > { %11670 = vmatprep.subr.msk.bf16.mxu0 %vm13672_vm4, %v11668_v47  ;;  %v11728_v47 = vpack.c.bf16 %v8758_v20, %v8726_v45 }
 0x3ba   : > { %10819 = vmatmul.mubr.msk.f32.vlgmr.msra.gmra.mrb[28].mxu0 %vm8761_vm5, %v13728_v14 }
 0x3bb   : > { %11673 = vmatpush1.bf16.msk.msra.mxu0 %vm13672_vm4, %v11671_v52  ;;  %9210 = vmatprep.mubr.f32.mxu0 %v12083_v0  ;;  %v11731_v52 = vpack.c.bf16 %v8757_v49, %v8725_v48 }
 0x3bc   : > { %11676 = vmatprep.subr.msk.bf16.mxu0 %vm13672_vm4, %v11674_v53  ;;  %v11734_v53 = vpack.c.bf16 %v8760_v40, %v8728_v39 }
 0x3be   : > { %10822 = vmatmul.mubr.msk.f32.vlgmr.msra.gmra.mrb[30].mxu0 %vm8761_vm5, %v13728_v14 }
 0x3bf   : > { %11679 = vmatpush1.bf16.msk.msra.mxu0 %vm13672_vm4, %v11677_v59  ;;  %9281 = vmatprep.mubr.f32.mxu0 %v12083_v0 }
 0x3c0   : > { %11682 = vmatprep.subr.msk.bf16.mxu0 %vm13672_vm4, %v11680_v60 }
 0x3c2   : > { %10825 = vmatmul.mubr.msk.f32.vlgmr.msra.gmra.mrb[32].mxu0 %vm8761_vm5, %v13728_v14 }
 0x3c3   : > { %11685 = vmatpush1.bf16.msk.msra.mxu0 %vm13672_vm4, %v11683_v2  ;;  %9352 = vmatprep.mubr.f32.mxu0 %v12083_v0 }
 0x3c4   : > { %11688 = vmatprep.subr.msk.bf16.mxu0 %vm13672_vm4, %v11686_v55 }
 0x3c6   : > { %10828 = vmatmul.mubr.msk.f32.vlgmr.msra.gmra.mrb[34].mxu0 %vm8761_vm5, %v13728_v14 }
 0x3c7   : > { %11691 = vmatpush1.bf16.msk.msra.mxu0 %vm13672_vm4, %v11689_v23  ;;  %9423 = vmatprep.mubr.f32.mxu0 %v12083_v0 }
 0x3c8   : > { %11694 = vmatprep.subr.msk.bf16.mxu0 %vm13672_vm4, %v11692_v9 }
 0x3ca   : > { %10831 = vmatmul.mubr.msk.f32.vlgmr.msra.gmra.mrb[36].mxu0 %vm8761_vm5, %v13728_v14 }
 0x3cb   : > { %11697 = vmatpush1.bf16.msk.msra.mxu0 %vm13672_vm4, %v11695_v16  ;;  %9494 = vmatprep.mubr.f32.mxu0 %v12083_v0 }
 0x3cc   : > { %11700 = vmatprep.subr.msk.bf16.mxu0 %vm13672_vm4, %v11698_v31 }
 0x3ce   : > { %10834 = vmatmul.mubr.msk.f32.vlgmr.msra.gmra.mrb[38].mxu0 %vm8761_vm5, %v13728_v14 }
 0x3cf   : > { %11703 = vmatpush1.bf16.msk.msra.mxu0 %vm13672_vm4, %v11701_v18  ;;  %9565 = vmatprep.mubr.f32.mxu0 %v12083_v0 }
 0x3d0   : > { %11706 = vmatprep.subr.msk.bf16.mxu0 %vm13672_vm4, %v11704_v25 }
 0x3d2   : > { %10837 = vmatmul.mubr.msk.f32.vlgmr.msra.gmra.mrb[40].mxu0 %vm8761_vm5, %v13728_v14 }
 0x3d3   : > { %11709 = vmatpush1.bf16.msk.msra.mxu0 %vm13672_vm4, %v11707_v22  ;;  %9636 = vmatprep.mubr.f32.mxu0 %v12083_v0 }
 0x3d4   : > { %11712 = vmatprep.subr.msk.bf16.mxu0 %vm13672_vm4, %v11710_v4 }
 0x3d6   : > { %10840 = vmatmul.mubr.msk.f32.vlgmr.msra.gmra.mrb[42].mxu0 %vm8761_vm5, %v13728_v14 }
 0x3d7   : > { %11715 = vmatpush1.bf16.msk.msra.mxu0 %vm13672_vm4, %v11713_v34  ;;  %9707 = vmatprep.mubr.f32.mxu0 %v12083_v0  ;;  %v10228_v34 = vunpack.c.0.s8 %v10227_v19 }
 0x3d8   : > { %11718 = vmatprep.subr.msk.bf16.mxu0 %vm13672_vm4, %v11716_v35 }
 0x3d9   : > { %v13998_v20 = vsub.s32 %v10228_v34, %v12283_v26 }
 0x3da   : > { %10843 = vmatmul.mubr.msk.f32.vlgmr.msra.gmra.mrb[44].mxu0 %vm8761_vm5, %v13728_v14 }
 0x3db   : > { %11721 = vmatpush1.bf16.msk.msra.mxu0 %vm13672_vm4, %v11719_v30  ;;  %9778 = vmatprep.mubr.f32.mxu0 %v12083_v0 }
 0x3dc   : > { %11724 = vmatprep.subr.msk.bf16.mxu0 %vm13672_vm4, %v11722_v24 }
 0x3de   : > { %10846 = vmatmul.mubr.msk.f32.vlgmr.msra.gmra.mrb[46].mxu0 %vm8761_vm5, %v13728_v14 }
 0x3df   : > { %11727 = vmatpush1.bf16.msk.msra.mxu0 %vm13672_vm4, %v11725_v32  ;;  %9849 = vmatprep.mubr.f32.mxu0 %v12083_v0 }
 0x3e0   : > { %11730 = vmatprep.subr.msk.bf16.mxu0 %vm13672_vm4, %v11728_v47 }
 0x3e2   : > { %10849 = vmatmul.mubr.msk.f32.vlgmr.msra.gmra.mrb[48].mxu0 %vm8761_vm5, %v13728_v14 }
 0x3e3   : > { %11733 = vmatpush1.bf16.msk.msra.mxu0 %vm13672_vm4, %v11731_v52  ;;  %9920 = vmatprep.mubr.f32.mxu0 %v12083_v0 }
 0x3e4   : > { %11736 = vmatprep.subr.msk.bf16.mxu0 %vm13672_vm4, %v11734_v53 }
 0x3e6   : > { %10852 = vmatmul.mubr.msk.f32.vlgmr.msra.gmra.mrb[50].mxu0 %vm8761_vm5, %v13728_v14 }
 0x3e7   : > { %11739 = vmatpush1.bf16.msk.msra.mxu0 %vm13672_vm4, %v11737_v46  ;;  %9991 = vmatprep.mubr.f32.mxu0 %v12083_v0 }
 0x3ea   : > { %10855 = vmatmul.mubr.msk.f32.vlgmr.msra.gmra.mrb[52].mxu0 %vm8761_vm5, %v13728_v14 }
 0x481   : > { %v8928_v58 = vpop.f32.mrb[22].mxu0 }
 0x482   : > { %v10856_v59 = vmul.f32 -1.442695, %v8928_v58  ;;  %v8930_v60 = vpop.f32.mrb[23].mxu0 }
 0x483   : > { %v10857_v50 = vmul.f32 -1.442695, %v8930_v60 }
 0x484   : > { %11947 = vpow2.f32 %v10856_v59 }
 0x485   : > { %11949 = vpow2.f32 %v10857_v50  ;;  %v8999_v51 = vpop.f32.mrb[24].mxu0 }
 0x486   : > { %v10858_v63 = vmul.f32 -1.442695, %v8999_v51  ;;  %v9001_v1 = vpop.f32.mrb[25].mxu0 }
 0x487   : > { %v10859_v2 = vmul.f32 -1.442695, %v9001_v1 }
 0x488   : > { %11951 = vpow2.f32 %v10858_v63 }
 0x489   : > { %11953 = vpow2.f32 %v10859_v2  ;;  %v9070_v55 = vpop.f32.mrb[26].mxu0 }
 0x48a   : > { %v10860_v6 = vmul.f32 -1.442695, %v9070_v55  ;;  %v9072_v57 = vpop.f32.mrb[27].mxu0 }
 0x48b   : > { %v10861_v5 = vmul.f32 -1.442695, %v9072_v57 }
 0x48c   : > { %11955 = vpow2.f32 %v10860_v6 }
 0x48d   : > { %11957 = vpow2.f32 %v10861_v5  ;;  %v9141_v0 = vpop.f32.mrb[28].mxu0 }
 0x48e   : > { %v11948_v14 = vpop.eup %11947  ;;  %v10862_v7 = vmul.f32 -1.442695, %v9141_v0  ;;  %v9143_v61 = vpop.f32.mrb[29].mxu0 }
 0x48f   : > { %v11950_v23 = vpop.eup %11949  ;;  %v10094_v9 = vadd.f32 1.0, %v11948_v14  ;;  %v10863_v11 = vmul.f32 -1.442695, %v9143_v61 }
 0x490   : > { %v10095_v13 = vadd.f32 1.0, %v11950_v23  ;;  %11959 = vpow2.f32 %v10862_v7 }
 0x491   : > { %11961 = vrcp.f32 %v10094_v9  ;;  %v9212_v3 = vpop.f32.mrb[30].mxu0 }
 0x492   : > { %v11952_v62 = vpop.eup %11951  ;;  %11963 = vrcp.f32 %v10095_v13  ;;  %v10864_v16 = vmul.f32 -1.442695, %v9212_v3  ;;  %v9214_v31 = vpop.f32.mrb[31].mxu0 }
 0x493   : > { %v11954_v12 = vpop.eup %11953  ;;  %v10096_v44 = vadd.f32 1.0, %v11952_v62  ;;  %11965 = vpow2.f32 %v10863_v11  ;;  %v10865_v17 = vmul.f32 -1.442695, %v9214_v31 }
 0x494   : > { %v10097_v56 = vadd.f32 1.0, %v11954_v12  ;;  %11967 = vpow2.f32 %v10864_v16 }
 0x495   : > { %11969 = vrcp.f32 %v10096_v44  ;;  %v9283_v18 = vpop.f32.mrb[32].mxu0 }
 0x496   : > { %v11956_v25 = vpop.eup %11955  ;;  %11971 = vrcp.f32 %v10097_v56  ;;  %v10866_v10 = vmul.f32 -1.442695, %v9283_v18  ;;  %v9285_v21 = vpop.f32.mrb[33].mxu0 }
 0x497   : > { %v11958_v22 = vpop.eup %11957  ;;  %v10098_v4 = vadd.f32 1.0, %v11956_v25  ;;  %11973 = vpow2.f32 %v10865_v17  ;;  %v10867_v27 = vmul.f32 -1.442695, %v9285_v21 }
 0x498   : > { %v10099_v15 = vadd.f32 1.0, %v11958_v22  ;;  %11975 = vpow2.f32 %v10866_v10 }
 0x499   : > { %11977 = vrcp.f32 %v10098_v4  ;;  %v9354_v28 = vpop.f32.mrb[34].mxu0 }
 0x49a   : > { %v11960_v29 = vpop.eup %11959  ;;  %11979 = vrcp.f32 %v10099_v15  ;;  %v10868_v35 = vmul.f32 -1.442695, %v9354_v28  ;;  %v9356_v33 = vpop.f32.mrb[35].mxu0 }
 0x49b   : > { %v11962_v37 = vpop.eup %11961  ;;  %v10100_v38 = vadd.f32 1.0, %v11960_v29  ;;  %11981 = vpow2.f32 %v10867_v27  ;;  %v10869_v36 = vmul.f32 -1.442695, %v9356_v33 }
 0x49c   : > { %v11964_v30 = vpop.eup %11963  ;;  %11983 = vpow2.f32 %v10868_v35 }
 0x49d   : > { %v11966_v24 = vpop.eup %11965  ;;  %v10222_v42 = vcombine.low %v11962_v37, %v11964_v30  ;;  %11985 = vrcp.f32 %v10100_v38  ;;  %v9425_v43 = vpop.f32.mrb[36].mxu0 }
 0x49e   : > { %v11968_v45 = vpop.eup %11967  ;;  %v10101_v32 = vadd.f32 1.0, %v11966_v24  ;;  %11987 = vpow2.f32 %v10869_v36  ;;  %v10870_v47 = vmul.f32 -1.442695, %v9425_v43  ;;  %v9427_v48 = vpop.f32.mrb[37].mxu0 }
 0x49f   : > { %v11970_v49 = vpop.eup %11969  ;;  %v10102_v39 = vadd.f32 1.0, %v11968_v45  ;;  %v10871_v40 = vmul.f32 -1.442695, %v9427_v48  ;;  %v10232_v58 = vrot.slane %v10222_v42, %v13998_v20 }
 0x4a0   : > { %v11972_v52 = vpop.eup %11971  ;;  %11989 = vrcp.f32 %v10101_v32 }
 0x4a1   : > { %v11974_v53 = vpop.eup %11973  ;;  %v10223_v54 = vcombine.low %v11970_v49, %v11972_v52  ;;  %11991 = vrcp.f32 %v10102_v39  ;;  %v9496_v41 = vpop.f32.mrb[38].mxu0 }
 0x4a2   : > { %v11976_v46 = vpop.eup %11975  ;;  %v10103_v59 = vadd.f32 1.0, %v11974_v53  ;;  %11993 = vpow2.f32 %v10870_v47  ;;  %v10872_v26 = vmul.f32 -1.442695, %v9496_v41  ;;  %v9498_v60 = vpop.f32.mrb[39].mxu0 }
 0x4a3   : > { %v11978_v50 = vpop.eup %11977  ;;  %v10239_v51 = vrot.slane %v10223_v54, %v13998_v20  ;;  %v10104_v63 = vadd.f32 1.0, %v11976_v46  ;;  %11995 = vpow2.f32 %v10871_v40  ;;  %v10873_v1 = vmul.f32 -1.442695, %v9498_v60 }
 0x4a4   : > { %v11980_v2 = vpop.eup %11979  ;;  %11997 = vrcp.f32 %v10103_v59 }
 0x4a5   : > { %v11982_v55 = vpop.eup %11981  ;;  %v10254_v6 = vcombine.low %v10232_v58, %v10239_v51  ;;  %v10224_v57 = vcombine.low %v11978_v50, %v11980_v2  ;;  %11999 = vrcp.f32 %v10104_v63  ;;  %v9567_v5 = vpop.f32.mrb[40].mxu0 }
 0x4a6   : > { %v11984_v0 = vpop.eup %11983  ;;  %v10105_v14 = vadd.f32 1.0, %v11982_v55  ;;  %12001 = vpow2.f32 %v10872_v26  ;;  %v10874_v7 = vmul.f32 -1.442695, %v9567_v5  ;;  %v9569_v61 = vpop.f32.mrb[41].mxu0 }
 0x4a7   : > { %v11986_v23 = vpop.eup %11985  ;;  %v10106_v9 = vadd.f32 1.0, %v11984_v0  ;;  %12003 = vpow2.f32 %v10873_v1  ;;  %v10875_v13 = vmul.f32 -1.442695, %v9569_v61  ;;  %v10246_v8 = vrot.slane %v10224_v57, %v13998_v20 }
 0x4a8   : > { %v11988_v11 = vpop.eup %11987  ;;  %12005 = vrcp.f32 %v10105_v14  ;;  %v10262_v38 = vrot.slane %v10254_v6, %v13998_v20 }
 0x4a9   : > { %12007 = vrcp.f32 %v10106_v9  ;;  %v10107_v3 = vadd.f32 1.0, %v11988_v11  ;;  %v9638_v62 = vpop.f32.mrb[42].mxu0 }
 0x4aa   : > { %v11990_v16 = vpop.eup %11989  ;;  %12009 = vpow2.f32 %v10874_v7  ;;  %v10876_v31 = vmul.f32 -1.442695, %v9638_v62  ;;  %v9640_v12 = vpop.f32.mrb[43].mxu0 }
 0x4ab   : > { %v11992_v44 = vpop.eup %11991  ;;  %v10225_v17 = vcombine.low %v11986_v23, %v11990_v16  ;;  %12011 = vrcp.f32 %v10107_v3  ;;  %v10877_v56 = vmul.f32 -1.442695, %v9640_v12 }
 0x4ac   : > { %v11994_v18 = vpop.eup %11993  ;;  %12013 = vpow2.f32 %v10875_v13 }
 0x4ad   : > { %v11996_v25 = vpop.eup %11995  ;;  %v10253_v19 = vrot.slane %v10225_v17, %v13998_v20  ;;  %v10108_v10 = vadd.f32 1.0, %v11994_v18  ;;  %12015 = vpow2.f32 %v10876_v31  ;;  %v9709_v21 = vpop.f32.mrb[44].mxu0 }
 0x4ae   : > { %v11998_v22 = vpop.eup %11997  ;;  %v10109_v4 = vadd.f32 1.0, %v11996_v25  ;;  %12017 = vpow2.f32 %v10877_v56  ;;  %v10878_v27 = vmul.f32 -1.442695, %v9709_v21  ;;  %v9711_v15 = vpop.f32.mrb[45].mxu0 }
 0x4af   : > { %v12000_v28 = vpop.eup %11999  ;;  %v10255_v29 = vcombine.low %v10246_v8, %v10253_v19  ;;  %v10271_v34 = vcombine.low %v11992_v44, %v11998_v22  ;;  %12019 = vrcp.f32 %v10108_v10  ;;  %v10879_v35 = vmul.f32 -1.442695, %v9711_v15 }
 0x4b0   : > { %v12002_v33 = vpop.eup %12001  ;;  %12021 = vrcp.f32 %v10109_v4 }
 0x4b1   : > { %v12004_v37 = vpop.eup %12003  ;;  %v10269_v36 = vrot.slane %v10255_v29, %v13998_v20  ;;  %v10110_v30 = vadd.f32 1.0, %v12002_v33  ;;  %12023 = vpow2.f32 %v10878_v27  ;;  %v9780_v24 = vpop.f32.mrb[46].mxu0  ;;  %v10281_v53 = vrot.slane %v10271_v34, %v13998_v20 }
 0x4b2   : > { %v12006_v42 = vpop.eup %12005  ;;  %v10111_v43 = vadd.f32 1.0, %v12004_v37  ;;  %12025 = vpow2.f32 %v10879_v35  ;;  %v10880_v45 = vmul.f32 -1.442695, %v9780_v24  ;;  %v9782_v32 = vpop.f32.mrb[47].mxu0 }
 0x4b3   : > { %v12008_v47 = vpop.eup %12007  ;;  %v10270_v48 = vcombine.low %v10262_v38, %v10269_v36  ;;  %v10272_v49 = vcombine.low %v12000_v28, %v12006_v42  ;;  %12027 = vrcp.f32 %v10110_v30  ;;  %v10881_v39 = vmul.f32 -1.442695, %v9782_v32 }
 0x4b4   : > { %v12010_v40 = vpop.eup %12009  ;;  %12029 = vrcp.f32 %v10111_v43 }
 0x4b5   : > { %v12012_v52 = vpop.eup %12011  ;;  %10422 = vst [vmem:[%s14010_s24] sm:$0xff] %v10270_v48  ;;  %v10288_v54 = vrot.slane %v10272_v49, %v13998_v20  ;;  %v10112_v41 = vadd.f32 1.0, %v12010_v40  ;;  %12031 = vpow2.f32 %v10880_v45  ;;  %v9851_v46 = vpop.f32.mrb[48].mxu0 }
 0x4b6   : > { %v12014_v58 = vpop.eup %12013  ;;  %v10273_v59 = vcombine.low %v12008_v47, %v12012_v52  ;;  %12033 = vpow2.f32 %v10881_v39  ;;  %v10882_v26 = vmul.f32 -1.442695, %v9851_v46  ;;  %v9853_v60 = vpop.f32.mrb[49].mxu0 }
 0x4b7   : > { %v12016_v50 = vpop.eup %12015  ;;  %v10303_v51 = vcombine.low %v10281_v53, %v10288_v54  ;;  %12035 = vrcp.f32 %v10112_v41  ;;  %v10113_v63 = vadd.f32 1.0, %v12014_v58  ;;  %v10883_v55 = vmul.f32 -1.442695, %v9853_v60 }
 0x4b8   : > { %v12018_v1 = vpop.eup %12017  ;;  %v10114_v2 = vadd.f32 1.0, %v12016_v50  ;;  %12037 = vpow2.f32 %v10882_v26  ;;  %v10295_v62 = vrot.slane %v10273_v59, %v13998_v20 }
 0x4b9   : > { %v12020_v6 = vpop.eup %12019  ;;  %12039 = vrcp.f32 %v10113_v63  ;;  %v10115_v57 = vadd.f32 1.0, %v12018_v1  ;;  %v9922_v5 = vpop.f32.mrb[50].mxu0  ;;  %v10311_v4 = vrot.slane %v10303_v51, %v13998_v20 }
 0x4ba   : > { %v12022_v0 = vpop.eup %12021  ;;  %12041 = vrcp.f32 %v10114_v2  ;;  %v10884_v14 = vmul.f32 -1.442695, %v9922_v5  ;;  %v9924_v7 = vpop.f32.mrb[51].mxu0 }
 0x4bb   : > { %v12024_v61 = vpop.eup %12023  ;;  %v10274_v23 = vcombine.low %v12020_v6, %v12022_v0  ;;  %12043 = vrcp.f32 %v10115_v57  ;;  %v10885_v13 = vmul.f32 -1.442695, %v9924_v7 }
 0x4bc   : > { %v12026_v9 = vpop.eup %12025  ;;  %v10116_v11 = vadd.f32 1.0, %v12024_v61  ;;  %12045 = vpow2.f32 %v10883_v55 }
 0x4bd   : > { %v12028_v3 = vpop.eup %12027  ;;  %v10302_v16 = vrot.slane %v10274_v23, %v13998_v20  ;;  %v10117_v31 = vadd.f32 1.0, %v12026_v9  ;;  %12047 = vpow2.f32 %v10884_v14  ;;  %v9993_v12 = vpop.f32.mrb[52].mxu0 }
 0x4be   : > { %v12030_v44 = vpop.eup %12029  ;;  %12049 = vrcp.f32 %v10116_v11  ;;  %v10886_v17 = vmul.f32 -1.442695, %v9993_v12  ;;  %v9995_v56 = vpop.f32.mrb[53].mxu0 }
 0x4bf   : > { %v12032_v18 = vpop.eup %12031  ;;  %v10304_v25 = vcombine.low %v10295_v62, %v10302_v16  ;;  %v10320_v8 = vcombine.low %v12028_v3, %v12030_v44  ;;  %12051 = vrcp.f32 %v10117_v31  ;;  %v10887_v21 = vmul.f32 -1.442695, %v9995_v56 }
 0x4c0   : > { %v12034_v19 = vpop.eup %12033  ;;  %v10118_v10 = vadd.f32 1.0, %v12032_v18  ;;  %12053 = vpow2.f32 %v10885_v13 }
 0x4c1   : > { %v12036_v22 = vpop.eup %12035  ;;  %v10318_v27 = vrot.slane %v10304_v25, %v13998_v20  ;;  %v10119_v15 = vadd.f32 1.0, %v12034_v19  ;;  %12055 = vpow2.f32 %v10886_v17  ;;  %v10330_v30 = vrot.slane %v10320_v8, %v13998_v20 }
 0x4c2   : > { %v12038_v28 = vpop.eup %12037  ;;  %12057 = vrcp.f32 %v10118_v10 }
 0x4c3   : > { %v12040_v29 = vpop.eup %12039  ;;  %v10319_v34 = vcombine.low %v10311_v4, %v10318_v27  ;;  %12059 = vrcp.f32 %v10119_v15  ;;  %v10120_v35 = vadd.f32 1.0, %v12038_v28 }
 0x4c4   : > { %v12042_v33 = vpop.eup %12041  ;;  %v10321_v37 = vcombine.low %v12036_v22, %v12040_v29  ;;  %12061 = vpow2.f32 %v10887_v21 }
 0x4c5   : > { %v12044_v38 = vpop.eup %12043  ;;  %10423 = vst [vmem:[%s14010_s24 + $0x8] sm:$0xff] %v10319_v34  ;;  %12063 = vrcp.f32 %v10120_v35 }
 0x4c6   : > { %v12046_v36 = vpop.eup %12045  ;;  %v10337_v24 = vrot.slane %v10321_v37, %v13998_v20  ;;  %v10322_v42 = vcombine.low %v12042_v33, %v12044_v38 }
 0x4c7   : > { %v12048_v43 = vpop.eup %12047  ;;  %v10121_v45 = vadd.f32 1.0, %v12046_v36 }
 0x4c8   : > { %v12050_v32 = vpop.eup %12049  ;;  %v10352_v47 = vcombine.low %v10330_v30, %v10337_v24  ;;  %v10122_v48 = vadd.f32 1.0, %v12048_v43  ;;  %v10344_v41 = vrot.slane %v10322_v42, %v13998_v20 }
 0x4c9   : > { %v12052_v49 = vpop.eup %12051  ;;  %12065 = vrcp.f32 %v10121_v45 }
 0x4ca   : > { %v12054_v39 = vpop.eup %12053  ;;  %v10323_v40 = vcombine.low %v12050_v32, %v12052_v49  ;;  %12067 = vrcp.f32 %v10122_v48  ;;  %v10360_v63 = vrot.slane %v10352_v47, %v13998_v20 }
 0x4cb   : > { %v12056_v52 = vpop.eup %12055  ;;  %v10123_v53 = vadd.f32 1.0, %v12054_v39 }
 0x4cc   : > { %v12058_v54 = vpop.eup %12057  ;;  %v10351_v46 = vrot.slane %v10323_v40, %v13998_v20  ;;  %v10124_v58 = vadd.f32 1.0, %v12056_v52 }
 0x4cd   : > { %v12060_v59 = vpop.eup %12059  ;;  %12069 = vrcp.f32 %v10123_v53 }
 0x4ce   : > { %v12062_v26 = vpop.eup %12061  ;;  %v10353_v60 = vcombine.low %v10344_v41, %v10351_v46  ;;  %v10369_v50 = vcombine.low %v12058_v54, %v12060_v59  ;;  %12071 = vrcp.f32 %v10124_v58 }
 0x4cf   : > { %v10125_v51 = vadd.f32 1.0, %v12062_v26  ;;  %v12064_v2 = vpop.eup %12063 }
 0x4d0   : > { %v10367_v1 = vrot.slane %v10353_v60, %v13998_v20  ;;  %v10379_v0 = vrot.slane %v10369_v50, %v13998_v20 }
 0x4d1   : > { %12073 = vrcp.f32 %v10125_v51 }
 0x4d2   : > { %v10368_v55 = vcombine.low %v10360_v63, %v10367_v1 }
 0x4d3   : > { %v12066_v6 = vpop.eup %12065 }
 0x4d4   : > { %10424 = vst [vmem:[%s14010_s24 + $0x10] sm:$0xff] %v10368_v55  ;;  %v10370_v57 = vcombine.low %v12064_v2, %v12066_v6  ;;  %v12068_v5 = vpop.eup %12067 }
 0x4d6   : > { %v10386_v14 = vrot.slane %v10370_v57, %v13998_v20 }
 0x4d7   : > { %v12070_v7 = vpop.eup %12069 }
 0x4d8   : > { %v10401_v61 = vcombine.low %v10379_v0, %v10386_v14  ;;  %v10371_v23 = vcombine.low %v12068_v5, %v12070_v7  ;;  %v12072_v9 = vpop.eup %12071 }
 0x4da   : > { %v10393_v3 = vrot.slane %v10371_v23, %v13998_v20  ;;  %v10409_v31 = vrot.slane %v10401_v61, %v13998_v20 }
 0x4db   : > { %v12074_v11 = vpop.eup %12073 }
 0x4dc   : > { %v10372_v13 = vcombine.low %v12072_v9, %v12074_v11 }
 0x4de   : > { %v10400_v62 = vrot.slane %v10372_v13, %v13998_v20 }
 0x4e0   : > { %v10402_v16 = vcombine.low %v10393_v3, %v10400_v62 }
 0x4e2   : > { %v10416_v12 = vrot.slane %v10402_v16, %v13998_v20 }
 0x4e4   : > { %v10417_v44 = vcombine.low %v10409_v31, %v10416_v12 }
 0x4e6   : > { %10425 = vst [vmem:[%s14010_s24 + $0x18] sm:$0xff] %v10417_v44 }
 0x4e7 PF: > { %s16_s21 = sadd.s32 1, %s12081_s21  }
 0x4e8   : > { %p13_p4 = scmp.ge.s32.totalorder %s16_s21, 4  }
 0x4ea   :  { %15 = sbr.rel (!%p13_p4) target bundleno = 1 (0x1), region = 136 }

</bundles_post_ra>
